<compile_context>
chip_gen: v5e
topology: v5e:2x2
jax: 0.10.0
libtpu: 0.0.40
codegen_flags: <defaults>
</compile_context>

<pallas_src>
import jax
import jax.numpy as jnp
from jax.experimental import pallas as pl
from jax.experimental.pallas import tpu as pltpu

_EPS = 1e-5


# ----------------------------- in-kernel helpers -----------------------------
def _elu(x):
    return jnp.where(x > 0, x, jnp.exp(jnp.minimum(x, 0.0)) - 1.0)


def _group_norm(y, gamma, beta, gmat, gmat_t):
    # y: (N, C); gamma/beta: (1, C); gmat: (C, G) one-hot; gmat_t: (G, C).
    n_pix, c = y.shape
    g = gmat.shape[1]
    n = float(n_pix * (c // g))
    s = jnp.sum(y, axis=0, keepdims=True)                       # (1, C)
    sq = jnp.sum(y * y, axis=0, keepdims=True)                  # (1, C)
    # stack [sum; sumsq] into one (2, C) operand -> single dot each way
    rsel = jax.lax.broadcasted_iota(jnp.int32, (2, c), 0)
    stats = jnp.where(rsel == 0,
                      jnp.broadcast_to(s, (2, c)),
                      jnp.broadcast_to(sq, (2, c)))
    gstats = jnp.dot(stats, gmat, preferred_element_type=jnp.float32) / n  # (2, G)
    mean_g = gstats[0:1]
    var_g = gstats[1:2] - mean_g * mean_g
    gsel = jax.lax.broadcasted_iota(jnp.int32, (2, g), 0)
    mv = jnp.where(gsel == 0,
                   jnp.broadcast_to(mean_g, (2, g)),
                   jnp.broadcast_to(var_g, (2, g)))
    mv_c = jnp.dot(mv, gmat_t, preferred_element_type=jnp.float32)         # (2, C)
    scale = jax.lax.rsqrt(mv_c[1:2] + _EPS) * gamma
    shift = beta - mv_c[0:1] * scale
    return y * scale + shift


# --------------------------------- kernel ------------------------------------
def _make_stem_kernel(H2, W2, C1, C2, P):
    HW2 = H2 * W2

    def kernel(patches_ref, w1_ref, b1_ref, g1_ref, be1_ref, gm1_ref, gm1t_ref,
               wl1_ref, bl1_ref, gl1_ref, bel1_ref,
               wl2_ref, bl2_ref,
               wfl_ref, wfr_ref, bf_ref, gf_ref, bef_ref, gmf_ref, gmft_ref,
               out_ref,
               pad_l1, pad_feat, pad_left, pad_right):
        # ---- conv1: single im2col matmul + GroupNorm(16, C1) (no activation) ----
        feat = jnp.dot(patches_ref[0], w1_ref[...],
                       preferred_element_type=jnp.float32) + b1_ref[...]
        feat = _group_norm(feat, g1_ref[...], be1_ref[...],
                           gm1_ref[...], gm1t_ref[...])          # (4*HW2, C1)

        # ---- left1: 1x1 conv + GroupNorm(G == C2, per-channel) + ELU ----
        fl1 = jnp.dot(feat, wl1_ref[...],
                      preferred_element_type=jnp.float32) + bl1_ref[...]
        n = float(fl1.shape[0])
        mean = jnp.sum(fl1, axis=0, keepdims=True) / n
        var = jnp.sum(fl1 * fl1, axis=0, keepdims=True) / n - mean * mean
        scale = jax.lax.rsqrt(var + _EPS) * gl1_ref[...]
        fl1 = _elu(fl1 * scale + (bel1_ref[...] - mean * scale))  # (4*HW2, C2)

        # ---- scatter parity blocks into padded scratch (1 pad row/col top/left) ----
        pad_l1[...] = jnp.zeros(pad_l1.shape, pad_l1.dtype)
        pad_feat[...] = jnp.full(pad_feat.shape, -jnp.inf, pad_feat.dtype)
        fl1_b = fl1.reshape(4, H2, W2, C2)
        feat_b = feat.reshape(4, H2, W2, C1)
        for pb in range(4):
            pad_l1[pb, 1:, 1:, :] = fl1_b[pb]
            pad_feat[pb, 1:, 1:, :] = feat_b[pb]

        # ---- left2: 3x3 stride-2 conv (C2->C1) and right: 3x3 stride-2 maxpool,
        #      both as 9 unit-stride parity taps ----
        left = jnp.zeros((HW2, C1), jnp.float32)
        right = jnp.full((HW2, C1), -jnp.inf, jnp.float32)
        for t in range(9):
            ky, kx = t // 3, t % 3
            pb = (0 if ky == 1 else 1) * 2 + (0 if kx == 1 else 1)
            rs = 0 if ky == 0 else 1
            cs = 0 if kx == 0 else 1
            sl_l1 = pad_l1[pb, rs:rs + H2, cs:cs + W2, :].reshape(HW2, C2)
            sl_ft = pad_feat[pb, rs:rs + H2, cs:cs + W2, :].reshape(HW2, C1)
            left = left + jnp.dot(sl_l1, wl2_ref[t],
                                  preferred_element_type=jnp.float32)
            right = jnp.maximum(right, sl_ft)
        left = left + bl2_ref[...]

        # ---- fuse: 3x3 stride-1 conv on [left | right] with pre-split weights,
        #      then GroupNorm(16, P) + ELU ----
        pad_left[...] = jnp.zeros(pad_left.shape, pad_left.dtype)
        pad_right[...] = jnp.zeros(pad_right.shape, pad_right.dtype)
        pad_left[1:H2 + 1, 1:W2 + 1, :] = left.reshape(H2, W2, C1)
        pad_right[1:H2 + 1, 1:W2 + 1, :] = right.reshape(H2, W2, C1)
        acc = jnp.zeros((HW2, P), jnp.float32)
        for t in range(9):
            ky, kx = t // 3, t % 3
            sl_l = pad_left[ky:ky + H2, kx:kx + W2, :].reshape(HW2, C1)
            sl_r = pad_right[ky:ky + H2, kx:kx + W2, :].reshape(HW2, C1)
            acc = acc + jnp.dot(sl_l, wfl_ref[t], preferred_element_type=jnp.float32)
            acc = acc + jnp.dot(sl_r, wfr_ref[t], preferred_element_type=jnp.float32)
        acc = acc + bf_ref[...]
        y = _group_norm(acc, gf_ref[...], bef_ref[...], gmf_ref[...], gmft_ref[...])
        out_ref[0] = _elu(y)

    return kernel


# --------------------------------- wrapper -----------------------------------
def stem_forward(x_nchw, params, out_planes):
    B, _, H0, W0 = x_nchw.shape
    H1, W1 = H0 // 2, W0 // 2
    H2, W2 = H1 // 2, W1 // 2
    C1, C2, P = out_planes // 2, out_planes // 4, out_planes
    HW2 = H2 * W2

    # --- host-side glue: im2col for conv1, ordered as parity blocks ---
    x = jnp.transpose(x_nchw, (0, 2, 3, 1))                       # NHWC
    xpad = jnp.pad(x, ((0, 0), (1, 1), (1, 1), (0, 0)))
    cols = [xpad[:, ky:ky + 2 * H1:2, kx:kx + 2 * W1:2, :]
            for ky in range(3) for kx in range(3)]
    patches = jnp.concatenate(cols, axis=-1)                      # (B, H1, W1, 27)
    blocks = [patches[:, r::2, c::2, :] for r in (0, 1) for c in (0, 1)]
    patches = jnp.stack(blocks, axis=1).reshape(B, 4 * HW2, patches.shape[-1])
    kpad = params["w1"].shape[0] - patches.shape[-1]
    patches = jnp.pad(patches, ((0, 0), (0, 0), (0, kpad)))       # (B, 4*HW2, 32)

    kernel = _make_stem_kernel(H2, W2, C1, C2, P)

    def bspec(item_shape):
        zeros = (0,) * len(item_shape)
        return pl.BlockSpec((1,) + tuple(item_shape), lambda b: (b,) + zeros)

    def cspec(shape):
        zeros = (0,) * len(shape)
        return pl.BlockSpec(tuple(shape), lambda b: zeros)

    consts = [params[k] for k in
              ("w1", "b1", "g1", "be1", "gm1", "gm1t",
               "wl1", "bl1", "gl1", "bel1",
               "wl2", "bl2",
               "wfl", "wfr", "bf", "gf", "bef", "gmf", "gmft")]

    out = pl.pallas_call(
        kernel,
        out_shape=jax.ShapeDtypeStruct((B, HW2, P), jnp.float32),
        grid=(B,),
        in_specs=[bspec(patches.shape[1:])] + [cspec(w.shape) for w in consts],
        out_specs=bspec((HW2, P)),
        scratch_shapes=[
            pltpu.VMEM((4, H2 + 1, W2 + 1, C2), jnp.float32),   # padded left1 parity blocks
            pltpu.VMEM((4, H2 + 1, W2 + 1, C1), jnp.float32),   # padded feat parity blocks
            pltpu.VMEM((H2 + 2, W2 + 2, C1), jnp.float32),      # padded left (fuse input)
            pltpu.VMEM((H2 + 2, W2 + 2, C1), jnp.float32),      # padded right (fuse input)
        ],
        compiler_params=pltpu.CompilerParams(
            dimension_semantics=("parallel",)),
    )(patches, *consts)

    out = out.reshape(B, H2, W2, P)
    return jnp.transpose(out, (0, 3, 1, 2))                       # NCHW


# ------------------------------ pure-JAX reference ----------------------------
def _conv2d_nchw(x, w, b, stride=1, padding=0):
    out = jax.lax.conv_general_dilated(
        x, w, window_strides=(stride, stride),
        padding=((padding, padding), (padding, padding)),
        dimension_numbers=("NCHW", "OIHW", "NCHW"))
    return out + b.reshape(1, -1, 1, 1)


def _gn_nchw(x, gamma, beta, G, eps=_EPS):
    Bn, C, H, W = x.shape
    xr = x.reshape(Bn, G, -1)
    mean = xr.mean(-1, keepdims=True)
    var = xr.var(-1, keepdims=True)
    xn = ((xr - mean) * jax.lax.rsqrt(var + eps)).reshape(Bn, C, H, W)
    return xn * gamma.reshape(1, -1, 1, 1) + beta.reshape(1, -1, 1, 1)


def _elu_ref(x):
    return jnp.where(x > 0, x, jnp.expm1(x))


def _maxpool_nchw(x):
    return jax.lax.reduce_window(x, -jnp.inf, jax.lax.max,
                                 (1, 1, 3, 3), (1, 1, 2, 2),
                                 padding=((0, 0), (0, 0), (1, 1), (1, 1)))


# ----------------------------------- main -------------------------------------
if __name__ == "__main__":
    out_planes = 64                      # GroupNorm(16) needs 16 | out_planes//4
    B, H0, W0 = 2, 32, 32
    C1, C2, P = out_planes // 2, out_planes // 4, out_planes

    key = jax.random.PRNGKey(0)
    ks = jax.random.split(key, 16)
    sc = 0.1

    conv1_w = jax.random.normal(ks[0], (C1, 3, 3, 3), jnp.float32) * sc
    conv1_b = jax.random.normal(ks[1], (C1,), jnp.float32) * sc
    gn1_g = 1.0 + sc * jax.random.normal(ks[2], (C1,), jnp.float32)
    gn1_b = sc * jax.random.normal(ks[3], (C1,), jnp.float32)
    l1_w = jax.random.normal(ks[4], (C2, C1, 1, 1), jnp.float32) * sc
    l1_b = jax.random.normal(ks[5], (C2,), jnp.float32) * sc
    gnl1_g = 1.0 + sc * jax.random.normal(ks[6], (C2,), jnp.float32)
    gnl1_b = sc * jax.random.normal(ks[7], (C2,), jnp.float32)
    l2_w = jax.random.normal(ks[8], (C1, C2, 3, 3), jnp.float32) * sc
    l2_b = jax.random.normal(ks[9], (C1,), jnp.float32) * sc
    fuse_w = jax.random.normal(ks[10], (P, P, 3, 3), jnp.float32) * sc
    fuse_b = jax.random.normal(ks[11], (P,), jnp.float32) * sc
    gnf_g = 1.0 + sc * jax.random.normal(ks[12], (P,), jnp.float32)
    gnf_b = sc * jax.random.normal(ks[13], (P,), jnp.float32)

    x = jax.random.normal(ks[14], (B, 3, H0, W0), jnp.float32)    # NCHW like PyTorch

    # --- pack weights into matmul-friendly tensors ---
    def group_onehot(C, G):
        return (jnp.arange(C)[:, None] // (C // G) ==
                jnp.arange(G)[None, :]).astype(jnp.float32)

    w1 = jnp.transpose(conv1_w, (2, 3, 1, 0)).reshape(27, C1)     # (tap*cin, cout)
    w1 = jnp.pad(w1, ((0, 32 - 27), (0, 0)))                      # pad K to 32
    wl2 = jnp.transpose(l2_w, (2, 3, 1, 0)).reshape(9, C2, C1)
    wfl = jnp.transpose(fuse_w[:, :C1], (2, 3, 1, 0)).reshape(9, C1, P)
    wfr = jnp.transpose(fuse_w[:, C1:], (2, 3, 1, 0)).reshape(9, C1, P)
    gm1 = group_onehot(C1, 16)
    gmf = group_onehot(P, 16)

    params = dict(
        w1=w1, b1=conv1_b.reshape(1, C1),
        g1=gn1_g.reshape(1, C1), be1=gn1_b.reshape(1, C1),
        gm1=gm1, gm1t=gm1.T,
        wl1=l1_w[:, :, 0, 0].T, bl1=l1_b.reshape(1, C2),
        gl1=gnl1_g.reshape(1, C2), bel1=gnl1_b.reshape(1, C2),
        wl2=wl2, bl2=l2_b.reshape(1, C1),
        wfl=wfl, wfr=wfr, bf=fuse_b.reshape(1, P),
        gf=gnf_g.reshape(1, P), bef=gnf_b.reshape(1, P),
        gmf=gmf, gmft=gmf.T,
    )

    # run fused Pallas kernel
    out = stem_forward(x, params, out_planes)
    jax.block_until_ready(out)

    # reference forward (pure JAX, mirrors the PyTorch module)
    feat = _gn_nchw(_conv2d_nchw(x, conv1_w, conv1_b, stride=2, padding=1),
                    gn1_g, gn1_b, 16)
    left = _elu_ref(_gn_nchw(_conv2d_nchw(feat, l1_w, l1_b, stride=1, padding=0),
                             gnl1_g, gnl1_b, 16))
    left = _conv2d_nchw(left, l2_w, l2_b, stride=2, padding=1)
    right = _maxpool_nchw(feat)
    cat = jnp.concatenate([left, right], axis=1)
    ref = _elu_ref(_gn_nchw(_conv2d_nchw(cat, fuse_w, fuse_b, stride=1, padding=1),
                            gnf_g, gnf_b, 16))

    err = float(jnp.max(jnp.abs(out - ref)))
    assert err < 1e-3, f"max abs error {err}"
    print("KERNEL_OK")
</pallas_src>

<mosaic_0001>
module attributes {stable_mosaic.version = 11 : i64} {
  func.func @kernel(%arg0: i32, %arg1: memref<1x256x32xf32, #tpu.memory_space<vmem>>, %arg2: memref<32x32xf32, #tpu.memory_space<vmem>>, %arg3: memref<1x32xf32, #tpu.memory_space<vmem>>, %arg4: memref<1x32xf32, #tpu.memory_space<vmem>>, %arg5: memref<1x32xf32, #tpu.memory_space<vmem>>, %arg6: memref<32x16xf32, #tpu.memory_space<vmem>>, %arg7: memref<16x32xf32, #tpu.memory_space<vmem>>, %arg8: memref<32x16xf32, #tpu.memory_space<vmem>>, %arg9: memref<1x16xf32, #tpu.memory_space<vmem>>, %arg10: memref<1x16xf32, #tpu.memory_space<vmem>>, %arg11: memref<1x16xf32, #tpu.memory_space<vmem>>, %arg12: memref<9x16x32xf32, #tpu.memory_space<vmem>>, %arg13: memref<1x32xf32, #tpu.memory_space<vmem>>, %arg14: memref<9x32x64xf32, #tpu.memory_space<vmem>>, %arg15: memref<9x32x64xf32, #tpu.memory_space<vmem>>, %arg16: memref<1x64xf32, #tpu.memory_space<vmem>>, %arg17: memref<1x64xf32, #tpu.memory_space<vmem>>, %arg18: memref<1x64xf32, #tpu.memory_space<vmem>>, %arg19: memref<64x16xf32, #tpu.memory_space<vmem>>, %arg20: memref<16x64xf32, #tpu.memory_space<vmem>>, %arg21: memref<1x64x64xf32, #tpu.memory_space<vmem>>, %arg22: memref<4x9x9x16xf32, #tpu.memory_space<vmem>>, %arg23: memref<4x9x9x32xf32, #tpu.memory_space<vmem>>, %arg24: memref<10x10x32xf32, #tpu.memory_space<vmem>>, %arg25: memref<10x10x32xf32, #tpu.memory_space<vmem>>) attributes {dimension_semantics = [#tpu.dimension_semantics<parallel>], iteration_bounds = array<i64: 2>, scalar_prefetch = 0 : i64, scratch_operands = 4 : i64, tpu.core_type = #tpu.core_type<tc>, window_params = [{transform_indices = @transform_0, window_bounds = array<i64: 1, 256, 32>}, {pipeline_mode = #tpu.pipeline_mode<synchronous>, transform_indices = @transform_1, window_bounds = array<i64: 32, 32>}, {pipeline_mode = #tpu.pipeline_mode<synchronous>, transform_indices = @transform_2, window_bounds = array<i64: 1, 32>}, {pipeline_mode = #tpu.pipeline_mode<synchronous>, transform_indices = @transform_3, window_bounds = array<i64: 1, 32>}, {pipeline_mode = #tpu.pipeline_mode<synchronous>, transform_indices = @transform_4, window_bounds = array<i64: 1, 32>}, {pipeline_mode = #tpu.pipeline_mode<synchronous>, transform_indices = @transform_5, window_bounds = array<i64: 32, 16>}, {pipeline_mode = #tpu.pipeline_mode<synchronous>, transform_indices = @transform_6, window_bounds = array<i64: 16, 32>}, {pipeline_mode = #tpu.pipeline_mode<synchronous>, transform_indices = @transform_7, window_bounds = array<i64: 32, 16>}, {pipeline_mode = #tpu.pipeline_mode<synchronous>, transform_indices = @transform_8, window_bounds = array<i64: 1, 16>}, {pipeline_mode = #tpu.pipeline_mode<synchronous>, transform_indices = @transform_9, window_bounds = array<i64: 1, 16>}, {pipeline_mode = #tpu.pipeline_mode<synchronous>, transform_indices = @transform_10, window_bounds = array<i64: 1, 16>}, {pipeline_mode = #tpu.pipeline_mode<synchronous>, transform_indices = @transform_11, window_bounds = array<i64: 9, 16, 32>}, {pipeline_mode = #tpu.pipeline_mode<synchronous>, transform_indices = @transform_12, window_bounds = array<i64: 1, 32>}, {pipeline_mode = #tpu.pipeline_mode<synchronous>, transform_indices = @transform_13, window_bounds = array<i64: 9, 32, 64>}, {pipeline_mode = #tpu.pipeline_mode<synchronous>, transform_indices = @transform_14, window_bounds = array<i64: 9, 32, 64>}, {pipeline_mode = #tpu.pipeline_mode<synchronous>, transform_indices = @transform_15, window_bounds = array<i64: 1, 64>}, {pipeline_mode = #tpu.pipeline_mode<synchronous>, transform_indices = @transform_16, window_bounds = array<i64: 1, 64>}, {pipeline_mode = #tpu.pipeline_mode<synchronous>, transform_indices = @transform_17, window_bounds = array<i64: 1, 64>}, {pipeline_mode = #tpu.pipeline_mode<synchronous>, transform_indices = @transform_18, window_bounds = array<i64: 64, 16>}, {pipeline_mode = #tpu.pipeline_mode<synchronous>, transform_indices = @transform_19, window_bounds = array<i64: 16, 64>}, {transform_indices = @transform_20, window_bounds = array<i64: 1, 64, 64>}]} {
    %c0 = arith.constant 0 : index
    %c0_0 = arith.constant 0 : index
    %c0_1 = arith.constant 0 : index
    %0 = vector.load %arg1[%c0, %c0_0, %c0_1] : memref<1x256x32xf32, #tpu.memory_space<vmem>>, vector<1x256x32xf32>
    %1 = vector.shape_cast %0 : vector<1x256x32xf32> to vector<256x32xf32>
    %c0_2 = arith.constant 0 : index
    %c0_3 = arith.constant 0 : index
    %2 = vector.load %arg2[%c0_2, %c0_3] : memref<32x32xf32, #tpu.memory_space<vmem>>, vector<32x32xf32>
    %cst = arith.constant dense<0.000000e+00> : vector<256x32xf32>
    %3 = tpu.matmul %1, %2, %cst {dimension_numbers = #tpu.dot_dimension_numbers<[1], [0], [0], [1], [0, 0, 1, 1], [], []>} : vector<256x32xf32>, vector<32x32xf32>, vector<256x32xf32> -> vector<256x32xf32>
    %c0_4 = arith.constant 0 : index
    %c0_5 = arith.constant 0 : index
    %4 = vector.load %arg3[%c0_4, %c0_5] : memref<1x32xf32, #tpu.memory_space<vmem>>, vector<1x32xf32>
    %5 = vector.broadcast %4 : vector<1x32xf32> to vector<256x32xf32>
    %6 = arith.addf %3, %5 : vector<256x32xf32>
    %c0_6 = arith.constant 0 : index
    %c0_7 = arith.constant 0 : index
    %7 = vector.load %arg4[%c0_6, %c0_7] : memref<1x32xf32, #tpu.memory_space<vmem>>, vector<1x32xf32>
    %c0_8 = arith.constant 0 : index
    %c0_9 = arith.constant 0 : index
    %8 = vector.load %arg5[%c0_8, %c0_9] : memref<1x32xf32, #tpu.memory_space<vmem>>, vector<1x32xf32>
    %c0_10 = arith.constant 0 : index
    %c0_11 = arith.constant 0 : index
    %9 = vector.load %arg6[%c0_10, %c0_11] : memref<32x16xf32, #tpu.memory_space<vmem>>, vector<32x16xf32>
    %c0_12 = arith.constant 0 : index
    %c0_13 = arith.constant 0 : index
    %10 = vector.load %arg7[%c0_12, %c0_13] : memref<16x32xf32, #tpu.memory_space<vmem>>, vector<16x32xf32>
    %cst_14 = arith.constant dense<0.000000e+00> : vector<32xf32>
    %11 = vector.multi_reduction <add>, %6, %cst_14 [0] : vector<256x32xf32> to vector<32xf32>
    %12 = vector.shape_cast %11 : vector<32xf32> to vector<1x32xf32>
    %13 = arith.mulf %6, %6 : vector<256x32xf32>
    %cst_15 = arith.constant dense<0.000000e+00> : vector<32xf32>
    %14 = vector.multi_reduction <add>, %13, %cst_15 [0] : vector<256x32xf32> to vector<32xf32>
    %15 = vector.shape_cast %14 : vector<32xf32> to vector<1x32xf32>
    %16 = tpu.iota {dimensions = array<i32: 0>} : vector<2x32xi32>
    %c0_i32 = arith.constant 0 : i32
    %17 = vector.broadcast %c0_i32 : i32 to vector<2x32xi32>
    %18 = arith.cmpi eq, %16, %17 : vector<2x32xi32>
    %19 = vector.shape_cast %12 : vector<1x32xf32> to vector<1x32xf32>
    %20 = vector.broadcast %19 : vector<1x32xf32> to vector<2x32xf32>
    %21 = vector.shape_cast %15 : vector<1x32xf32> to vector<1x32xf32>
    %22 = vector.broadcast %21 : vector<1x32xf32> to vector<2x32xf32>
    %23 = arith.select %18, %20, %22 : vector<2x32xi1>, vector<2x32xf32>
    %cst_16 = arith.constant dense<0.000000e+00> : vector<2x16xf32>
    %24 = tpu.matmul %23, %9, %cst_16 {dimension_numbers = #tpu.dot_dimension_numbers<[1], [0], [0], [1], [0, 0, 1, 1], [], []>} : vector<2x32xf32>, vector<32x16xf32>, vector<2x16xf32> -> vector<2x16xf32>
    %cst_17 = arith.constant 5.120000e+02 : f32
    %25 = vector.broadcast %cst_17 : f32 to vector<2x16xf32>
    %26 = arith.divf %24, %25 : vector<2x16xf32>
    %27 = vector.extract_strided_slice %26 {offsets = [0, 0], sizes = [1, 16], strides = [1, 1]} : vector<2x16xf32> to vector<1x16xf32>
    %28 = vector.extract_strided_slice %26 {offsets = [1, 0], sizes = [1, 16], strides = [1, 1]} : vector<2x16xf32> to vector<1x16xf32>
    %29 = arith.mulf %27, %27 : vector<1x16xf32>
    %30 = arith.subf %28, %29 : vector<1x16xf32>
    %31 = tpu.iota {dimensions = array<i32: 0>} : vector<2x16xi32>
    %c0_i32_18 = arith.constant 0 : i32
    %32 = vector.broadcast %c0_i32_18 : i32 to vector<2x16xi32>
    %33 = arith.cmpi eq, %31, %32 : vector<2x16xi32>
    %34 = vector.shape_cast %27 : vector<1x16xf32> to vector<1x16xf32>
    %35 = vector.broadcast %34 : vector<1x16xf32> to vector<2x16xf32>
    %36 = vector.shape_cast %30 : vector<1x16xf32> to vector<1x16xf32>
    %37 = vector.broadcast %36 : vector<1x16xf32> to vector<2x16xf32>
    %38 = arith.select %33, %35, %37 : vector<2x16xi1>, vector<2x16xf32>
    %cst_19 = arith.constant dense<0.000000e+00> : vector<2x32xf32>
    %39 = tpu.matmul %38, %10, %cst_19 {dimension_numbers = #tpu.dot_dimension_numbers<[1], [0], [0], [1], [0, 0, 1, 1], [], []>} : vector<2x16xf32>, vector<16x32xf32>, vector<2x32xf32> -> vector<2x32xf32>
    %40 = vector.extract_strided_slice %39 {offsets = [1, 0], sizes = [1, 32], strides = [1, 1]} : vector<2x32xf32> to vector<1x32xf32>
    %cst_20 = arith.constant 9.99999974E-6 : f32
    %41 = vector.broadcast %cst_20 : f32 to vector<1x32xf32>
    %42 = arith.addf %40, %41 : vector<1x32xf32>
    %43 = math.rsqrt %42 : vector<1x32xf32>
    %44 = arith.mulf %43, %7 : vector<1x32xf32>
    %45 = vector.extract_strided_slice %39 {offsets = [0, 0], sizes = [1, 32], strides = [1, 1]} : vector<2x32xf32> to vector<1x32xf32>
    %46 = arith.mulf %45, %44 : vector<1x32xf32>
    %47 = arith.subf %8, %46 : vector<1x32xf32>
    %48 = vector.broadcast %44 : vector<1x32xf32> to vector<256x32xf32>
    %49 = arith.mulf %6, %48 : vector<256x32xf32>
    %50 = vector.broadcast %47 : vector<1x32xf32> to vector<256x32xf32>
    %51 = arith.addf %49, %50 : vector<256x32xf32>
    %c0_21 = arith.constant 0 : index
    %c0_22 = arith.constant 0 : index
    %52 = vector.load %arg8[%c0_21, %c0_22] : memref<32x16xf32, #tpu.memory_space<vmem>>, vector<32x16xf32>
    %cst_23 = arith.constant dense<0.000000e+00> : vector<256x16xf32>
    %53 = tpu.matmul %51, %52, %cst_23 {dimension_numbers = #tpu.dot_dimension_numbers<[1], [0], [0], [1], [0, 0, 1, 1], [], []>} : vector<256x32xf32>, vector<32x16xf32>, vector<256x16xf32> -> vector<256x16xf32>
    %c0_24 = arith.constant 0 : index
    %c0_25 = arith.constant 0 : index
    %54 = vector.load %arg9[%c0_24, %c0_25] : memref<1x16xf32, #tpu.memory_space<vmem>>, vector<1x16xf32>
    %55 = vector.broadcast %54 : vector<1x16xf32> to vector<256x16xf32>
    %56 = arith.addf %53, %55 : vector<256x16xf32>
    %cst_26 = arith.constant dense<0.000000e+00> : vector<16xf32>
    %57 = vector.multi_reduction <add>, %56, %cst_26 [0] : vector<256x16xf32> to vector<16xf32>
    %58 = vector.shape_cast %57 : vector<16xf32> to vector<1x16xf32>
    %cst_27 = arith.constant 2.560000e+02 : f32
    %59 = vector.broadcast %cst_27 : f32 to vector<1x16xf32>
    %60 = arith.divf %58, %59 : vector<1x16xf32>
    %61 = arith.mulf %56, %56 : vector<256x16xf32>
    %cst_28 = arith.constant dense<0.000000e+00> : vector<16xf32>
    %62 = vector.multi_reduction <add>, %61, %cst_28 [0] : vector<256x16xf32> to vector<16xf32>
    %63 = vector.shape_cast %62 : vector<16xf32> to vector<1x16xf32>
    %cst_29 = arith.constant 2.560000e+02 : f32
    %64 = vector.broadcast %cst_29 : f32 to vector<1x16xf32>
    %65 = arith.divf %63, %64 : vector<1x16xf32>
    %66 = arith.mulf %60, %60 : vector<1x16xf32>
    %67 = arith.subf %65, %66 : vector<1x16xf32>
    %cst_30 = arith.constant 9.99999974E-6 : f32
    %68 = vector.broadcast %cst_30 : f32 to vector<1x16xf32>
    %69 = arith.addf %67, %68 : vector<1x16xf32>
    %70 = math.rsqrt %69 : vector<1x16xf32>
    %c0_31 = arith.constant 0 : index
    %c0_32 = arith.constant 0 : index
    %71 = vector.load %arg10[%c0_31, %c0_32] : memref<1x16xf32, #tpu.memory_space<vmem>>, vector<1x16xf32>
    %72 = arith.mulf %70, %71 : vector<1x16xf32>
    %73 = vector.broadcast %72 : vector<1x16xf32> to vector<256x16xf32>
    %74 = arith.mulf %56, %73 : vector<256x16xf32>
    %c0_33 = arith.constant 0 : index
    %c0_34 = arith.constant 0 : index
    %75 = vector.load %arg11[%c0_33, %c0_34] : memref<1x16xf32, #tpu.memory_space<vmem>>, vector<1x16xf32>
    %76 = arith.mulf %60, %72 : vector<1x16xf32>
    %77 = arith.subf %75, %76 : vector<1x16xf32>
    %78 = vector.broadcast %77 : vector<1x16xf32> to vector<256x16xf32>
    %79 = arith.addf %74, %78 : vector<256x16xf32>
    %cst_35 = arith.constant 0.000000e+00 : f32
    %80 = vector.broadcast %cst_35 : f32 to vector<256x16xf32>
    %81 = arith.cmpf ogt, %79, %80 : vector<256x16xf32>
    %cst_36 = arith.constant 0.000000e+00 : f32
    %82 = vector.broadcast %cst_36 : f32 to vector<256x16xf32>
    %83 = arith.minimumf %79, %82 : vector<256x16xf32>
    %84 = math.exp %83 : vector<256x16xf32>
    %cst_37 = arith.constant 1.000000e+00 : f32
    %85 = vector.broadcast %cst_37 : f32 to vector<256x16xf32>
    %86 = arith.subf %84, %85 : vector<256x16xf32>
    %87 = arith.select %81, %79, %86 : vector<256x16xi1>, vector<256x16xf32>
    %cst_38 = arith.constant 0.000000e+00 : f32
    %88 = vector.broadcast %cst_38 : f32 to vector<4x9x9x16xf32>
    %c0_39 = arith.constant 0 : index
    %c0_40 = arith.constant 0 : index
    %c0_41 = arith.constant 0 : index
    %c0_42 = arith.constant 0 : index
    %89 = vector.load %arg22[%c0_39, %c0_40, %c0_41, %c0_42] : memref<4x9x9x16xf32, #tpu.memory_space<vmem>>, vector<4x9x9x16xf32>
    tpu.vector_store %arg22[%c0_39, %c0_40, %c0_41, %c0_42], %88 {strides = array<i32>} : memref<4x9x9x16xf32, #tpu.memory_space<vmem>>, vector<4x9x9x16xf32>,
    %cst_43 = arith.constant 0xFF800000 : f32
    %90 = vector.broadcast %cst_43 : f32 to vector<4x9x9x32xf32>
    %c0_44 = arith.constant 0 : index
    %c0_45 = arith.constant 0 : index
    %c0_46 = arith.constant 0 : index
    %c0_47 = arith.constant 0 : index
    %91 = vector.load %arg23[%c0_44, %c0_45, %c0_46, %c0_47] : memref<4x9x9x32xf32, #tpu.memory_space<vmem>>, vector<4x9x9x32xf32>
    tpu.vector_store %arg23[%c0_44, %c0_45, %c0_46, %c0_47], %90 {strides = array<i32>} : memref<4x9x9x32xf32, #tpu.memory_space<vmem>>, vector<4x9x9x32xf32>,
    %92 = vector.shape_cast %87 : vector<256x16xf32> to vector<4x8x8x16xf32>
    %93 = vector.shape_cast %51 : vector<256x32xf32> to vector<4x8x8x32xf32>
    %94 = vector.extract_strided_slice %92 {offsets = [0, 0, 0, 0], sizes = [1, 8, 8, 16], strides = [1, 1, 1, 1]} : vector<4x8x8x16xf32> to vector<1x8x8x16xf32>
    %95 = vector.shape_cast %94 : vector<1x8x8x16xf32> to vector<8x8x16xf32>
    %c0_48 = arith.constant 0 : index
    %c1 = arith.constant 1 : index
    %c1_49 = arith.constant 1 : index
    %c0_50 = arith.constant 0 : index
    %96 = vector.load %arg22[%c0_48, %c1, %c1_49, %c0_50] : memref<4x9x9x16xf32, #tpu.memory_space<vmem>>, vector<1x8x8x16xf32>
    %97 = vector.shape_cast %96 : vector<1x8x8x16xf32> to vector<8x8x16xf32>
    %98 = vector.shape_cast %95 : vector<8x8x16xf32> to vector<1x8x8x16xf32>
    tpu.vector_store %arg22[%c0_48, %c1, %c1_49, %c0_50], %98 {strides = array<i32>} : memref<4x9x9x16xf32, #tpu.memory_space<vmem>>, vector<1x8x8x16xf32>,
    %99 = vector.extract_strided_slice %93 {offsets = [0, 0, 0, 0], sizes = [1, 8, 8, 32], strides = [1, 1, 1, 1]} : vector<4x8x8x32xf32> to vector<1x8x8x32xf32>
    %100 = vector.shape_cast %99 : vector<1x8x8x32xf32> to vector<8x8x32xf32>
    %c0_51 = arith.constant 0 : index
    %c1_52 = arith.constant 1 : index
    %c1_53 = arith.constant 1 : index
    %c0_54 = arith.constant 0 : index
    %101 = vector.load %arg23[%c0_51, %c1_52, %c1_53, %c0_54] : memref<4x9x9x32xf32, #tpu.memory_space<vmem>>, vector<1x8x8x32xf32>
    %102 = vector.shape_cast %101 : vector<1x8x8x32xf32> to vector<8x8x32xf32>
    %103 = vector.shape_cast %100 : vector<8x8x32xf32> to vector<1x8x8x32xf32>
    tpu.vector_store %arg23[%c0_51, %c1_52, %c1_53, %c0_54], %103 {strides = array<i32>} : memref<4x9x9x32xf32, #tpu.memory_space<vmem>>, vector<1x8x8x32xf32>,
    %104 = vector.extract_strided_slice %92 {offsets = [1, 0, 0, 0], sizes = [1, 8, 8, 16], strides = [1, 1, 1, 1]} : vector<4x8x8x16xf32> to vector<1x8x8x16xf32>
    %105 = vector.shape_cast %104 : vector<1x8x8x16xf32> to vector<8x8x16xf32>
    %c1_55 = arith.constant 1 : index
    %c1_56 = arith.constant 1 : index
    %c1_57 = arith.constant 1 : index
    %c0_58 = arith.constant 0 : index
    %106 = vector.load %arg22[%c1_55, %c1_56, %c1_57, %c0_58] : memref<4x9x9x16xf32, #tpu.memory_space<vmem>>, vector<1x8x8x16xf32>
    %107 = vector.shape_cast %106 : vector<1x8x8x16xf32> to vector<8x8x16xf32>
    %108 = vector.shape_cast %105 : vector<8x8x16xf32> to vector<1x8x8x16xf32>
    tpu.vector_store %arg22[%c1_55, %c1_56, %c1_57, %c0_58], %108 {strides = array<i32>} : memref<4x9x9x16xf32, #tpu.memory_space<vmem>>, vector<1x8x8x16xf32>,
    %109 = vector.extract_strided_slice %93 {offsets = [1, 0, 0, 0], sizes = [1, 8, 8, 32], strides = [1, 1, 1, 1]} : vector<4x8x8x32xf32> to vector<1x8x8x32xf32>
    %110 = vector.shape_cast %109 : vector<1x8x8x32xf32> to vector<8x8x32xf32>
    %c1_59 = arith.constant 1 : index
    %c1_60 = arith.constant 1 : index
    %c1_61 = arith.constant 1 : index
    %c0_62 = arith.constant 0 : index
    %111 = vector.load %arg23[%c1_59, %c1_60, %c1_61, %c0_62] : memref<4x9x9x32xf32, #tpu.memory_space<vmem>>, vector<1x8x8x32xf32>
    %112 = vector.shape_cast %111 : vector<1x8x8x32xf32> to vector<8x8x32xf32>
    %113 = vector.shape_cast %110 : vector<8x8x32xf32> to vector<1x8x8x32xf32>
    tpu.vector_store %arg23[%c1_59, %c1_60, %c1_61, %c0_62], %113 {strides = array<i32>} : memref<4x9x9x32xf32, #tpu.memory_space<vmem>>, vector<1x8x8x32xf32>,
    %114 = vector.extract_strided_slice %92 {offsets = [2, 0, 0, 0], sizes = [1, 8, 8, 16], strides = [1, 1, 1, 1]} : vector<4x8x8x16xf32> to vector<1x8x8x16xf32>
    %115 = vector.shape_cast %114 : vector<1x8x8x16xf32> to vector<8x8x16xf32>
    %c2 = arith.constant 2 : index
    %c1_63 = arith.constant 1 : index
    %c1_64 = arith.constant 1 : index
    %c0_65 = arith.constant 0 : index
    %116 = vector.load %arg22[%c2, %c1_63, %c1_64, %c0_65] : memref<4x9x9x16xf32, #tpu.memory_space<vmem>>, vector<1x8x8x16xf32>
    %117 = vector.shape_cast %116 : vector<1x8x8x16xf32> to vector<8x8x16xf32>
    %118 = vector.shape_cast %115 : vector<8x8x16xf32> to vector<1x8x8x16xf32>
    tpu.vector_store %arg22[%c2, %c1_63, %c1_64, %c0_65], %118 {strides = array<i32>} : memref<4x9x9x16xf32, #tpu.memory_space<vmem>>, vector<1x8x8x16xf32>,
    %119 = vector.extract_strided_slice %93 {offsets = [2, 0, 0, 0], sizes = [1, 8, 8, 32], strides = [1, 1, 1, 1]} : vector<4x8x8x32xf32> to vector<1x8x8x32xf32>
    %120 = vector.shape_cast %119 : vector<1x8x8x32xf32> to vector<8x8x32xf32>
    %c2_66 = arith.constant 2 : index
    %c1_67 = arith.constant 1 : index
    %c1_68 = arith.constant 1 : index
    %c0_69 = arith.constant 0 : index
    %121 = vector.load %arg23[%c2_66, %c1_67, %c1_68, %c0_69] : memref<4x9x9x32xf32, #tpu.memory_space<vmem>>, vector<1x8x8x32xf32>
    %122 = vector.shape_cast %121 : vector<1x8x8x32xf32> to vector<8x8x32xf32>
    %123 = vector.shape_cast %120 : vector<8x8x32xf32> to vector<1x8x8x32xf32>
    tpu.vector_store %arg23[%c2_66, %c1_67, %c1_68, %c0_69], %123 {strides = array<i32>} : memref<4x9x9x32xf32, #tpu.memory_space<vmem>>, vector<1x8x8x32xf32>,
    %124 = vector.extract_strided_slice %92 {offsets = [3, 0, 0, 0], sizes = [1, 8, 8, 16], strides = [1, 1, 1, 1]} : vector<4x8x8x16xf32> to vector<1x8x8x16xf32>
    %125 = vector.shape_cast %124 : vector<1x8x8x16xf32> to vector<8x8x16xf32>
    %c3 = arith.constant 3 : index
    %c1_70 = arith.constant 1 : index
    %c1_71 = arith.constant 1 : index
    %c0_72 = arith.constant 0 : index
    %126 = vector.load %arg22[%c3, %c1_70, %c1_71, %c0_72] : memref<4x9x9x16xf32, #tpu.memory_space<vmem>>, vector<1x8x8x16xf32>
    %127 = vector.shape_cast %126 : vector<1x8x8x16xf32> to vector<8x8x16xf32>
    %128 = vector.shape_cast %125 : vector<8x8x16xf32> to vector<1x8x8x16xf32>
    tpu.vector_store %arg22[%c3, %c1_70, %c1_71, %c0_72], %128 {strides = array<i32>} : memref<4x9x9x16xf32, #tpu.memory_space<vmem>>, vector<1x8x8x16xf32>,
    %129 = vector.extract_strided_slice %93 {offsets = [3, 0, 0, 0], sizes = [1, 8, 8, 32], strides = [1, 1, 1, 1]} : vector<4x8x8x32xf32> to vector<1x8x8x32xf32>
    %130 = vector.shape_cast %129 : vector<1x8x8x32xf32> to vector<8x8x32xf32>
    %c3_73 = arith.constant 3 : index
    %c1_74 = arith.constant 1 : index
    %c1_75 = arith.constant 1 : index
    %c0_76 = arith.constant 0 : index
    %131 = vector.load %arg23[%c3_73, %c1_74, %c1_75, %c0_76] : memref<4x9x9x32xf32, #tpu.memory_space<vmem>>, vector<1x8x8x32xf32>
    %132 = vector.shape_cast %131 : vector<1x8x8x32xf32> to vector<8x8x32xf32>
    %133 = vector.shape_cast %130 : vector<8x8x32xf32> to vector<1x8x8x32xf32>
    tpu.vector_store %arg23[%c3_73, %c1_74, %c1_75, %c0_76], %133 {strides = array<i32>} : memref<4x9x9x32xf32, #tpu.memory_space<vmem>>, vector<1x8x8x32xf32>,
    %cst_77 = arith.constant 0.000000e+00 : f32
    %134 = vector.broadcast %cst_77 : f32 to vector<64x32xf32>
    %cst_78 = arith.constant 0xFF800000 : f32
    %135 = vector.broadcast %cst_78 : f32 to vector<64x32xf32>
    %c3_79 = arith.constant 3 : index
    %c0_80 = arith.constant 0 : index
    %c0_81 = arith.constant 0 : index
    %c0_82 = arith.constant 0 : index
    %136 = vector.load %arg22[%c3_79, %c0_80, %c0_81, %c0_82] : memref<4x9x9x16xf32, #tpu.memory_space<vmem>>, vector<1x8x8x16xf32>
    %137 = vector.shape_cast %136 : vector<1x8x8x16xf32> to vector<8x8x16xf32>
    %138 = vector.shape_cast %137 : vector<8x8x16xf32> to vector<64x16xf32>
    %c3_83 = arith.constant 3 : index
    %c0_84 = arith.constant 0 : index
    %c0_85 = arith.constant 0 : index
    %c0_86 = arith.constant 0 : index
    %139 = vector.load %arg23[%c3_83, %c0_84, %c0_85, %c0_86] : memref<4x9x9x32xf32, #tpu.memory_space<vmem>>, vector<1x8x8x32xf32>
    %140 = vector.shape_cast %139 : vector<1x8x8x32xf32> to vector<8x8x32xf32>
    %141 = vector.shape_cast %140 : vector<8x8x32xf32> to vector<64x32xf32>
    %c0_87 = arith.constant 0 : index
    %c0_88 = arith.constant 0 : index
    %c0_89 = arith.constant 0 : index
    %142 = vector.load %arg12[%c0_87, %c0_88, %c0_89] : memref<9x16x32xf32, #tpu.memory_space<vmem>>, vector<1x16x32xf32>
    %143 = vector.shape_cast %142 : vector<1x16x32xf32> to vector<16x32xf32>
    %cst_90 = arith.constant dense<0.000000e+00> : vector<64x32xf32>
    %144 = tpu.matmul %138, %143, %cst_90 {dimension_numbers = #tpu.dot_dimension_numbers<[1], [0], [0], [1], [0, 0, 1, 1], [], []>} : vector<64x16xf32>, vector<16x32xf32>, vector<64x32xf32> -> vector<64x32xf32>
    %145 = arith.addf %134, %144 : vector<64x32xf32>
    %146 = arith.maximumf %135, %141 : vector<64x32xf32>
    %c2_91 = arith.constant 2 : index
    %c0_92 = arith.constant 0 : index
    %c1_93 = arith.constant 1 : index
    %c0_94 = arith.constant 0 : index
    %147 = vector.load %arg22[%c2_91, %c0_92, %c1_93, %c0_94] : memref<4x9x9x16xf32, #tpu.memory_space<vmem>>, vector<1x8x8x16xf32>
    %148 = vector.shape_cast %147 : vector<1x8x8x16xf32> to vector<8x8x16xf32>
    %149 = vector.shape_cast %148 : vector<8x8x16xf32> to vector<64x16xf32>
    %c2_95 = arith.constant 2 : index
    %c0_96 = arith.constant 0 : index
    %c1_97 = arith.constant 1 : index
    %c0_98 = arith.constant 0 : index
    %150 = vector.load %arg23[%c2_95, %c0_96, %c1_97, %c0_98] : memref<4x9x9x32xf32, #tpu.memory_space<vmem>>, vector<1x8x8x32xf32>
    %151 = vector.shape_cast %150 : vector<1x8x8x32xf32> to vector<8x8x32xf32>
    %152 = vector.shape_cast %151 : vector<8x8x32xf32> to vector<64x32xf32>
    %c1_99 = arith.constant 1 : index
    %c0_100 = arith.constant 0 : index
    %c0_101 = arith.constant 0 : index
    %153 = vector.load %arg12[%c1_99, %c0_100, %c0_101] : memref<9x16x32xf32, #tpu.memory_space<vmem>>, vector<1x16x32xf32>
    %154 = vector.shape_cast %153 : vector<1x16x32xf32> to vector<16x32xf32>
    %cst_102 = arith.constant dense<0.000000e+00> : vector<64x32xf32>
    %155 = tpu.matmul %149, %154, %cst_102 {dimension_numbers = #tpu.dot_dimension_numbers<[1], [0], [0], [1], [0, 0, 1, 1], [], []>} : vector<64x16xf32>, vector<16x32xf32>, vector<64x32xf32> -> vector<64x32xf32>
    %156 = arith.addf %145, %155 : vector<64x32xf32>
    %157 = arith.maximumf %146, %152 : vector<64x32xf32>
    %c3_103 = arith.constant 3 : index
    %c0_104 = arith.constant 0 : index
    %c1_105 = arith.constant 1 : index
    %c0_106 = arith.constant 0 : index
    %158 = vector.load %arg22[%c3_103, %c0_104, %c1_105, %c0_106] : memref<4x9x9x16xf32, #tpu.memory_space<vmem>>, vector<1x8x8x16xf32>
    %159 = vector.shape_cast %158 : vector<1x8x8x16xf32> to vector<8x8x16xf32>
    %160 = vector.shape_cast %159 : vector<8x8x16xf32> to vector<64x16xf32>
    %c3_107 = arith.constant 3 : index
    %c0_108 = arith.constant 0 : index
    %c1_109 = arith.constant 1 : index
    %c0_110 = arith.constant 0 : index
    %161 = vector.load %arg23[%c3_107, %c0_108, %c1_109, %c0_110] : memref<4x9x9x32xf32, #tpu.memory_space<vmem>>, vector<1x8x8x32xf32>
    %162 = vector.shape_cast %161 : vector<1x8x8x32xf32> to vector<8x8x32xf32>
    %163 = vector.shape_cast %162 : vector<8x8x32xf32> to vector<64x32xf32>
    %c2_111 = arith.constant 2 : index
    %c0_112 = arith.constant 0 : index
    %c0_113 = arith.constant 0 : index
    %164 = vector.load %arg12[%c2_111, %c0_112, %c0_113] : memref<9x16x32xf32, #tpu.memory_space<vmem>>, vector<1x16x32xf32>
    %165 = vector.shape_cast %164 : vector<1x16x32xf32> to vector<16x32xf32>
    %cst_114 = arith.constant dense<0.000000e+00> : vector<64x32xf32>
    %166 = tpu.matmul %160, %165, %cst_114 {dimension_numbers = #tpu.dot_dimension_numbers<[1], [0], [0], [1], [0, 0, 1, 1], [], []>} : vector<64x16xf32>, vector<16x32xf32>, vector<64x32xf32> -> vector<64x32xf32>
    %167 = arith.addf %156, %166 : vector<64x32xf32>
    %168 = arith.maximumf %157, %163 : vector<64x32xf32>
    %c1_115 = arith.constant 1 : index
    %c1_116 = arith.constant 1 : index
    %c0_117 = arith.constant 0 : index
    %c0_118 = arith.constant 0 : index
    %169 = vector.load %arg22[%c1_115, %c1_116, %c0_117, %c0_118] : memref<4x9x9x16xf32, #tpu.memory_space<vmem>>, vector<1x8x8x16xf32>
    %170 = vector.shape_cast %169 : vector<1x8x8x16xf32> to vector<8x8x16xf32>
    %171 = vector.shape_cast %170 : vector<8x8x16xf32> to vector<64x16xf32>
    %c1_119 = arith.constant 1 : index
    %c1_120 = arith.constant 1 : index
    %c0_121 = arith.constant 0 : index
    %c0_122 = arith.constant 0 : index
    %172 = vector.load %arg23[%c1_119, %c1_120, %c0_121, %c0_122] : memref<4x9x9x32xf32, #tpu.memory_space<vmem>>, vector<1x8x8x32xf32>
    %173 = vector.shape_cast %172 : vector<1x8x8x32xf32> to vector<8x8x32xf32>
    %174 = vector.shape_cast %173 : vector<8x8x32xf32> to vector<64x32xf32>
    %c3_123 = arith.constant 3 : index
    %c0_124 = arith.constant 0 : index
    %c0_125 = arith.constant 0 : index
    %175 = vector.load %arg12[%c3_123, %c0_124, %c0_125] : memref<9x16x32xf32, #tpu.memory_space<vmem>>, vector<1x16x32xf32>
    %176 = vector.shape_cast %175 : vector<1x16x32xf32> to vector<16x32xf32>
    %cst_126 = arith.constant dense<0.000000e+00> : vector<64x32xf32>
    %177 = tpu.matmul %171, %176, %cst_126 {dimension_numbers = #tpu.dot_dimension_numbers<[1], [0], [0], [1], [0, 0, 1, 1], [], []>} : vector<64x16xf32>, vector<16x32xf32>, vector<64x32xf32> -> vector<64x32xf32>
    %178 = arith.addf %167, %177 : vector<64x32xf32>
    %179 = arith.maximumf %168, %174 : vector<64x32xf32>
    %c0_127 = arith.constant 0 : index
    %c1_128 = arith.constant 1 : index
    %c1_129 = arith.constant 1 : index
    %c0_130 = arith.constant 0 : index
    %180 = vector.load %arg22[%c0_127, %c1_128, %c1_129, %c0_130] : memref<4x9x9x16xf32, #tpu.memory_space<vmem>>, vector<1x8x8x16xf32>
    %181 = vector.shape_cast %180 : vector<1x8x8x16xf32> to vector<8x8x16xf32>
    %182 = vector.shape_cast %181 : vector<8x8x16xf32> to vector<64x16xf32>
    %c0_131 = arith.constant 0 : index
    %c1_132 = arith.constant 1 : index
    %c1_133 = arith.constant 1 : index
    %c0_134 = arith.constant 0 : index
    %183 = vector.load %arg23[%c0_131, %c1_132, %c1_133, %c0_134] : memref<4x9x9x32xf32, #tpu.memory_space<vmem>>, vector<1x8x8x32xf32>
    %184 = vector.shape_cast %183 : vector<1x8x8x32xf32> to vector<8x8x32xf32>
    %185 = vector.shape_cast %184 : vector<8x8x32xf32> to vector<64x32xf32>
    %c4 = arith.constant 4 : index
    %c0_135 = arith.constant 0 : index
    %c0_136 = arith.constant 0 : index
    %186 = vector.load %arg12[%c4, %c0_135, %c0_136] : memref<9x16x32xf32, #tpu.memory_space<vmem>>, vector<1x16x32xf32>
    %187 = vector.shape_cast %186 : vector<1x16x32xf32> to vector<16x32xf32>
    %cst_137 = arith.constant dense<0.000000e+00> : vector<64x32xf32>
    %188 = tpu.matmul %182, %187, %cst_137 {dimension_numbers = #tpu.dot_dimension_numbers<[1], [0], [0], [1], [0, 0, 1, 1], [], []>} : vector<64x16xf32>, vector<16x32xf32>, vector<64x32xf32> -> vector<64x32xf32>
    %189 = arith.addf %178, %188 : vector<64x32xf32>
    %190 = arith.maximumf %179, %185 : vector<64x32xf32>
    %c1_138 = arith.constant 1 : index
    %c1_139 = arith.constant 1 : index
    %c1_140 = arith.constant 1 : index
    %c0_141 = arith.constant 0 : index
    %191 = vector.load %arg22[%c1_138, %c1_139, %c1_140, %c0_141] : memref<4x9x9x16xf32, #tpu.memory_space<vmem>>, vector<1x8x8x16xf32>
    %192 = vector.shape_cast %191 : vector<1x8x8x16xf32> to vector<8x8x16xf32>
    %193 = vector.shape_cast %192 : vector<8x8x16xf32> to vector<64x16xf32>
    %c1_142 = arith.constant 1 : index
    %c1_143 = arith.constant 1 : index
    %c1_144 = arith.constant 1 : index
    %c0_145 = arith.constant 0 : index
    %194 = vector.load %arg23[%c1_142, %c1_143, %c1_144, %c0_145] : memref<4x9x9x32xf32, #tpu.memory_space<vmem>>, vector<1x8x8x32xf32>
    %195 = vector.shape_cast %194 : vector<1x8x8x32xf32> to vector<8x8x32xf32>
    %196 = vector.shape_cast %195 : vector<8x8x32xf32> to vector<64x32xf32>
    %c5 = arith.constant 5 : index
    %c0_146 = arith.constant 0 : index
    %c0_147 = arith.constant 0 : index
    %197 = vector.load %arg12[%c5, %c0_146, %c0_147] : memref<9x16x32xf32, #tpu.memory_space<vmem>>, vector<1x16x32xf32>
    %198 = vector.shape_cast %197 : vector<1x16x32xf32> to vector<16x32xf32>
    %cst_148 = arith.constant dense<0.000000e+00> : vector<64x32xf32>
    %199 = tpu.matmul %193, %198, %cst_148 {dimension_numbers = #tpu.dot_dimension_numbers<[1], [0], [0], [1], [0, 0, 1, 1], [], []>} : vector<64x16xf32>, vector<16x32xf32>, vector<64x32xf32> -> vector<64x32xf32>
    %200 = arith.addf %189, %199 : vector<64x32xf32>
    %201 = arith.maximumf %190, %196 : vector<64x32xf32>
    %c3_149 = arith.constant 3 : index
    %c1_150 = arith.constant 1 : index
    %c0_151 = arith.constant 0 : index
    %c0_152 = arith.constant 0 : index
    %202 = vector.load %arg22[%c3_149, %c1_150, %c0_151, %c0_152] : memref<4x9x9x16xf32, #tpu.memory_space<vmem>>, vector<1x8x8x16xf32>
    %203 = vector.shape_cast %202 : vector<1x8x8x16xf32> to vector<8x8x16xf32>
    %204 = vector.shape_cast %203 : vector<8x8x16xf32> to vector<64x16xf32>
    %c3_153 = arith.constant 3 : index
    %c1_154 = arith.constant 1 : index
    %c0_155 = arith.constant 0 : index
    %c0_156 = arith.constant 0 : index
    %205 = vector.load %arg23[%c3_153, %c1_154, %c0_155, %c0_156] : memref<4x9x9x32xf32, #tpu.memory_space<vmem>>, vector<1x8x8x32xf32>
    %206 = vector.shape_cast %205 : vector<1x8x8x32xf32> to vector<8x8x32xf32>
    %207 = vector.shape_cast %206 : vector<8x8x32xf32> to vector<64x32xf32>
    %c6 = arith.constant 6 : index
    %c0_157 = arith.constant 0 : index
    %c0_158 = arith.constant 0 : index
    %208 = vector.load %arg12[%c6, %c0_157, %c0_158] : memref<9x16x32xf32, #tpu.memory_space<vmem>>, vector<1x16x32xf32>
    %209 = vector.shape_cast %208 : vector<1x16x32xf32> to vector<16x32xf32>
    %cst_159 = arith.constant dense<0.000000e+00> : vector<64x32xf32>
    %210 = tpu.matmul %204, %209, %cst_159 {dimension_numbers = #tpu.dot_dimension_numbers<[1], [0], [0], [1], [0, 0, 1, 1], [], []>} : vector<64x16xf32>, vector<16x32xf32>, vector<64x32xf32> -> vector<64x32xf32>
    %211 = arith.addf %200, %210 : vector<64x32xf32>
    %212 = arith.maximumf %201, %207 : vector<64x32xf32>
    %c2_160 = arith.constant 2 : index
    %c1_161 = arith.constant 1 : index
    %c1_162 = arith.constant 1 : index
    %c0_163 = arith.constant 0 : index
    %213 = vector.load %arg22[%c2_160, %c1_161, %c1_162, %c0_163] : memref<4x9x9x16xf32, #tpu.memory_space<vmem>>, vector<1x8x8x16xf32>
    %214 = vector.shape_cast %213 : vector<1x8x8x16xf32> to vector<8x8x16xf32>
    %215 = vector.shape_cast %214 : vector<8x8x16xf32> to vector<64x16xf32>
    %c2_164 = arith.constant 2 : index
    %c1_165 = arith.constant 1 : index
    %c1_166 = arith.constant 1 : index
    %c0_167 = arith.constant 0 : index
    %216 = vector.load %arg23[%c2_164, %c1_165, %c1_166, %c0_167] : memref<4x9x9x32xf32, #tpu.memory_space<vmem>>, vector<1x8x8x32xf32>
    %217 = vector.shape_cast %216 : vector<1x8x8x32xf32> to vector<8x8x32xf32>
    %218 = vector.shape_cast %217 : vector<8x8x32xf32> to vector<64x32xf32>
    %c7 = arith.constant 7 : index
    %c0_168 = arith.constant 0 : index
    %c0_169 = arith.constant 0 : index
    %219 = vector.load %arg12[%c7, %c0_168, %c0_169] : memref<9x16x32xf32, #tpu.memory_space<vmem>>, vector<1x16x32xf32>
    %220 = vector.shape_cast %219 : vector<1x16x32xf32> to vector<16x32xf32>
    %cst_170 = arith.constant dense<0.000000e+00> : vector<64x32xf32>
    %221 = tpu.matmul %215, %220, %cst_170 {dimension_numbers = #tpu.dot_dimension_numbers<[1], [0], [0], [1], [0, 0, 1, 1], [], []>} : vector<64x16xf32>, vector<16x32xf32>, vector<64x32xf32> -> vector<64x32xf32>
    %222 = arith.addf %211, %221 : vector<64x32xf32>
    %223 = arith.maximumf %212, %218 : vector<64x32xf32>
    %c3_171 = arith.constant 3 : index
    %c1_172 = arith.constant 1 : index
    %c1_173 = arith.constant 1 : index
    %c0_174 = arith.constant 0 : index
    %224 = vector.load %arg22[%c3_171, %c1_172, %c1_173, %c0_174] : memref<4x9x9x16xf32, #tpu.memory_space<vmem>>, vector<1x8x8x16xf32>
    %225 = vector.shape_cast %224 : vector<1x8x8x16xf32> to vector<8x8x16xf32>
    %226 = vector.shape_cast %225 : vector<8x8x16xf32> to vector<64x16xf32>
    %c3_175 = arith.constant 3 : index
    %c1_176 = arith.constant 1 : index
    %c1_177 = arith.constant 1 : index
    %c0_178 = arith.constant 0 : index
    %227 = vector.load %arg23[%c3_175, %c1_176, %c1_177, %c0_178] : memref<4x9x9x32xf32, #tpu.memory_space<vmem>>, vector<1x8x8x32xf32>
    %228 = vector.shape_cast %227 : vector<1x8x8x32xf32> to vector<8x8x32xf32>
    %229 = vector.shape_cast %228 : vector<8x8x32xf32> to vector<64x32xf32>
    %c8 = arith.constant 8 : index
    %c0_179 = arith.constant 0 : index
    %c0_180 = arith.constant 0 : index
    %230 = vector.load %arg12[%c8, %c0_179, %c0_180] : memref<9x16x32xf32, #tpu.memory_space<vmem>>, vector<1x16x32xf32>
    %231 = vector.shape_cast %230 : vector<1x16x32xf32> to vector<16x32xf32>
    %cst_181 = arith.constant dense<0.000000e+00> : vector<64x32xf32>
    %232 = tpu.matmul %226, %231, %cst_181 {dimension_numbers = #tpu.dot_dimension_numbers<[1], [0], [0], [1], [0, 0, 1, 1], [], []>} : vector<64x16xf32>, vector<16x32xf32>, vector<64x32xf32> -> vector<64x32xf32>
    %233 = arith.addf %222, %232 : vector<64x32xf32>
    %234 = arith.maximumf %223, %229 : vector<64x32xf32>
    %c0_182 = arith.constant 0 : index
    %c0_183 = arith.constant 0 : index
    %235 = vector.load %arg13[%c0_182, %c0_183] : memref<1x32xf32, #tpu.memory_space<vmem>>, vector<1x32xf32>
    %236 = vector.broadcast %235 : vector<1x32xf32> to vector<64x32xf32>
    %237 = arith.addf %233, %236 : vector<64x32xf32>
    %cst_184 = arith.constant 0.000000e+00 : f32
    %238 = vector.broadcast %cst_184 : f32 to vector<10x10x32xf32>
    %c0_185 = arith.constant 0 : index
    %c0_186 = arith.constant 0 : index
    %c0_187 = arith.constant 0 : index
    %239 = vector.load %arg24[%c0_185, %c0_186, %c0_187] : memref<10x10x32xf32, #tpu.memory_space<vmem>>, vector<10x10x32xf32>
    tpu.vector_store %arg24[%c0_185, %c0_186, %c0_187], %238 {strides = array<i32>} : memref<10x10x32xf32, #tpu.memory_space<vmem>>, vector<10x10x32xf32>,
    %cst_188 = arith.constant 0.000000e+00 : f32
    %240 = vector.broadcast %cst_188 : f32 to vector<10x10x32xf32>
    %c0_189 = arith.constant 0 : index
    %c0_190 = arith.constant 0 : index
    %c0_191 = arith.constant 0 : index
    %241 = vector.load %arg25[%c0_189, %c0_190, %c0_191] : memref<10x10x32xf32, #tpu.memory_space<vmem>>, vector<10x10x32xf32>
    tpu.vector_store %arg25[%c0_189, %c0_190, %c0_191], %240 {strides = array<i32>} : memref<10x10x32xf32, #tpu.memory_space<vmem>>, vector<10x10x32xf32>,
    %242 = vector.shape_cast %237 : vector<64x32xf32> to vector<8x8x32xf32>
    %c1_192 = arith.constant 1 : index
    %c1_193 = arith.constant 1 : index
    %c0_194 = arith.constant 0 : index
    %243 = vector.load %arg24[%c1_192, %c1_193, %c0_194] : memref<10x10x32xf32, #tpu.memory_space<vmem>>, vector<8x8x32xf32>
    tpu.vector_store %arg24[%c1_192, %c1_193, %c0_194], %242 {strides = array<i32>} : memref<10x10x32xf32, #tpu.memory_space<vmem>>, vector<8x8x32xf32>,
    %244 = vector.shape_cast %234 : vector<64x32xf32> to vector<8x8x32xf32>
    %c1_195 = arith.constant 1 : index
    %c1_196 = arith.constant 1 : index
    %c0_197 = arith.constant 0 : index
    %245 = vector.load %arg25[%c1_195, %c1_196, %c0_197] : memref<10x10x32xf32, #tpu.memory_space<vmem>>, vector<8x8x32xf32>
    tpu.vector_store %arg25[%c1_195, %c1_196, %c0_197], %244 {strides = array<i32>} : memref<10x10x32xf32, #tpu.memory_space<vmem>>, vector<8x8x32xf32>,
    %cst_198 = arith.constant 0.000000e+00 : f32
    %246 = vector.broadcast %cst_198 : f32 to vector<64x64xf32>
    %c0_199 = arith.constant 0 : index
    %c0_200 = arith.constant 0 : index
    %c0_201 = arith.constant 0 : index
    %247 = vector.load %arg24[%c0_199, %c0_200, %c0_201] : memref<10x10x32xf32, #tpu.memory_space<vmem>>, vector<8x8x32xf32>
    %248 = vector.shape_cast %247 : vector<8x8x32xf32> to vector<64x32xf32>
    %c0_202 = arith.constant 0 : index
    %c0_203 = arith.constant 0 : index
    %c0_204 = arith.constant 0 : index
    %249 = vector.load %arg25[%c0_202, %c0_203, %c0_204] : memref<10x10x32xf32, #tpu.memory_space<vmem>>, vector<8x8x32xf32>
    %250 = vector.shape_cast %249 : vector<8x8x32xf32> to vector<64x32xf32>
    %c0_205 = arith.constant 0 : index
    %c0_206 = arith.constant 0 : index
    %c0_207 = arith.constant 0 : index
    %251 = vector.load %arg14[%c0_205, %c0_206, %c0_207] : memref<9x32x64xf32, #tpu.memory_space<vmem>>, vector<1x32x64xf32>
    %252 = vector.shape_cast %251 : vector<1x32x64xf32> to vector<32x64xf32>
    %cst_208 = arith.constant dense<0.000000e+00> : vector<64x64xf32>
    %253 = tpu.matmul %248, %252, %cst_208 {dimension_numbers = #tpu.dot_dimension_numbers<[1], [0], [0], [1], [0, 0, 1, 1], [], []>} : vector<64x32xf32>, vector<32x64xf32>, vector<64x64xf32> -> vector<64x64xf32>
    %254 = arith.addf %246, %253 : vector<64x64xf32>
    %c0_209 = arith.constant 0 : index
    %c0_210 = arith.constant 0 : index
    %c0_211 = arith.constant 0 : index
    %255 = vector.load %arg15[%c0_209, %c0_210, %c0_211] : memref<9x32x64xf32, #tpu.memory_space<vmem>>, vector<1x32x64xf32>
    %256 = vector.shape_cast %255 : vector<1x32x64xf32> to vector<32x64xf32>
    %cst_212 = arith.constant dense<0.000000e+00> : vector<64x64xf32>
    %257 = tpu.matmul %250, %256, %cst_212 {dimension_numbers = #tpu.dot_dimension_numbers<[1], [0], [0], [1], [0, 0, 1, 1], [], []>} : vector<64x32xf32>, vector<32x64xf32>, vector<64x64xf32> -> vector<64x64xf32>
    %258 = arith.addf %254, %257 : vector<64x64xf32>
    %c0_213 = arith.constant 0 : index
    %c1_214 = arith.constant 1 : index
    %c0_215 = arith.constant 0 : index
    %259 = vector.load %arg24[%c0_213, %c1_214, %c0_215] : memref<10x10x32xf32, #tpu.memory_space<vmem>>, vector<8x8x32xf32>
    %260 = vector.shape_cast %259 : vector<8x8x32xf32> to vector<64x32xf32>
    %c0_216 = arith.constant 0 : index
    %c1_217 = arith.constant 1 : index
    %c0_218 = arith.constant 0 : index
    %261 = vector.load %arg25[%c0_216, %c1_217, %c0_218] : memref<10x10x32xf32, #tpu.memory_space<vmem>>, vector<8x8x32xf32>
    %262 = vector.shape_cast %261 : vector<8x8x32xf32> to vector<64x32xf32>
    %c1_219 = arith.constant 1 : index
    %c0_220 = arith.constant 0 : index
    %c0_221 = arith.constant 0 : index
    %263 = vector.load %arg14[%c1_219, %c0_220, %c0_221] : memref<9x32x64xf32, #tpu.memory_space<vmem>>, vector<1x32x64xf32>
    %264 = vector.shape_cast %263 : vector<1x32x64xf32> to vector<32x64xf32>
    %cst_222 = arith.constant dense<0.000000e+00> : vector<64x64xf32>
    %265 = tpu.matmul %260, %264, %cst_222 {dimension_numbers = #tpu.dot_dimension_numbers<[1], [0], [0], [1], [0, 0, 1, 1], [], []>} : vector<64x32xf32>, vector<32x64xf32>, vector<64x64xf32> -> vector<64x64xf32>
    %266 = arith.addf %258, %265 : vector<64x64xf32>
    %c1_223 = arith.constant 1 : index
    %c0_224 = arith.constant 0 : index
    %c0_225 = arith.constant 0 : index
    %267 = vector.load %arg15[%c1_223, %c0_224, %c0_225] : memref<9x32x64xf32, #tpu.memory_space<vmem>>, vector<1x32x64xf32>
    %268 = vector.shape_cast %267 : vector<1x32x64xf32> to vector<32x64xf32>
    %cst_226 = arith.constant dense<0.000000e+00> : vector<64x64xf32>
    %269 = tpu.matmul %262, %268, %cst_226 {dimension_numbers = #tpu.dot_dimension_numbers<[1], [0], [0], [1], [0, 0, 1, 1], [], []>} : vector<64x32xf32>, vector<32x64xf32>, vector<64x64xf32> -> vector<64x64xf32>
    %270 = arith.addf %266, %269 : vector<64x64xf32>
    %c0_227 = arith.constant 0 : index
    %c2_228 = arith.constant 2 : index
    %c0_229 = arith.constant 0 : index
    %271 = vector.load %arg24[%c0_227, %c2_228, %c0_229] : memref<10x10x32xf32, #tpu.memory_space<vmem>>, vector<8x8x32xf32>
    %272 = vector.shape_cast %271 : vector<8x8x32xf32> to vector<64x32xf32>
    %c0_230 = arith.constant 0 : index
    %c2_231 = arith.constant 2 : index
    %c0_232 = arith.constant 0 : index
    %273 = vector.load %arg25[%c0_230, %c2_231, %c0_232] : memref<10x10x32xf32, #tpu.memory_space<vmem>>, vector<8x8x32xf32>
    %274 = vector.shape_cast %273 : vector<8x8x32xf32> to vector<64x32xf32>
    %c2_233 = arith.constant 2 : index
    %c0_234 = arith.constant 0 : index
    %c0_235 = arith.constant 0 : index
    %275 = vector.load %arg14[%c2_233, %c0_234, %c0_235] : memref<9x32x64xf32, #tpu.memory_space<vmem>>, vector<1x32x64xf32>
    %276 = vector.shape_cast %275 : vector<1x32x64xf32> to vector<32x64xf32>
    %cst_236 = arith.constant dense<0.000000e+00> : vector<64x64xf32>
    %277 = tpu.matmul %272, %276, %cst_236 {dimension_numbers = #tpu.dot_dimension_numbers<[1], [0], [0], [1], [0, 0, 1, 1], [], []>} : vector<64x32xf32>, vector<32x64xf32>, vector<64x64xf32> -> vector<64x64xf32>
    %278 = arith.addf %270, %277 : vector<64x64xf32>
    %c2_237 = arith.constant 2 : index
    %c0_238 = arith.constant 0 : index
    %c0_239 = arith.constant 0 : index
    %279 = vector.load %arg15[%c2_237, %c0_238, %c0_239] : memref<9x32x64xf32, #tpu.memory_space<vmem>>, vector<1x32x64xf32>
    %280 = vector.shape_cast %279 : vector<1x32x64xf32> to vector<32x64xf32>
    %cst_240 = arith.constant dense<0.000000e+00> : vector<64x64xf32>
    %281 = tpu.matmul %274, %280, %cst_240 {dimension_numbers = #tpu.dot_dimension_numbers<[1], [0], [0], [1], [0, 0, 1, 1], [], []>} : vector<64x32xf32>, vector<32x64xf32>, vector<64x64xf32> -> vector<64x64xf32>
    %282 = arith.addf %278, %281 : vector<64x64xf32>
    %c1_241 = arith.constant 1 : index
    %c0_242 = arith.constant 0 : index
    %c0_243 = arith.constant 0 : index
    %283 = vector.load %arg24[%c1_241, %c0_242, %c0_243] : memref<10x10x32xf32, #tpu.memory_space<vmem>>, vector<8x8x32xf32>
    %284 = vector.shape_cast %283 : vector<8x8x32xf32> to vector<64x32xf32>
    %c1_244 = arith.constant 1 : index
    %c0_245 = arith.constant 0 : index
    %c0_246 = arith.constant 0 : index
    %285 = vector.load %arg25[%c1_244, %c0_245, %c0_246] : memref<10x10x32xf32, #tpu.memory_space<vmem>>, vector<8x8x32xf32>
    %286 = vector.shape_cast %285 : vector<8x8x32xf32> to vector<64x32xf32>
    %c3_247 = arith.constant 3 : index
    %c0_248 = arith.constant 0 : index
    %c0_249 = arith.constant 0 : index
    %287 = vector.load %arg14[%c3_247, %c0_248, %c0_249] : memref<9x32x64xf32, #tpu.memory_space<vmem>>, vector<1x32x64xf32>
    %288 = vector.shape_cast %287 : vector<1x32x64xf32> to vector<32x64xf32>
    %cst_250 = arith.constant dense<0.000000e+00> : vector<64x64xf32>
    %289 = tpu.matmul %284, %288, %cst_250 {dimension_numbers = #tpu.dot_dimension_numbers<[1], [0], [0], [1], [0, 0, 1, 1], [], []>} : vector<64x32xf32>, vector<32x64xf32>, vector<64x64xf32> -> vector<64x64xf32>
    %290 = arith.addf %282, %289 : vector<64x64xf32>
    %c3_251 = arith.constant 3 : index
    %c0_252 = arith.constant 0 : index
    %c0_253 = arith.constant 0 : index
    %291 = vector.load %arg15[%c3_251, %c0_252, %c0_253] : memref<9x32x64xf32, #tpu.memory_space<vmem>>, vector<1x32x64xf32>
    %292 = vector.shape_cast %291 : vector<1x32x64xf32> to vector<32x64xf32>
    %cst_254 = arith.constant dense<0.000000e+00> : vector<64x64xf32>
    %293 = tpu.matmul %286, %292, %cst_254 {dimension_numbers = #tpu.dot_dimension_numbers<[1], [0], [0], [1], [0, 0, 1, 1], [], []>} : vector<64x32xf32>, vector<32x64xf32>, vector<64x64xf32> -> vector<64x64xf32>
    %294 = arith.addf %290, %293 : vector<64x64xf32>
    %c1_255 = arith.constant 1 : index
    %c1_256 = arith.constant 1 : index
    %c0_257 = arith.constant 0 : index
    %295 = vector.load %arg24[%c1_255, %c1_256, %c0_257] : memref<10x10x32xf32, #tpu.memory_space<vmem>>, vector<8x8x32xf32>
    %296 = vector.shape_cast %295 : vector<8x8x32xf32> to vector<64x32xf32>
    %c1_258 = arith.constant 1 : index
    %c1_259 = arith.constant 1 : index
    %c0_260 = arith.constant 0 : index
    %297 = vector.load %arg25[%c1_258, %c1_259, %c0_260] : memref<10x10x32xf32, #tpu.memory_space<vmem>>, vector<8x8x32xf32>
    %298 = vector.shape_cast %297 : vector<8x8x32xf32> to vector<64x32xf32>
    %c4_261 = arith.constant 4 : index
    %c0_262 = arith.constant 0 : index
    %c0_263 = arith.constant 0 : index
    %299 = vector.load %arg14[%c4_261, %c0_262, %c0_263] : memref<9x32x64xf32, #tpu.memory_space<vmem>>, vector<1x32x64xf32>
    %300 = vector.shape_cast %299 : vector<1x32x64xf32> to vector<32x64xf32>
    %cst_264 = arith.constant dense<0.000000e+00> : vector<64x64xf32>
    %301 = tpu.matmul %296, %300, %cst_264 {dimension_numbers = #tpu.dot_dimension_numbers<[1], [0], [0], [1], [0, 0, 1, 1], [], []>} : vector<64x32xf32>, vector<32x64xf32>, vector<64x64xf32> -> vector<64x64xf32>
    %302 = arith.addf %294, %301 : vector<64x64xf32>
    %c4_265 = arith.constant 4 : index
    %c0_266 = arith.constant 0 : index
    %c0_267 = arith.constant 0 : index
    %303 = vector.load %arg15[%c4_265, %c0_266, %c0_267] : memref<9x32x64xf32, #tpu.memory_space<vmem>>, vector<1x32x64xf32>
    %304 = vector.shape_cast %303 : vector<1x32x64xf32> to vector<32x64xf32>
    %cst_268 = arith.constant dense<0.000000e+00> : vector<64x64xf32>
    %305 = tpu.matmul %298, %304, %cst_268 {dimension_numbers = #tpu.dot_dimension_numbers<[1], [0], [0], [1], [0, 0, 1, 1], [], []>} : vector<64x32xf32>, vector<32x64xf32>, vector<64x64xf32> -> vector<64x64xf32>
    %306 = arith.addf %302, %305 : vector<64x64xf32>
    %c1_269 = arith.constant 1 : index
    %c2_270 = arith.constant 2 : index
    %c0_271 = arith.constant 0 : index
    %307 = vector.load %arg24[%c1_269, %c2_270, %c0_271] : memref<10x10x32xf32, #tpu.memory_space<vmem>>, vector<8x8x32xf32>
    %308 = vector.shape_cast %307 : vector<8x8x32xf32> to vector<64x32xf32>
    %c1_272 = arith.constant 1 : index
    %c2_273 = arith.constant 2 : index
    %c0_274 = arith.constant 0 : index
    %309 = vector.load %arg25[%c1_272, %c2_273, %c0_274] : memref<10x10x32xf32, #tpu.memory_space<vmem>>, vector<8x8x32xf32>
    %310 = vector.shape_cast %309 : vector<8x8x32xf32> to vector<64x32xf32>
    %c5_275 = arith.constant 5 : index
    %c0_276 = arith.constant 0 : index
    %c0_277 = arith.constant 0 : index
    %311 = vector.load %arg14[%c5_275, %c0_276, %c0_277] : memref<9x32x64xf32, #tpu.memory_space<vmem>>, vector<1x32x64xf32>
    %312 = vector.shape_cast %311 : vector<1x32x64xf32> to vector<32x64xf32>
    %cst_278 = arith.constant dense<0.000000e+00> : vector<64x64xf32>
    %313 = tpu.matmul %308, %312, %cst_278 {dimension_numbers = #tpu.dot_dimension_numbers<[1], [0], [0], [1], [0, 0, 1, 1], [], []>} : vector<64x32xf32>, vector<32x64xf32>, vector<64x64xf32> -> vector<64x64xf32>
    %314 = arith.addf %306, %313 : vector<64x64xf32>
    %c5_279 = arith.constant 5 : index
    %c0_280 = arith.constant 0 : index
    %c0_281 = arith.constant 0 : index
    %315 = vector.load %arg15[%c5_279, %c0_280, %c0_281] : memref<9x32x64xf32, #tpu.memory_space<vmem>>, vector<1x32x64xf32>
    %316 = vector.shape_cast %315 : vector<1x32x64xf32> to vector<32x64xf32>
    %cst_282 = arith.constant dense<0.000000e+00> : vector<64x64xf32>
    %317 = tpu.matmul %310, %316, %cst_282 {dimension_numbers = #tpu.dot_dimension_numbers<[1], [0], [0], [1], [0, 0, 1, 1], [], []>} : vector<64x32xf32>, vector<32x64xf32>, vector<64x64xf32> -> vector<64x64xf32>
    %318 = arith.addf %314, %317 : vector<64x64xf32>
    %c2_283 = arith.constant 2 : index
    %c0_284 = arith.constant 0 : index
    %c0_285 = arith.constant 0 : index
    %319 = vector.load %arg24[%c2_283, %c0_284, %c0_285] : memref<10x10x32xf32, #tpu.memory_space<vmem>>, vector<8x8x32xf32>
    %320 = vector.shape_cast %319 : vector<8x8x32xf32> to vector<64x32xf32>
    %c2_286 = arith.constant 2 : index
    %c0_287 = arith.constant 0 : index
    %c0_288 = arith.constant 0 : index
    %321 = vector.load %arg25[%c2_286, %c0_287, %c0_288] : memref<10x10x32xf32, #tpu.memory_space<vmem>>, vector<8x8x32xf32>
    %322 = vector.shape_cast %321 : vector<8x8x32xf32> to vector<64x32xf32>
    %c6_289 = arith.constant 6 : index
    %c0_290 = arith.constant 0 : index
    %c0_291 = arith.constant 0 : index
    %323 = vector.load %arg14[%c6_289, %c0_290, %c0_291] : memref<9x32x64xf32, #tpu.memory_space<vmem>>, vector<1x32x64xf32>
    %324 = vector.shape_cast %323 : vector<1x32x64xf32> to vector<32x64xf32>
    %cst_292 = arith.constant dense<0.000000e+00> : vector<64x64xf32>
    %325 = tpu.matmul %320, %324, %cst_292 {dimension_numbers = #tpu.dot_dimension_numbers<[1], [0], [0], [1], [0, 0, 1, 1], [], []>} : vector<64x32xf32>, vector<32x64xf32>, vector<64x64xf32> -> vector<64x64xf32>
    %326 = arith.addf %318, %325 : vector<64x64xf32>
    %c6_293 = arith.constant 6 : index
    %c0_294 = arith.constant 0 : index
    %c0_295 = arith.constant 0 : index
    %327 = vector.load %arg15[%c6_293, %c0_294, %c0_295] : memref<9x32x64xf32, #tpu.memory_space<vmem>>, vector<1x32x64xf32>
    %328 = vector.shape_cast %327 : vector<1x32x64xf32> to vector<32x64xf32>
    %cst_296 = arith.constant dense<0.000000e+00> : vector<64x64xf32>
    %329 = tpu.matmul %322, %328, %cst_296 {dimension_numbers = #tpu.dot_dimension_numbers<[1], [0], [0], [1], [0, 0, 1, 1], [], []>} : vector<64x32xf32>, vector<32x64xf32>, vector<64x64xf32> -> vector<64x64xf32>
    %330 = arith.addf %326, %329 : vector<64x64xf32>
    %c2_297 = arith.constant 2 : index
    %c1_298 = arith.constant 1 : index
    %c0_299 = arith.constant 0 : index
    %331 = vector.load %arg24[%c2_297, %c1_298, %c0_299] : memref<10x10x32xf32, #tpu.memory_space<vmem>>, vector<8x8x32xf32>
    %332 = vector.shape_cast %331 : vector<8x8x32xf32> to vector<64x32xf32>
    %c2_300 = arith.constant 2 : index
    %c1_301 = arith.constant 1 : index
    %c0_302 = arith.constant 0 : index
    %333 = vector.load %arg25[%c2_300, %c1_301, %c0_302] : memref<10x10x32xf32, #tpu.memory_space<vmem>>, vector<8x8x32xf32>
    %334 = vector.shape_cast %333 : vector<8x8x32xf32> to vector<64x32xf32>
    %c7_303 = arith.constant 7 : index
    %c0_304 = arith.constant 0 : index
    %c0_305 = arith.constant 0 : index
    %335 = vector.load %arg14[%c7_303, %c0_304, %c0_305] : memref<9x32x64xf32, #tpu.memory_space<vmem>>, vector<1x32x64xf32>
    %336 = vector.shape_cast %335 : vector<1x32x64xf32> to vector<32x64xf32>
    %cst_306 = arith.constant dense<0.000000e+00> : vector<64x64xf32>
    %337 = tpu.matmul %332, %336, %cst_306 {dimension_numbers = #tpu.dot_dimension_numbers<[1], [0], [0], [1], [0, 0, 1, 1], [], []>} : vector<64x32xf32>, vector<32x64xf32>, vector<64x64xf32> -> vector<64x64xf32>
    %338 = arith.addf %330, %337 : vector<64x64xf32>
    %c7_307 = arith.constant 7 : index
    %c0_308 = arith.constant 0 : index
    %c0_309 = arith.constant 0 : index
    %339 = vector.load %arg15[%c7_307, %c0_308, %c0_309] : memref<9x32x64xf32, #tpu.memory_space<vmem>>, vector<1x32x64xf32>
    %340 = vector.shape_cast %339 : vector<1x32x64xf32> to vector<32x64xf32>
    %cst_310 = arith.constant dense<0.000000e+00> : vector<64x64xf32>
    %341 = tpu.matmul %334, %340, %cst_310 {dimension_numbers = #tpu.dot_dimension_numbers<[1], [0], [0], [1], [0, 0, 1, 1], [], []>} : vector<64x32xf32>, vector<32x64xf32>, vector<64x64xf32> -> vector<64x64xf32>
    %342 = arith.addf %338, %341 : vector<64x64xf32>
    %c2_311 = arith.constant 2 : index
    %c2_312 = arith.constant 2 : index
    %c0_313 = arith.constant 0 : index
    %343 = vector.load %arg24[%c2_311, %c2_312, %c0_313] : memref<10x10x32xf32, #tpu.memory_space<vmem>>, vector<8x8x32xf32>
    %344 = vector.shape_cast %343 : vector<8x8x32xf32> to vector<64x32xf32>
    %c2_314 = arith.constant 2 : index
    %c2_315 = arith.constant 2 : index
    %c0_316 = arith.constant 0 : index
    %345 = vector.load %arg25[%c2_314, %c2_315, %c0_316] : memref<10x10x32xf32, #tpu.memory_space<vmem>>, vector<8x8x32xf32>
    %346 = vector.shape_cast %345 : vector<8x8x32xf32> to vector<64x32xf32>
    %c8_317 = arith.constant 8 : index
    %c0_318 = arith.constant 0 : index
    %c0_319 = arith.constant 0 : index
    %347 = vector.load %arg14[%c8_317, %c0_318, %c0_319] : memref<9x32x64xf32, #tpu.memory_space<vmem>>, vector<1x32x64xf32>
    %348 = vector.shape_cast %347 : vector<1x32x64xf32> to vector<32x64xf32>
    %cst_320 = arith.constant dense<0.000000e+00> : vector<64x64xf32>
    %349 = tpu.matmul %344, %348, %cst_320 {dimension_numbers = #tpu.dot_dimension_numbers<[1], [0], [0], [1], [0, 0, 1, 1], [], []>} : vector<64x32xf32>, vector<32x64xf32>, vector<64x64xf32> -> vector<64x64xf32>
    %350 = arith.addf %342, %349 : vector<64x64xf32>
    %c8_321 = arith.constant 8 : index
    %c0_322 = arith.constant 0 : index
    %c0_323 = arith.constant 0 : index
    %351 = vector.load %arg15[%c8_321, %c0_322, %c0_323] : memref<9x32x64xf32, #tpu.memory_space<vmem>>, vector<1x32x64xf32>
    %352 = vector.shape_cast %351 : vector<1x32x64xf32> to vector<32x64xf32>
    %cst_324 = arith.constant dense<0.000000e+00> : vector<64x64xf32>
    %353 = tpu.matmul %346, %352, %cst_324 {dimension_numbers = #tpu.dot_dimension_numbers<[1], [0], [0], [1], [0, 0, 1, 1], [], []>} : vector<64x32xf32>, vector<32x64xf32>, vector<64x64xf32> -> vector<64x64xf32>
    %354 = arith.addf %350, %353 : vector<64x64xf32>
    %c0_325 = arith.constant 0 : index
    %c0_326 = arith.constant 0 : index
    %355 = vector.load %arg16[%c0_325, %c0_326] : memref<1x64xf32, #tpu.memory_space<vmem>>, vector<1x64xf32>
    %356 = vector.broadcast %355 : vector<1x64xf32> to vector<64x64xf32>
    %357 = arith.addf %354, %356 : vector<64x64xf32>
    %c0_327 = arith.constant 0 : index
    %c0_328 = arith.constant 0 : index
    %358 = vector.load %arg17[%c0_327, %c0_328] : memref<1x64xf32, #tpu.memory_space<vmem>>, vector<1x64xf32>
    %c0_329 = arith.constant 0 : index
    %c0_330 = arith.constant 0 : index
    %359 = vector.load %arg18[%c0_329, %c0_330] : memref<1x64xf32, #tpu.memory_space<vmem>>, vector<1x64xf32>
    %c0_331 = arith.constant 0 : index
    %c0_332 = arith.constant 0 : index
    %360 = vector.load %arg19[%c0_331, %c0_332] : memref<64x16xf32, #tpu.memory_space<vmem>>, vector<64x16xf32>
    %c0_333 = arith.constant 0 : index
    %c0_334 = arith.constant 0 : index
    %361 = vector.load %arg20[%c0_333, %c0_334] : memref<16x64xf32, #tpu.memory_space<vmem>>, vector<16x64xf32>
    %cst_335 = arith.constant dense<0.000000e+00> : vector<64xf32>
    %362 = vector.multi_reduction <add>, %357, %cst_335 [0] : vector<64x64xf32> to vector<64xf32>
    %363 = vector.shape_cast %362 : vector<64xf32> to vector<1x64xf32>
    %364 = arith.mulf %357, %357 : vector<64x64xf32>
    %cst_336 = arith.constant dense<0.000000e+00> : vector<64xf32>
    %365 = vector.multi_reduction <add>, %364, %cst_336 [0] : vector<64x64xf32> to vector<64xf32>
    %366 = vector.shape_cast %365 : vector<64xf32> to vector<1x64xf32>
    %367 = tpu.iota {dimensions = array<i32: 0>} : vector<2x64xi32>
    %c0_i32_337 = arith.constant 0 : i32
    %368 = vector.broadcast %c0_i32_337 : i32 to vector<2x64xi32>
    %369 = arith.cmpi eq, %367, %368 : vector<2x64xi32>
    %370 = vector.shape_cast %363 : vector<1x64xf32> to vector<1x64xf32>
    %371 = vector.broadcast %370 : vector<1x64xf32> to vector<2x64xf32>
    %372 = vector.shape_cast %366 : vector<1x64xf32> to vector<1x64xf32>
    %373 = vector.broadcast %372 : vector<1x64xf32> to vector<2x64xf32>
    %374 = arith.select %369, %371, %373 : vector<2x64xi1>, vector<2x64xf32>
    %cst_338 = arith.constant dense<0.000000e+00> : vector<2x16xf32>
    %375 = tpu.matmul %374, %360, %cst_338 {dimension_numbers = #tpu.dot_dimension_numbers<[1], [0], [0], [1], [0, 0, 1, 1], [], []>} : vector<2x64xf32>, vector<64x16xf32>, vector<2x16xf32> -> vector<2x16xf32>
    %cst_339 = arith.constant 2.560000e+02 : f32
    %376 = vector.broadcast %cst_339 : f32 to vector<2x16xf32>
    %377 = arith.divf %375, %376 : vector<2x16xf32>
    %378 = vector.extract_strided_slice %377 {offsets = [0, 0], sizes = [1, 16], strides = [1, 1]} : vector<2x16xf32> to vector<1x16xf32>
    %379 = vector.extract_strided_slice %377 {offsets = [1, 0], sizes = [1, 16], strides = [1, 1]} : vector<2x16xf32> to vector<1x16xf32>
    %380 = arith.mulf %378, %378 : vector<1x16xf32>
    %381 = arith.subf %379, %380 : vector<1x16xf32>
    %382 = tpu.iota {dimensions = array<i32: 0>} : vector<2x16xi32>
    %c0_i32_340 = arith.constant 0 : i32
    %383 = vector.broadcast %c0_i32_340 : i32 to vector<2x16xi32>
    %384 = arith.cmpi eq, %382, %383 : vector<2x16xi32>
    %385 = vector.shape_cast %378 : vector<1x16xf32> to vector<1x16xf32>
    %386 = vector.broadcast %385 : vector<1x16xf32> to vector<2x16xf32>
    %387 = vector.shape_cast %381 : vector<1x16xf32> to vector<1x16xf32>
    %388 = vector.broadcast %387 : vector<1x16xf32> to vector<2x16xf32>
    %389 = arith.select %384, %386, %388 : vector<2x16xi1>, vector<2x16xf32>
    %cst_341 = arith.constant dense<0.000000e+00> : vector<2x64xf32>
    %390 = tpu.matmul %389, %361, %cst_341 {dimension_numbers = #tpu.dot_dimension_numbers<[1], [0], [0], [1], [0, 0, 1, 1], [], []>} : vector<2x16xf32>, vector<16x64xf32>, vector<2x64xf32> -> vector<2x64xf32>
    %391 = vector.extract_strided_slice %390 {offsets = [1, 0], sizes = [1, 64], strides = [1, 1]} : vector<2x64xf32> to vector<1x64xf32>
    %cst_342 = arith.constant 9.99999974E-6 : f32
    %392 = vector.broadcast %cst_342 : f32 to vector<1x64xf32>
    %393 = arith.addf %391, %392 : vector<1x64xf32>
    %394 = math.rsqrt %393 : vector<1x64xf32>
    %395 = arith.mulf %394, %358 : vector<1x64xf32>
    %396 = vector.extract_strided_slice %390 {offsets = [0, 0], sizes = [1, 64], strides = [1, 1]} : vector<2x64xf32> to vector<1x64xf32>
    %397 = arith.mulf %396, %395 : vector<1x64xf32>
    %398 = arith.subf %359, %397 : vector<1x64xf32>
    %399 = vector.broadcast %395 : vector<1x64xf32> to vector<64x64xf32>
    %400 = arith.mulf %357, %399 : vector<64x64xf32>
    %401 = vector.broadcast %398 : vector<1x64xf32> to vector<64x64xf32>
    %402 = arith.addf %400, %401 : vector<64x64xf32>
    %cst_343 = arith.constant 0.000000e+00 : f32
    %403 = vector.broadcast %cst_343 : f32 to vector<64x64xf32>
    %404 = arith.cmpf ogt, %402, %403 : vector<64x64xf32>
    %cst_344 = arith.constant 0.000000e+00 : f32
    %405 = vector.broadcast %cst_344 : f32 to vector<64x64xf32>
    %406 = arith.minimumf %402, %405 : vector<64x64xf32>
    %407 = math.exp %406 : vector<64x64xf32>
    %cst_345 = arith.constant 1.000000e+00 : f32
    %408 = vector.broadcast %cst_345 : f32 to vector<64x64xf32>
    %409 = arith.subf %407, %408 : vector<64x64xf32>
    %410 = arith.select %404, %402, %409 : vector<64x64xi1>, vector<64x64xf32>
    %c0_346 = arith.constant 0 : index
    %c0_347 = arith.constant 0 : index
    %c0_348 = arith.constant 0 : index
    %411 = vector.load %arg21[%c0_346, %c0_347, %c0_348] : memref<1x64x64xf32, #tpu.memory_space<vmem>>, vector<1x64x64xf32>
    %412 = vector.shape_cast %411 : vector<1x64x64xf32> to vector<64x64xf32>
    %413 = vector.shape_cast %410 : vector<64x64xf32> to vector<1x64x64xf32>
    tpu.vector_store %arg21[%c0_346, %c0_347, %c0_348], %413 {strides = array<i32>} : memref<1x64x64xf32, #tpu.memory_space<vmem>>, vector<1x64x64xf32>,
    return
  }
  func.func @transform_0(%arg0: i32) -> (i32, i32, i32) {
    %c0_i32 = arith.constant 0 : i32
    %c0_i32_0 = arith.constant 0 : i32
    %c0_i32_1 = arith.constant 0 : i32
    return %arg0, %c0_i32, %c0_i32_0 : i32, i32, i32
  }
  func.func @transform_1(%arg0: i32) -> (i32, i32) {
    %c0_i32 = arith.constant 0 : i32
    %c0_i32_0 = arith.constant 0 : i32
    %c0_i32_1 = arith.constant 0 : i32
    return %c0_i32, %c0_i32_0 : i32, i32
  }
  func.func @transform_2(%arg0: i32) -> (i32, i32) {
    %c0_i32 = arith.constant 0 : i32
    %c0_i32_0 = arith.constant 0 : i32
    %c0_i32_1 = arith.constant 0 : i32
    return %c0_i32, %c0_i32_0 : i32, i32
  }
  func.func @transform_3(%arg0: i32) -> (i32, i32) {
    %c0_i32 = arith.constant 0 : i32
    %c0_i32_0 = arith.constant 0 : i32
    %c0_i32_1 = arith.constant 0 : i32
    return %c0_i32, %c0_i32_0 : i32, i32
  }
  func.func @transform_4(%arg0: i32) -> (i32, i32) {
    %c0_i32 = arith.constant 0 : i32
    %c0_i32_0 = arith.constant 0 : i32
    %c0_i32_1 = arith.constant 0 : i32
    return %c0_i32, %c0_i32_0 : i32, i32
  }
  func.func @transform_5(%arg0: i32) -> (i32, i32) {
    %c0_i32 = arith.constant 0 : i32
    %c0_i32_0 = arith.constant 0 : i32
    %c0_i32_1 = arith.constant 0 : i32
    return %c0_i32, %c0_i32_0 : i32, i32
  }
  func.func @transform_6(%arg0: i32) -> (i32, i32) {
    %c0_i32 = arith.constant 0 : i32
    %c0_i32_0 = arith.constant 0 : i32
    %c0_i32_1 = arith.constant 0 : i32
    return %c0_i32, %c0_i32_0 : i32, i32
  }
  func.func @transform_7(%arg0: i32) -> (i32, i32) {
    %c0_i32 = arith.constant 0 : i32
    %c0_i32_0 = arith.constant 0 : i32
    %c0_i32_1 = arith.constant 0 : i32
    return %c0_i32, %c0_i32_0 : i32, i32
  }
  func.func @transform_8(%arg0: i32) -> (i32, i32) {
    %c0_i32 = arith.constant 0 : i32
    %c0_i32_0 = arith.constant 0 : i32
    %c0_i32_1 = arith.constant 0 : i32
    return %c0_i32, %c0_i32_0 : i32, i32
  }
  func.func @transform_9(%arg0: i32) -> (i32, i32) {
    %c0_i32 = arith.constant 0 : i32
    %c0_i32_0 = arith.constant 0 : i32
    %c0_i32_1 = arith.constant 0 : i32
    return %c0_i32, %c0_i32_0 : i32, i32
  }
  func.func @transform_10(%arg0: i32) -> (i32, i32) {
    %c0_i32 = arith.constant 0 : i32
    %c0_i32_0 = arith.constant 0 : i32
    %c0_i32_1 = arith.constant 0 : i32
    return %c0_i32, %c0_i32_0 : i32, i32
  }
  func.func @transform_11(%arg0: i32) -> (i32, i32, i32) {
    %c0_i32 = arith.constant 0 : i32
    %c0_i32_0 = arith.constant 0 : i32
    %c0_i32_1 = arith.constant 0 : i32
    %c0_i32_2 = arith.constant 0 : i32
    return %c0_i32, %c0_i32_0, %c0_i32_1 : i32, i32, i32
  }
  func.func @transform_12(%arg0: i32) -> (i32, i32) {
    %c0_i32 = arith.constant 0 : i32
    %c0_i32_0 = arith.constant 0 : i32
    %c0_i32_1 = arith.constant 0 : i32
    return %c0_i32, %c0_i32_0 : i32, i32
  }
  func.func @transform_13(%arg0: i32) -> (i32, i32, i32) {
    %c0_i32 = arith.constant 0 : i32
    %c0_i32_0 = arith.constant 0 : i32
    %c0_i32_1 = arith.constant 0 : i32
    %c0_i32_2 = arith.constant 0 : i32
    return %c0_i32, %c0_i32_0, %c0_i32_1 : i32, i32, i32
  }
  func.func @transform_14(%arg0: i32) -> (i32, i32, i32) {
    %c0_i32 = arith.constant 0 : i32
    %c0_i32_0 = arith.constant 0 : i32
    %c0_i32_1 = arith.constant 0 : i32
    %c0_i32_2 = arith.constant 0 : i32
    return %c0_i32, %c0_i32_0, %c0_i32_1 : i32, i32, i32
  }
  func.func @transform_15(%arg0: i32) -> (i32, i32) {
    %c0_i32 = arith.constant 0 : i32
    %c0_i32_0 = arith.constant 0 : i32
    %c0_i32_1 = arith.constant 0 : i32
    return %c0_i32, %c0_i32_0 : i32, i32
  }
  func.func @transform_16(%arg0: i32) -> (i32, i32) {
    %c0_i32 = arith.constant 0 : i32
    %c0_i32_0 = arith.constant 0 : i32
    %c0_i32_1 = arith.constant 0 : i32
    return %c0_i32, %c0_i32_0 : i32, i32
  }
  func.func @transform_17(%arg0: i32) -> (i32, i32) {
    %c0_i32 = arith.constant 0 : i32
    %c0_i32_0 = arith.constant 0 : i32
    %c0_i32_1 = arith.constant 0 : i32
    return %c0_i32, %c0_i32_0 : i32, i32
  }
  func.func @transform_18(%arg0: i32) -> (i32, i32) {
    %c0_i32 = arith.constant 0 : i32
    %c0_i32_0 = arith.constant 0 : i32
    %c0_i32_1 = arith.constant 0 : i32
    return %c0_i32, %c0_i32_0 : i32, i32
  }
  func.func @transform_19(%arg0: i32) -> (i32, i32) {
    %c0_i32 = arith.constant 0 : i32
    %c0_i32_0 = arith.constant 0 : i32
    %c0_i32_1 = arith.constant 0 : i32
    return %c0_i32, %c0_i32_0 : i32, i32
  }
  func.func @transform_20(%arg0: i32) -> (i32, i32, i32) {
    %c0_i32 = arith.constant 0 : i32
    %c0_i32_0 = arith.constant 0 : i32
    %c0_i32_1 = arith.constant 0 : i32
    return %arg0, %c0_i32, %c0_i32_0 : i32, i32, i32
  }
}

</mosaic_0001>

<bundles_post_ra>
// kernel: tpu_custom_call.1
= control target key start
LH: loop header
LB: loop body
LE: loop exit
PB: predicated region body
PF: predicated region fallthrough
CT: control target
= control target key end

     0   :  { %s8712_s0 = inlined_call_operand.vmem [shape: f32[2,256,32], index: 0, kind: input, shape index: {}]   ;;  %s8713_s1 = inlined_call_operand.vmem [shape: f32[32,32], index: 1, kind: input, shape index: {}]   ;;  %s8714_s2 = inlined_call_operand.vmem [shape: f32[1,32], index: 2, kind: input, shape index: {}]   ;;  %s8715_s3 = inlined_call_operand.vmem [shape: f32[1,32], index: 3, kind: input, shape index: {}]   ;;  %s8716_s4 = inlined_call_operand.vmem [shape: f32[1,32], index: 4, kind: input, shape index: {}]   ;;  %s8717_s5 = inlined_call_operand.vmem [shape: f32[32,16], index: 5, kind: input, shape index: {}]   ;;  %s8718_s6 = inlined_call_operand.vmem [shape: f32[16,32], index: 6, kind: input, shape index: {}]   ;;  %s8719_s7 = inlined_call_operand.vmem [shape: f32[32,16], index: 7, kind: input, shape index: {}]   ;;  %s8720_s8 = inlined_call_operand.vmem [shape: f32[1,16], index: 8, kind: input, shape index: {}]   ;;  %s8721_s9 = inlined_call_operand.vmem [shape: f32[1,16], index: 9, kind: input, shape index: {}]   ;;  %s8722_s10 = inlined_call_operand.vmem [shape: f32[1,16], index: 10, kind: input, shape index: {}]   ;;  %s8723_s11 = inlined_call_operand.hbm [shape: f32[9,16,32], index: 11, kind: input, shape index: {}]   ;;  %s8724_s12 = inlined_call_operand.vmem [shape: f32[1,32], index: 12, kind: input, shape index: {}]   ;;  %s8725_s13 = inlined_call_operand.vmem [shape: f32[9,32,64], index: 13, kind: input, shape index: {}]   ;;  %s8726_s14 = inlined_call_operand.vmem [shape: f32[9,32,64], index: 14, kind: input, shape index: {}]   ;;  %s8727_s15 = inlined_call_operand.vmem [shape: f32[1,64], index: 15, kind: input, shape index: {}]   ;;  %s8728_s16 = inlined_call_operand.vmem [shape: f32[1,64], index: 16, kind: input, shape index: {}]   ;;  %s8729_s17 = inlined_call_operand.vmem [shape: f32[1,64], index: 17, kind: input, shape index: {}]   ;;  %s8730_s18 = inlined_call_operand.vmem [shape: f32[64,16], index: 18, kind: input, shape index: {}]   ;;  %s8731_s19 = inlined_call_operand.vmem [shape: f32[16,64], index: 19, kind: input, shape index: {}]   ;;  %s8732_s20 = inlined_call_operand.hbm [shape: f32[2,64,64], index: 20, kind: output, shape index: {}]  }
   0x1   :  { %8757 = sst [smem:[#allocation33_spill]] %s8712_s0 }
   0x2   :  { %8758 = sst [smem:[#allocation34_spill]] %s8713_s1 }
   0x3   :  { %8759 = sst [smem:[#allocation35_spill]] %s8714_s2 }
   0x4   :  { %8760 = sst [smem:[#allocation36_spill]] %s8715_s3 }
   0x5   :  { %8761 = sst [smem:[#allocation37_spill]] %s8716_s4 }
   0x6   :  { %8762 = sst [smem:[#allocation38_spill]] %s8717_s5 }
   0x7   :  { %8763 = sst [smem:[#allocation39_spill]] %s8723_s11 }
   0x8   :  { %25 = vsyncpa [#allocation7], 0 }
   0x9   :  { %26 = vsyncpa [#allocation8], 0 }
   0xa   :  { %28 = vsyncpa [#allocation8 + $0x1], 0  ;;  %s5697_s1 = smov 0   ;;  %s5699_s22 = smov 0  }
   0xb   :  { %s5701_s23 = smov 0   ;;  %s5703_s24 = smov 0  }
   0xc LB: > { %8764 = sst [smem:[#allocation12_spill]] %s5569_s1  ;;  %s5718_s2 = sadd.s32 4294967295, %s5581_s24   ;;  %s5581_s24 = sphi %s5703_s24, %s8831_s24   ;;  %s5577_s23 = sphi %s5701_s23, %s8833_s23   ;;  %s5573_s22 = sphi %s5699_s22, %s8835_s22   ;;  %s5569_s1 = sphi %s5697_s1, %s8834_s1  }
   0xd   : > { %8765 = sst [smem:[#allocation13_spill]] %s5577_s23  ;;  %s4919_s25 = sadd.s32 4294967294, %s5581_s24  }
   0xe   : > { %8766 = sst [smem:[#allocation14_spill]] %s5581_s24  ;;  %s5722_s3 = sadd.s32 1, %s5581_s24  }
   0xf   : > { %8767 = sst [smem:[#allocation15_spill]] %s5722_s3  ;;  %s466_s26 = sadd.s32 1, %s5577_s23 }
  0x10   : > { %s463_s27 = ssub.s32 %s5581_s24, %s5722_s3  ;;  %p476_p0 = scmp.ne.s32.totalorder %s5577_s23, %s5573_s22 }
  0x11   : > { %p464_p1 = scmp.eq.s32.totalorder %s463_s27, 0  ;;  %p477_p2 = scmp.eq.s32.totalorder %s5718_s2, 1 }
  0x12   : > { %p482_p3 = scmp.ne.s32.totalorder %s5573_s22, %s5569_s1  ;;  %p483_p4 = scmp.eq.s32.totalorder %s4919_s25, 1 }
  0x13   : > { %s5733_s28 = scalar_select %p464_p1, %s5577_s23, %s466_s26  }
  0x14   : > { %p5735_p5 = por %p477_p2, %p476_p0  ;;  %p5739_p6 = por %p483_p4, %p482_p3 }
  0x15   : > { %8768 = sst [smem:[#allocation16_spill]] %s5733_s28  ;;  %p4920_p7 = scmp.ge.s32.totalorder %s5581_s24, 1 }
  0x16   : > { %s8770_s29 = scalar_select %p5739_p6, 1, 0 }
  0x17   : > { %p490_p8 = scmp.lt.s32.totalorder %s5581_s24, 3  ;;  %p5345_p9 = scmp.eq.s32.totalorder %s5718_s2, 0 }
  0x18   : > { %8771 = sst [smem:[#allocation17_spill]] %s8770_s29  ;;  %s5583_s25 = smov [#allocation6]  }
  0x19   : > { %p491_p10 = pnand %p4920_p7, %p490_p8  ;;  %s8772_s11 = sld [smem:[#allocation39_spill]] }
  0x1a   : > { %s533_s26 = sshll.u32 %s5583_s25, 4  ;;  %s5584_s27 = smov 128   ;;  %s534_s26 = int_to_ptr.vmem [resolvable:$true] %s533_s26 }
  0x1b   : > { %p5337_p11 = pneg %p491_p10  ;;  %s5585_s28 = smov 8  }
  0x1c   : > { %581 = sbr.rel (%p491_p10) target bundleno = 2324 (0x914), region = 100 }
  0x1d   : > { %p5338_p12 = pnand %p5345_p9, %p5337_p11 }
  0x1f   : > { %s531_s21 = sshll.u32 %s8772_s11, 4  ;;  %s532_s21 = int_to_ptr.hbm [resolvable:$true] %s531_s21 }
  0x20   : > { %5340 = dma.hbm_to_vmem [thread:$0]  (!%p5338_p12), %s532_s21, 2304, %s534_s26, [#allocation7], %s5584_s27, %s5584_s27, %s5585_s28  }
  0x21   : > { %5560 = dma.done.wait (%p5345_p9), [#allocation7], 2304  }
  0x22   : > { %5562 = vsyncadd (%p5345_p9), [#allocation7], 4294964992  ;;  %vm1116_vm0 = vcmask 130048   ;;  %vm1903_vm1 = vcmask 122880   ;;  %p640_p13 = scmp.lt.s32.totalorder %s5718_s2, 1  ;;  %vm685_vm2 = vcmask 261120  }
  0x23   : > { %vm1976_vm3 = vcmask 253952   ;;  %s8773_s23 = sld [smem:[#allocation34_spill]]  ;;  %v5586_v2 = vmov 0.0   ;;  %v5587_v14 = vmov -inf   ;;  %vm3012_vm9 = vcmask 254976   ;;  %s5322_s28 = sshll.u32 %s5718_s2, 6 }
  0x24   : > { %s641_s30 = scalar_select %p640_p13, %s5718_s2, 1  ;;  %1905 = vst.msk [vmem:[#allocation2 + $0x10] sm:$0xff] %vm1116_vm0, %v5586_v2 }
  0x25   : > { %s8775_s1 = sld [smem:[#allocation33_spill]]  ;;  %1906 = vst.msk [vmem:[#allocation2 + $0x18] sm:$0x1] %vm1903_vm1, %v5586_v2  ;;  %s8664_s27 = scalar_lea.hbm %s8732_s20, %s5322_s28 }
  0x26   : > { %s5321_s0 = sshll.u32 %s641_s30, 8  ;;  %1907 = vst.msk [vmem:[#allocation2 + $0x20] sm:$0xff] %vm1116_vm0, %v5586_v2  ;;  %s8777_s5 = sld [smem:[#allocation38_spill]] }
  0x27   : > { %1908 = vst.msk [vmem:[#allocation2 + $0x28] sm:$0x1] %vm1903_vm1, %v5586_v2  ;;  %s8779_s29 = sld [smem:[#allocation36_spill]]  ;;  %s4844_s11 = sshll.u32 %s8664_s27, 4  ;;  %s4845_s11 = int_to_ptr.hbm [resolvable:$true] %s4844_s11 }
  0x28   : > { %1909 = vst.msk [vmem:[#allocation2 + $0x30] sm:$0xff] %vm1116_vm0, %v5586_v2  ;;  %s8780_s25 = sld [smem:[#allocation37_spill]]  ;;  %s5535_s28 = scalar_lea.hbm %s8732_s20, 128 }
  0x29   : > { %s8774_s3 = smov %s8773_s23  ;;  %v680_v0 = vld [vmem:[%s8773_s23 + $0x18] sm:$0xff]  ;;  %1910 = vst.msk [vmem:[#allocation2 + $0x38] sm:$0x1] %vm1903_vm1, %v5586_v2 }
  0x2a   : > { %v679_v1 = vld [vmem:[%s8774_s3 + $0x10] sm:$0xff]  ;;  %794 = vmatpush.msra.mxu0 %v680_v0  ;;  %5323 = vmatpush.msra.mxu1 %v680_v0  ;;  %v678_v3 = vld [vmem:[%s8774_s3 + $0x8] sm:$0xff]  ;;  %v677_v4 = vld [vmem:[%s8774_s3] sm:$0xff]  ;;  %1911 = vst.msk [vmem:[#allocation2 + $0x40] sm:$0xff] %vm1116_vm0, %v5586_v2 }
  0x2b   : > { %s5771_s24 = scalar_lea.vmem %s8775_s1, %s5321_s0  ;;  %1912 = vst.msk [vmem:[#allocation2 + $0x48] sm:$0x1] %vm1903_vm1, %v5586_v2  ;;  %s8776_s0 = sld [smem:[#allocation35_spill]] }
  0x2c   : > { %795 = vmatpush.msra.mxu0 %v679_v1  ;;  %5324 = vmatpush.msra.mxu1 %v679_v1  ;;  %v645_v5 = vld [vmem:[%s5771_s24] sm:$0xff]  ;;  %1913 = vst.msk [vmem:[#allocation2 + $0x50] sm:$0xff] %vm1116_vm0, %v5586_v2  ;;  %v646_v6 = vld [vmem:[%s5771_s24 + $0x8] sm:$0xff]  ;;  %v647_v7 = vld [vmem:[%s5771_s24 + $0x10] sm:$0xff]  ;;  %s5529_s1 = sshra.s32 %s4845_s11, 4  ;;  %s5530_s1 = int_to_ptr.hbm [resolvable:$true] %s5529_s1 }
  0x2d   : > { %1914 = vst.msk [vmem:[#allocation2 + $0x58] sm:$0x1] %vm1903_vm1, %v5586_v2  ;;  %v648_v8 = vld [vmem:[%s5771_s24 + $0x18] sm:$0xff]  ;;  %v649_v9 = vld [vmem:[%s5771_s24 + $0x20] sm:$0xff]  ;;  %v650_v10 = vld [vmem:[%s5771_s24 + $0x28] sm:$0xff]  ;;  %p5536_p3 = scmp.lt.s32.totalorder %s5530_s1, %s8732_s20 }
  0x2e   : > { %796 = vmatpush.msra.mxu0 %v678_v3  ;;  %5325 = vmatpush.msra.mxu1 %v678_v3  ;;  %1915 = vst.msk [vmem:[#allocation2 + $0x60] sm:$0xff] %vm1116_vm0, %v5586_v2  ;;  %v651_v11 = vld [vmem:[%s5771_s24 + $0x30] sm:$0xff]  ;;  %v652_v12 = vld [vmem:[%s5771_s24 + $0x38] sm:$0xff]  ;;  %v653_v13 = vld [vmem:[%s5771_s24 + $0x40] sm:$0xff] }
  0x2f   : > { %1916 = vst.msk [vmem:[#allocation2 + $0x68] sm:$0x1] %vm1903_vm1, %v5586_v2  ;;  %v654_v15 = vld [vmem:[%s5771_s24 + $0x48] sm:$0xff]  ;;  %v655_v16 = vld [vmem:[%s5771_s24 + $0x50] sm:$0xff]  ;;  %v656_v17 = vld [vmem:[%s5771_s24 + $0x58] sm:$0xff] }
  0x30   : > { %797 = vmatpush.msra.mxu0 %v677_v4  ;;  %5326 = vmatpush.msra.mxu1 %v677_v4  ;;  %1917 = vst.msk [vmem:[#allocation2 + $0x70] sm:$0xff] %vm1116_vm0, %v5586_v2  ;;  %v657_v18 = vld [vmem:[%s5771_s24 + $0x60] sm:$0xff]  ;;  %v658_v19 = vld [vmem:[%s5771_s24 + $0x68] sm:$0xff]  ;;  %v659_v20 = vld [vmem:[%s5771_s24 + $0x70] sm:$0xff] }
  0x31   : > { %4928 = vmatmul.msk.f32.vlgmr.msra.gmra.mxu0 %vm685_vm2, %v645_v5  ;;  %1918 = vst.msk [vmem:[#allocation2 + $0x78] sm:$0x1] %vm1903_vm1, %v5586_v2  ;;  %v660_v21 = vld [vmem:[%s5771_s24 + $0x78] sm:$0xff]  ;;  %v661_v23 = vld [vmem:[%s5771_s24 + $0x80] sm:$0xff]  ;;  %v662_v25 = vld [vmem:[%s5771_s24 + $0x88] sm:$0xff] }
  0x32   : > { %1919 = vst.msk [vmem:[#allocation2 + $0x80] sm:$0xff] %vm1116_vm0, %v5586_v2  ;;  %v663_v27 = vld [vmem:[%s5771_s24 + $0x90] sm:$0xff]  ;;  %v664_v29 = vld [vmem:[%s5771_s24 + $0x98] sm:$0xff]  ;;  %v665_v31 = vld [vmem:[%s5771_s24 + $0xa0] sm:$0xff] }
  0x33   : > { %1920 = vst.msk [vmem:[#allocation2 + $0x88] sm:$0x1] %vm1903_vm1, %v5586_v2  ;;  %v666_v33 = vld [vmem:[%s5771_s24 + $0xa8] sm:$0xff]  ;;  %v667_v35 = vld [vmem:[%s5771_s24 + $0xb0] sm:$0xff]  ;;  %v668_v37 = vld [vmem:[%s5771_s24 + $0xb8] sm:$0xff] }
  0x34   : > { %1923 = vst.msk [vmem:[#allocation2 + $0xa0] sm:$0xff] %vm1116_vm0, %v5586_v2  ;;  %v669_v39 = vld [vmem:[%s5771_s24 + $0xc0] sm:$0xff]  ;;  %v670_v41 = vld [vmem:[%s5771_s24 + $0xc8] sm:$0xff]  ;;  %v671_v43 = vld [vmem:[%s5771_s24 + $0xd0] sm:$0xff] }
  0x35   : > { %1924 = vst.msk [vmem:[#allocation2 + $0xa8] sm:$0x1] %vm1903_vm1, %v5586_v2  ;;  %v676_v44 = vld [vmem:[%s5771_s24 + $0xf8] sm:$0xff]  ;;  %v673_v48 = vld [vmem:[%s5771_s24 + $0xe0] sm:$0xff]  ;;  %v674_v50 = vld [vmem:[%s5771_s24 + $0xe8] sm:$0xff] }
  0x36   : > { %1925 = vst.msk [vmem:[#allocation2 + $0xb0] sm:$0xff] %vm1116_vm0, %v5586_v2  ;;  %4959 = vmatmul.msk.f32.vlgmr.msra.gmra.mxu1 %vm685_vm2, %v676_v44  ;;  %v672_v46 = vld [vmem:[%s5771_s24 + $0xd8] sm:$0xff]  ;;  %v675_v52 = vld [vmem:[%s5771_s24 + $0xf0] sm:$0xff]  ;;  %v6185_v60 = vld [vmem:[%s8776_s0] ss:$0 sm:$0xff]  ;;  %s637_s24 = sand.u32 1, %s5573_s22  }
  0x37   : > { %1926 = vst.msk [vmem:[#allocation2 + $0xb8] sm:$0x1] %vm1903_vm1, %v5586_v2  ;;  %s4830_s23 = scalar_lea.sflag [#allocation8], %s637_s24 }
  0x38   : > { %1927 = vst.msk [vmem:[#allocation2 + $0xc0] sm:$0xff] %vm1116_vm0, %v5586_v2 }
  0x39   : > { %4929 = vmatmul.msk.f32.gmra.mxu0 %vm685_vm2, %v646_v6  ;;  %1928 = vst.msk [vmem:[#allocation2 + $0xc8] sm:$0x1] %vm1903_vm1, %v5586_v2 }
  0x3a   : > { %1929 = vst.msk [vmem:[#allocation2 + $0xd0] sm:$0xff] %vm1116_vm0, %v5586_v2 }
  0x3b   : > { %1930 = vst.msk [vmem:[#allocation2 + $0xd8] sm:$0x1] %vm1903_vm1, %v5586_v2 }
  0x3c   : > { %1931 = vst.msk [vmem:[#allocation2 + $0xe0] sm:$0xff] %vm1116_vm0, %v5586_v2 }
  0x3d   : > { %1932 = vst.msk [vmem:[#allocation2 + $0xe8] sm:$0x1] %vm1903_vm1, %v5586_v2 }
  0x3e   : > { %1933 = vst.msk [vmem:[#allocation2 + $0xf0] sm:$0xff] %vm1116_vm0, %v5586_v2 }
  0x3f   : > { %1934 = vst.msk [vmem:[#allocation2 + $0xf8] sm:$0x1] %vm1903_vm1, %v5586_v2 }
  0x40   : > { %1935 = vst.msk [vmem:[#allocation2 + $0x100] sm:$0xff] %vm1116_vm0, %v5586_v2 }
  0x41   : > { %4930 = vmatmul.msk.f32.gmra.mxu0 %vm685_vm2, %v647_v7  ;;  %1936 = vst.msk [vmem:[#allocation2 + $0x108] sm:$0x1] %vm1903_vm1, %v5586_v2 }
  0x42   : > { %1937 = vst.msk [vmem:[#allocation2 + $0x110] sm:$0xff] %vm1116_vm0, %v5586_v2 }
  0x43   : > { %1938 = vst.msk [vmem:[#allocation2 + $0x118] sm:$0x1] %vm1903_vm1, %v5586_v2 }
  0x44   : > { %1939 = vst.msk [vmem:[#allocation2 + $0x120] sm:$0xff] %vm1116_vm0, %v5586_v2 }
  0x45   : > { %1940 = vst.msk [vmem:[#allocation2 + $0x128] sm:$0x1] %vm1903_vm1, %v5586_v2 }
  0x46   : > { %1941 = vst.msk [vmem:[#allocation2 + $0x130] sm:$0xff] %vm1116_vm0, %v5586_v2 }
  0x47   : > { %1942 = vst.msk [vmem:[#allocation2 + $0x138] sm:$0x1] %vm1903_vm1, %v5586_v2 }
  0x48   : > { %1943 = vst.msk [vmem:[#allocation2 + $0x140] sm:$0xff] %vm1116_vm0, %v5586_v2 }
  0x49   : > { %4931 = vmatmul.msk.f32.gmra.mxu0 %vm685_vm2, %v648_v8  ;;  %1944 = vst.msk [vmem:[#allocation2 + $0x148] sm:$0x1] %vm1903_vm1, %v5586_v2 }
  0x4a   : > { %1945 = vst.msk [vmem:[#allocation2 + $0x150] sm:$0xff] %vm1116_vm0, %v5586_v2 }
  0x4b   : > { %1946 = vst.msk [vmem:[#allocation2 + $0x158] sm:$0x1] %vm1903_vm1, %v5586_v2 }
  0x4c   : > { %1947 = vst.msk [vmem:[#allocation2 + $0x160] sm:$0xff] %vm1116_vm0, %v5586_v2 }
  0x4d   : > { %1948 = vst.msk [vmem:[#allocation2 + $0x168] sm:$0x1] %vm1903_vm1, %v5586_v2 }
  0x4e   : > { %1949 = vst.msk [vmem:[#allocation2 + $0x170] sm:$0xff] %vm1116_vm0, %v5586_v2 }
  0x4f   : > { %1950 = vst.msk [vmem:[#allocation2 + $0x178] sm:$0x1] %vm1903_vm1, %v5586_v2 }
  0x50   : > { %1951 = vst.msk [vmem:[#allocation2 + $0x180] sm:$0xff] %vm1116_vm0, %v5586_v2 }
  0x51   : > { %4932 = vmatmul.msk.f32.gmra.mxu0 %vm685_vm2, %v649_v9  ;;  %1952 = vst.msk [vmem:[#allocation2 + $0x188] sm:$0x1] %vm1903_vm1, %v5586_v2 }
  0x52   : > { %1953 = vst.msk [vmem:[#allocation2 + $0x190] sm:$0xff] %vm1116_vm0, %v5586_v2 }
  0x53   : > { %1954 = vst.msk [vmem:[#allocation2 + $0x198] sm:$0x1] %vm1903_vm1, %v5586_v2 }
  0x54   : > { %1955 = vst.msk [vmem:[#allocation2 + $0x1a0] sm:$0xff] %vm1116_vm0, %v5586_v2 }
  0x55   : > { %1956 = vst.msk [vmem:[#allocation2 + $0x1a8] sm:$0x1] %vm1903_vm1, %v5586_v2 }
  0x56   : > { %1957 = vst.msk [vmem:[#allocation2 + $0x1b0] sm:$0xff] %vm1116_vm0, %v5586_v2 }
  0x57   : > { %1958 = vst.msk [vmem:[#allocation2 + $0x1b8] sm:$0x1] %vm1903_vm1, %v5586_v2 }
  0x58   : > { %1959 = vst.msk [vmem:[#allocation2 + $0x1c0] sm:$0xff] %vm1116_vm0, %v5586_v2 }
  0x59   : > { %4933 = vmatmul.msk.f32.gmra.mxu0 %vm685_vm2, %v650_v10  ;;  %1960 = vst.msk [vmem:[#allocation2 + $0x1c8] sm:$0x1] %vm1903_vm1, %v5586_v2 }
  0x5a   : > { %1961 = vst.msk [vmem:[#allocation2 + $0x1d0] sm:$0xff] %vm1116_vm0, %v5586_v2 }
  0x5b   : > { %1962 = vst.msk [vmem:[#allocation2 + $0x1d8] sm:$0x1] %vm1903_vm1, %v5586_v2 }
  0x5c   : > { %1963 = vst.msk [vmem:[#allocation2 + $0x1e0] sm:$0xff] %vm1116_vm0, %v5586_v2 }
  0x5d   : > { %1964 = vst.msk [vmem:[#allocation2 + $0x1e8] sm:$0x1] %vm1903_vm1, %v5586_v2 }
  0x5e   : > { %1965 = vst.msk [vmem:[#allocation2 + $0x1f0] sm:$0xff] %vm1116_vm0, %v5586_v2 }
  0x5f   : > { %1966 = vst.msk [vmem:[#allocation2 + $0x1f8] sm:$0x1] %vm1903_vm1, %v5586_v2 }
  0x60   : > { %1967 = vst.msk [vmem:[#allocation2 + $0x200] sm:$0xff] %vm1116_vm0, %v5586_v2 }
  0x61   : > { %4934 = vmatmul.msk.f32.gmra.mxu0 %vm685_vm2, %v651_v11  ;;  %1968 = vst.msk [vmem:[#allocation2 + $0x208] sm:$0x1] %vm1903_vm1, %v5586_v2 }
  0x62   : > { %1969 = vst.msk [vmem:[#allocation2 + $0x210] sm:$0xff] %vm1116_vm0, %v5586_v2 }
  0x63   : > { %1970 = vst.msk [vmem:[#allocation2 + $0x218] sm:$0x1] %vm1903_vm1, %v5586_v2 }
  0x64   : > { %1971 = vst.msk [vmem:[#allocation2 + $0x220] sm:$0xff] %vm1116_vm0, %v5586_v2 }
  0x65   : > { %1972 = vst.msk [vmem:[#allocation2 + $0x228] sm:$0x1] %vm1903_vm1, %v5586_v2 }
  0x66   : > { %1973 = vst.msk [vmem:[#allocation2 + $0x230] sm:$0xff] %vm1116_vm0, %v5586_v2 }
  0x67   : > { %1974 = vst.msk [vmem:[#allocation2 + $0x238] sm:$0x1] %vm1903_vm1, %v5586_v2 }
  0x68   : > { %1978 = vst.msk [vmem:[#allocation3 + $0x10] sm:$0xff] %vm685_vm2, %v5587_v14 }
  0x69   : > { %4935 = vmatmul.msk.f32.gmra.mxu0 %vm685_vm2, %v652_v12  ;;  %1979 = vst.msk [vmem:[#allocation3 + $0x18] sm:$0x1] %vm1976_vm3, %v5587_v14 }
  0x6a   : > { %1980 = vst.msk [vmem:[#allocation3 + $0x20] sm:$0xff] %vm685_vm2, %v5587_v14 }
  0x6b   : > { %1981 = vst.msk [vmem:[#allocation3 + $0x28] sm:$0x1] %vm1976_vm3, %v5587_v14 }
  0x6c   : > { %1982 = vst.msk [vmem:[#allocation3 + $0x30] sm:$0xff] %vm685_vm2, %v5587_v14 }
  0x6d   : > { %1983 = vst.msk [vmem:[#allocation3 + $0x38] sm:$0x1] %vm1976_vm3, %v5587_v14 }
  0x6e   : > { %1984 = vst.msk [vmem:[#allocation3 + $0x40] sm:$0xff] %vm685_vm2, %v5587_v14 }
  0x6f   : > { %1985 = vst.msk [vmem:[#allocation3 + $0x48] sm:$0x1] %vm1976_vm3, %v5587_v14 }
  0x70   : > { %1986 = vst.msk [vmem:[#allocation3 + $0x50] sm:$0xff] %vm685_vm2, %v5587_v14 }
  0x71   : > { %4936 = vmatmul.msk.f32.gmra.mxu0 %vm685_vm2, %v653_v13  ;;  %1987 = vst.msk [vmem:[#allocation3 + $0x58] sm:$0x1] %vm1976_vm3, %v5587_v14 }
  0x72   : > { %1988 = vst.msk [vmem:[#allocation3 + $0x60] sm:$0xff] %vm685_vm2, %v5587_v14 }
  0x73   : > { %1989 = vst.msk [vmem:[#allocation3 + $0x68] sm:$0x1] %vm1976_vm3, %v5587_v14 }
  0x74   : > { %1990 = vst.msk [vmem:[#allocation3 + $0x70] sm:$0xff] %vm685_vm2, %v5587_v14 }
  0x75   : > { %1991 = vst.msk [vmem:[#allocation3 + $0x78] sm:$0x1] %vm1976_vm3, %v5587_v14 }
  0x76   : > { %1992 = vst.msk [vmem:[#allocation3 + $0x80] sm:$0xff] %vm685_vm2, %v5587_v14 }
  0x77   : > { %1993 = vst.msk [vmem:[#allocation3 + $0x88] sm:$0x1] %vm1976_vm3, %v5587_v14 }
  0x78   : > { %1996 = vst.msk [vmem:[#allocation3 + $0xa0] sm:$0xff] %vm685_vm2, %v5587_v14 }
  0x79   : > { %4937 = vmatmul.msk.f32.gmra.mxu0 %vm685_vm2, %v654_v15  ;;  %1997 = vst.msk [vmem:[#allocation3 + $0xa8] sm:$0x1] %vm1976_vm3, %v5587_v14 }
  0x7a   : > { %1998 = vst.msk [vmem:[#allocation3 + $0xb0] sm:$0xff] %vm685_vm2, %v5587_v14 }
  0x7b   : > { %1999 = vst.msk [vmem:[#allocation3 + $0xb8] sm:$0x1] %vm1976_vm3, %v5587_v14 }
  0x7c   : > { %2000 = vst.msk [vmem:[#allocation3 + $0xc0] sm:$0xff] %vm685_vm2, %v5587_v14 }
  0x7d   : > { %2001 = vst.msk [vmem:[#allocation3 + $0xc8] sm:$0x1] %vm1976_vm3, %v5587_v14 }
  0x7e   : > { %2002 = vst.msk [vmem:[#allocation3 + $0xd0] sm:$0xff] %vm685_vm2, %v5587_v14 }
  0x7f   : > { %2003 = vst.msk [vmem:[#allocation3 + $0xd8] sm:$0x1] %vm1976_vm3, %v5587_v14 }
  0x80   : > { %2004 = vst.msk [vmem:[#allocation3 + $0xe0] sm:$0xff] %vm685_vm2, %v5587_v14 }
  0x81   : > { %4938 = vmatmul.msk.f32.gmra.mxu0 %vm685_vm2, %v655_v16  ;;  %2005 = vst.msk [vmem:[#allocation3 + $0xe8] sm:$0x1] %vm1976_vm3, %v5587_v14 }
  0x82   : > { %2006 = vst.msk [vmem:[#allocation3 + $0xf0] sm:$0xff] %vm685_vm2, %v5587_v14 }
  0x83   : > { %2007 = vst.msk [vmem:[#allocation3 + $0xf8] sm:$0x1] %vm1976_vm3, %v5587_v14 }
  0x84   : > { %2008 = vst.msk [vmem:[#allocation3 + $0x100] sm:$0xff] %vm685_vm2, %v5587_v14 }
  0x85   : > { %2009 = vst.msk [vmem:[#allocation3 + $0x108] sm:$0x1] %vm1976_vm3, %v5587_v14 }
  0x86   : > { %2010 = vst.msk [vmem:[#allocation3 + $0x110] sm:$0xff] %vm685_vm2, %v5587_v14 }
  0x87   : > { %2011 = vst.msk [vmem:[#allocation3 + $0x118] sm:$0x1] %vm1976_vm3, %v5587_v14 }
  0x88   : > { %2012 = vst.msk [vmem:[#allocation3 + $0x120] sm:$0xff] %vm685_vm2, %v5587_v14 }
  0x89   : > { %4939 = vmatmul.msk.f32.gmra.mxu0 %vm685_vm2, %v656_v17  ;;  %2013 = vst.msk [vmem:[#allocation3 + $0x128] sm:$0x1] %vm1976_vm3, %v5587_v14 }
  0x8a   : > { %2014 = vst.msk [vmem:[#allocation3 + $0x130] sm:$0xff] %vm685_vm2, %v5587_v14 }
  0x8b   : > { %2015 = vst.msk [vmem:[#allocation3 + $0x138] sm:$0x1] %vm1976_vm3, %v5587_v14 }
  0x8c   : > { %2016 = vst.msk [vmem:[#allocation3 + $0x140] sm:$0xff] %vm685_vm2, %v5587_v14 }
  0x8d   : > { %2017 = vst.msk [vmem:[#allocation3 + $0x148] sm:$0x1] %vm1976_vm3, %v5587_v14 }
  0x8e   : > { %2018 = vst.msk [vmem:[#allocation3 + $0x150] sm:$0xff] %vm685_vm2, %v5587_v14 }
  0x8f   : > { %2019 = vst.msk [vmem:[#allocation3 + $0x158] sm:$0x1] %vm1976_vm3, %v5587_v14 }
  0x90   : > { %2020 = vst.msk [vmem:[#allocation3 + $0x160] sm:$0xff] %vm685_vm2, %v5587_v14 }
  0x91   : > { %4940 = vmatmul.msk.f32.gmra.mxu0 %vm685_vm2, %v657_v18  ;;  %2021 = vst.msk [vmem:[#allocation3 + $0x168] sm:$0x1] %vm1976_vm3, %v5587_v14 }
  0x92   : > { %2022 = vst.msk [vmem:[#allocation3 + $0x170] sm:$0xff] %vm685_vm2, %v5587_v14 }
  0x93   : > { %2023 = vst.msk [vmem:[#allocation3 + $0x178] sm:$0x1] %vm1976_vm3, %v5587_v14 }
  0x94   : > { %2024 = vst.msk [vmem:[#allocation3 + $0x180] sm:$0xff] %vm685_vm2, %v5587_v14 }
  0x95   : > { %2025 = vst.msk [vmem:[#allocation3 + $0x188] sm:$0x1] %vm1976_vm3, %v5587_v14 }
  0x96   : > { %2026 = vst.msk [vmem:[#allocation3 + $0x190] sm:$0xff] %vm685_vm2, %v5587_v14 }
  0x97   : > { %2027 = vst.msk [vmem:[#allocation3 + $0x198] sm:$0x1] %vm1976_vm3, %v5587_v14 }
  0x98   : > { %2028 = vst.msk [vmem:[#allocation3 + $0x1a0] sm:$0xff] %vm685_vm2, %v5587_v14 }
  0x99   : > { %4941 = vmatmul.msk.f32.gmra.mxu0 %vm685_vm2, %v658_v19  ;;  %2029 = vst.msk [vmem:[#allocation3 + $0x1a8] sm:$0x1] %vm1976_vm3, %v5587_v14 }
  0x9a   : > { %2030 = vst.msk [vmem:[#allocation3 + $0x1b0] sm:$0xff] %vm685_vm2, %v5587_v14 }
  0x9b   : > { %2031 = vst.msk [vmem:[#allocation3 + $0x1b8] sm:$0x1] %vm1976_vm3, %v5587_v14 }
  0x9c   : > { %2032 = vst.msk [vmem:[#allocation3 + $0x1c0] sm:$0xff] %vm685_vm2, %v5587_v14 }
  0x9d   : > { %2033 = vst.msk [vmem:[#allocation3 + $0x1c8] sm:$0x1] %vm1976_vm3, %v5587_v14 }
  0x9e   : > { %2034 = vst.msk [vmem:[#allocation3 + $0x1d0] sm:$0xff] %vm685_vm2, %v5587_v14 }
  0x9f   : > { %2035 = vst.msk [vmem:[#allocation3 + $0x1d8] sm:$0x1] %vm1976_vm3, %v5587_v14 }
  0xa0   : > { %2036 = vst.msk [vmem:[#allocation3 + $0x1e0] sm:$0xff] %vm685_vm2, %v5587_v14 }
  0xa1   : > { %4942 = vmatmul.msk.f32.gmra.mxu0 %vm685_vm2, %v659_v20  ;;  %2037 = vst.msk [vmem:[#allocation3 + $0x1e8] sm:$0x1] %vm1976_vm3, %v5587_v14 }
  0xa2   : > { %2038 = vst.msk [vmem:[#allocation3 + $0x1f0] sm:$0xff] %vm685_vm2, %v5587_v14 }
  0xa3   : > { %2039 = vst.msk [vmem:[#allocation3 + $0x1f8] sm:$0x1] %vm1976_vm3, %v5587_v14 }
  0xa4   : > { %2040 = vst.msk [vmem:[#allocation3 + $0x200] sm:$0xff] %vm685_vm2, %v5587_v14 }
  0xa5   : > { %2041 = vst.msk [vmem:[#allocation3 + $0x208] sm:$0x1] %vm1976_vm3, %v5587_v14 }
  0xa6   : > { %2042 = vst.msk [vmem:[#allocation3 + $0x210] sm:$0xff] %vm685_vm2, %v5587_v14 }
  0xa7   : > { %2043 = vst.msk [vmem:[#allocation3 + $0x218] sm:$0x1] %vm1976_vm3, %v5587_v14 }
  0xa8   : > { %2044 = vst.msk [vmem:[#allocation3 + $0x220] sm:$0xff] %vm685_vm2, %v5587_v14 }
  0xa9   : > { %4943 = vmatmul.msk.f32.gmra.mxu0 %vm685_vm2, %v660_v21  ;;  %2045 = vst.msk [vmem:[#allocation3 + $0x228] sm:$0x1] %vm1976_vm3, %v5587_v14 }
  0xaa   : > { %2046 = vst.msk [vmem:[#allocation3 + $0x230] sm:$0xff] %vm685_vm2, %v5587_v14 }
  0xab   : > { %2047 = vst.msk [vmem:[#allocation3 + $0x238] sm:$0x1] %vm1976_vm3, %v5587_v14 }
  0xac   : > { %3011 = vst.msk [vmem:[#allocation4] sm:$0xff] %vm685_vm2, %v5586_v2 }
  0xad   : > { %3014 = vst.msk [vmem:[#allocation4 + $0x10] sm:$0xff] %vm685_vm2, %v5586_v2 }
  0xae   : > { %v6070_v22 = vpop.f32.mrf.mxu0  ;;  %3016 = vst.msk [vmem:[#allocation4 + $0x20] sm:$0xff] %vm685_vm2, %v5586_v2 }
  0xaf   : > { %3018 = vst.msk [vmem:[#allocation4 + $0x30] sm:$0xff] %vm685_vm2, %v5586_v2  ;;  %v6195_v63 = vadd.f32 %v6185_v60, %v6070_v22 }
  0xb0   : > { %3020 = vst.msk [vmem:[#allocation4 + $0x40] sm:$0xff] %vm685_vm2, %v5586_v2 }
  0xb1   : > { %4944 = vmatmul.msk.f32.gmra.mxu0 %vm685_vm2, %v661_v23  ;;  %3022 = vst.msk [vmem:[#allocation4 + $0x50] sm:$0xff] %vm685_vm2, %v5586_v2  ;;  %v972_v4 = vmul.f32 %v6195_v63, %v6195_v63  ;;  %v903_v8 = vsel %vm685_vm2, %v6195_v63, 0.0 }
  0xb2   : > { %3024 = vst.msk [vmem:[#allocation4 + $0x60] sm:$0xff] %vm685_vm2, %v5586_v2 }
  0xb3   : > { %3026 = vst.msk [vmem:[#allocation4 + $0x70] sm:$0xff] %vm685_vm2, %v5586_v2  ;;  %v1004_v14 = vsel %vm685_vm2, %v972_v4, 0.0 }
  0xb4   : > { %3028 = vst.msk [vmem:[#allocation4 + $0x80] sm:$0xff] %vm685_vm2, %v5586_v2 }
  0xb5   : > { %3030 = vst.msk [vmem:[#allocation4 + $0x90] sm:$0xff] %vm685_vm2, %v5586_v2 }
  0xb6   : > { %v6090_v24 = vpop.f32.mrf.mxu0  ;;  %3032 = vst.msk [vmem:[#allocation5] sm:$0xff] %vm685_vm2, %v5586_v2 }
  0xb7   : > { %3034 = vst.msk [vmem:[#allocation5 + $0x10] sm:$0xff] %vm685_vm2, %v5586_v2  ;;  %v6191_v62 = vadd.f32 %v6185_v60, %v6090_v24 }
  0xb8   : > { %3036 = vst.msk [vmem:[#allocation5 + $0x20] sm:$0xff] %vm685_vm2, %v5586_v2 }
  0xb9   : > { %4945 = vmatmul.msk.f32.gmra.mxu0 %vm685_vm2, %v662_v25  ;;  %3038 = vst.msk [vmem:[#allocation5 + $0x30] sm:$0xff] %vm685_vm2, %v5586_v2  ;;  %v973_v1 = vmul.f32 %v6191_v62, %v6191_v62  ;;  %v904_v5 = vsel %vm685_vm2, %v6191_v62, 0.0 }
  0xba   : > { %3040 = vst.msk [vmem:[#allocation5 + $0x40] sm:$0xff] %vm685_vm2, %v5586_v2  ;;  %v905_v15 = vadd.f32 %v904_v5, %v903_v8 }
  0xbb   : > { %3042 = vst.msk [vmem:[#allocation5 + $0x50] sm:$0xff] %vm685_vm2, %v5586_v2  ;;  %v1005_v10 = vsel %vm685_vm2, %v973_v1, 0.0 }
  0xbc   : > { %3044 = vst.msk [vmem:[#allocation5 + $0x60] sm:$0xff] %vm685_vm2, %v5586_v2  ;;  %v1006_v20 = vadd.f32 %v1005_v10, %v1004_v14 }
  0xbd   : > { %3046 = vst.msk [vmem:[#allocation5 + $0x70] sm:$0xff] %vm685_vm2, %v5586_v2 }
  0xbe   : > { %v805_v26 = vpop.f32.mrf.mxu0  ;;  %3048 = vst.msk [vmem:[#allocation5 + $0x80] sm:$0xff] %vm685_vm2, %v5586_v2 }
  0xbf   : > { %3050 = vst.msk [vmem:[#allocation5 + $0x90] sm:$0xff] %vm685_vm2, %v5586_v2  ;;  %v6198_v0 = vadd.f32 %v6185_v60, %v805_v26 }
  0xc0   : > { %3035 = vst.msk [vmem:[#allocation5 + $0x18] sm:$0x3] %vm3012_vm9, %v5586_v2 }
  0xc1   : > { %4946 = vmatmul.msk.f32.gmra.mxu0 %vm685_vm2, %v663_v27  ;;  %v974_v6 = vmul.f32 %v6198_v0, %v6198_v0  ;;  %v906_v11 = vsel %vm685_vm2, %v6198_v0, 0.0  ;;  %3013 = vst.msk [vmem:[#allocation4 + $0x8] sm:$0x3] %vm3012_vm9, %v5586_v2 }
  0xc2   : > { %v907_v21 = vadd.f32 %v906_v11, %v905_v15  ;;  %3015 = vst.msk [vmem:[#allocation4 + $0x18] sm:$0x3] %vm3012_vm9, %v5586_v2 }
  0xc3   : > { %v1007_v16 = vsel %vm685_vm2, %v974_v6, 0.0  ;;  %3017 = vst.msk [vmem:[#allocation4 + $0x28] sm:$0x3] %vm3012_vm9, %v5586_v2 }
  0xc4   : > { %v1008_v26 = vadd.f32 %v1007_v16, %v1006_v20  ;;  %3019 = vst.msk [vmem:[#allocation4 + $0x38] sm:$0x3] %vm3012_vm9, %v5586_v2 }
  0xc5   : > { %3021 = vst.msk [vmem:[#allocation4 + $0x48] sm:$0x3] %vm3012_vm9, %v5586_v2 }
  0xc6   : > { %v808_v28 = vpop.f32.mrf.mxu0  ;;  %3023 = vst.msk [vmem:[#allocation4 + $0x58] sm:$0x3] %vm3012_vm9, %v5586_v2 }
  0xc7   : > { %v6203_v3 = vadd.f32 %v6185_v60, %v808_v28  ;;  %3025 = vst.msk [vmem:[#allocation4 + $0x68] sm:$0x3] %vm3012_vm9, %v5586_v2 }
  0xc8   : > { %3027 = vst.msk [vmem:[#allocation4 + $0x78] sm:$0x3] %vm3012_vm9, %v5586_v2 }
  0xc9   : > { %4947 = vmatmul.msk.f32.gmra.mxu0 %vm685_vm2, %v664_v29  ;;  %v975_v12 = vmul.f32 %v6203_v3, %v6203_v3  ;;  %v908_v17 = vsel %vm685_vm2, %v6203_v3, 0.0  ;;  %3029 = vst.msk [vmem:[#allocation4 + $0x88] sm:$0x3] %vm3012_vm9, %v5586_v2 }
  0xca   : > { %v909_v27 = vadd.f32 %v908_v17, %v907_v21  ;;  %3031 = vst.msk [vmem:[#allocation4 + $0x98] sm:$0x3] %vm3012_vm9, %v5586_v2 }
  0xcb   : > { %v1009_v22 = vsel %vm685_vm2, %v975_v12, 0.0  ;;  %3033 = vst.msk [vmem:[#allocation5 + $0x8] sm:$0x3] %vm3012_vm9, %v5586_v2 }
  0xcc   : > { %3037 = vst.msk [vmem:[#allocation5 + $0x28] sm:$0x3] %vm3012_vm9, %v5586_v2 }
  0xcd   : > { %3039 = vst.msk [vmem:[#allocation5 + $0x38] sm:$0x3] %vm3012_vm9, %v5586_v2 }
  0xce   : > { %v811_v30 = vpop.f32.mrf.mxu0  ;;  %3041 = vst.msk [vmem:[#allocation5 + $0x48] sm:$0x3] %vm3012_vm9, %v5586_v2 }
  0xcf   : > { %v6212_v7 = vadd.f32 %v6185_v60, %v811_v30  ;;  %3043 = vst.msk [vmem:[#allocation5 + $0x58] sm:$0x3] %vm3012_vm9, %v5586_v2 }
  0xd0   : > { %3045 = vst.msk [vmem:[#allocation5 + $0x68] sm:$0x3] %vm3012_vm9, %v5586_v2 }
  0xd1   : > { %4948 = vmatmul.msk.f32.gmra.mxu0 %vm685_vm2, %v665_v31  ;;  %v976_v18 = vmul.f32 %v6212_v7, %v6212_v7  ;;  %v910_v23 = vsel %vm685_vm2, %v6212_v7, 0.0  ;;  %3047 = vst.msk [vmem:[#allocation5 + $0x78] sm:$0x3] %vm3012_vm9, %v5586_v2 }
  0xd2   : > { %3049 = vst.msk [vmem:[#allocation5 + $0x88] sm:$0x3] %vm3012_vm9, %v5586_v2 }
  0xd3   : > { %v1011_v28 = vsel %vm685_vm2, %v976_v18, 0.0  ;;  %3051 = vst.msk [vmem:[#allocation5 + $0x98] sm:$0x3] %vm3012_vm9, %v5586_v2 }
  0xd6   : > { %v814_v32 = vpop.f32.mrf.mxu0 }
  0xd7   : > { %v6224_v13 = vadd.f32 %v6185_v60, %v814_v32  ;;  %v1010_v32 = vadd.f32 %v1009_v22, %v1008_v26 }
  0xd9   : > { %4949 = vmatmul.msk.f32.gmra.mxu0 %vm685_vm2, %v666_v33  ;;  %v977_v24 = vmul.f32 %v6224_v13, %v6224_v13  ;;  %v912_v29 = vsel %vm685_vm2, %v6224_v13, 0.0  ;;  %v911_v33 = vadd.f32 %v910_v23, %v909_v27 }
  0xde   : > { %v817_v34 = vpop.f32.mrf.mxu0 }
  0xdf   : > { %v6233_v19 = vadd.f32 %v6185_v60, %v817_v34 }
  0xe1   : > { %4950 = vmatmul.msk.f32.gmra.mxu0 %vm685_vm2, %v667_v35  ;;  %v978_v30 = vmul.f32 %v6233_v19, %v6233_v19  ;;  %v1013_v35 = vsel %vm685_vm2, %v977_v24, 0.0 }
  0xe6   : > { %v820_v36 = vpop.f32.mrf.mxu0 }
  0xe7   : > { %v6241_v25 = vadd.f32 %v6185_v60, %v820_v36  ;;  %v914_v36 = vsel %vm685_vm2, %v6233_v19, 0.0 }
  0xe9   : > { %4951 = vmatmul.msk.f32.gmra.mxu0 %vm685_vm2, %v668_v37  ;;  %v979_v37 = vmul.f32 %v6241_v25, %v6241_v25  ;;  %v916_v44 = vsel %vm685_vm2, %v6241_v25, 0.0 }
  0xeb   : > { %v1017_v1 = vsel %vm685_vm2, %v979_v37, 0.0 }
  0xee   : > { %v6138_v38 = vpop.f32.mrf.mxu0 }
  0xef   : > { %v6250_v31 = vadd.f32 %v6185_v60, %v6138_v38  ;;  %v1015_v38 = vsel %vm685_vm2, %v978_v30, 0.0 }
  0xf1   : > { %4952 = vmatmul.msk.f32.gmra.mxu0 %vm685_vm2, %v669_v39 }
  0xf6   : > { %v6142_v40 = vpop.f32.mrf.mxu0 }
  0xf7   : > { %v6261_v39 = vadd.f32 %v6185_v60, %v6142_v40  ;;  %v918_v40 = vsel %vm685_vm2, %v6250_v31, 0.0 }
  0xf9   : > { %4953 = vmatmul.msk.f32.gmra.mxu0 %vm685_vm2, %v670_v41  ;;  %v1012_v41 = vadd.f32 %v1011_v28, %v1010_v32  ;;  %v981_v4 = vmul.f32 %v6261_v39, %v6261_v39 }
  0xfe   : > { %v6146_v42 = vpop.f32.mrf.mxu0 }
 0x101   : > { %4954 = vmatmul.msk.f32.gmra.mxu0 %vm685_vm2, %v671_v43  ;;  %v913_v43 = vadd.f32 %v912_v29, %v911_v33 }
 0x106   : > { %v6152_v45 = vpop.f32.mrf.mxu0 }
 0x107   : > { %v6279_v5 = vadd.f32 %v6185_v60, %v6152_v45  ;;  %v1021_v45 = vsel %vm685_vm2, %v981_v4, 0.0 }
 0x109   : > { %4955 = vmatmul.msk.f32.gmra.mxu0 %vm685_vm2, %v672_v46  ;;  %v980_v46 = vmul.f32 %v6250_v31, %v6250_v31  ;;  %v983_v18 = vmul.f32 %v6279_v5, %v6279_v5  ;;  %v924_v23 = vsel %vm685_vm2, %v6279_v5, 0.0 }
 0x10b   : > { %v1019_v10 = vsel %vm685_vm2, %v980_v46, 0.0  ;;  %v1025_v29 = vsel %vm685_vm2, %v983_v18, 0.0 }
 0x10e   : > { %v6156_v47 = vpop.f32.mrf.mxu0 }
 0x10f   : > { %v6288_v12 = vadd.f32 %v6185_v60, %v6156_v47 }
 0x111   : > { %4956 = vmatmul.msk.f32.gmra.mxu0 %vm685_vm2, %v673_v48  ;;  %v6270_v48 = vadd.f32 %v6185_v60, %v6146_v42  ;;  %v920_v42 = vsel %vm685_vm2, %v6261_v39, 0.0  ;;  %v984_v24 = vmul.f32 %v6288_v12, %v6288_v12 }
 0x113   : > { %v982_v11 = vmul.f32 %v6270_v48, %v6270_v48  ;;  %v922_v17 = vsel %vm685_vm2, %v6270_v48, 0.0 }
 0x115   : > { %v1023_v47 = vsel %vm685_vm2, %v982_v11, 0.0 }
 0x116   : > { %v6160_v49 = vpop.f32.mrf.mxu0 }
 0x117   : > { %v6299_v20 = vadd.f32 %v6185_v60, %v6160_v49  ;;  %v926_v49 = vsel %vm685_vm2, %v6288_v12, 0.0 }
 0x119   : > { %4957 = vmatmul.msk.f32.gmra.mxu0 %vm685_vm2, %v674_v50  ;;  %v1014_v50 = vadd.f32 %v1013_v35, %v1012_v41  ;;  %v985_v30 = vmul.f32 %v6299_v20, %v6299_v20 }
 0x11b   : > { %v1016_v6 = vadd.f32 %v1015_v38, %v1014_v50 }
 0x11d   : > { %v1018_v14 = vadd.f32 %v1017_v1, %v1016_v6 }
 0x11e   : > { %v6164_v51 = vpop.f32.mrf.mxu0 }
 0x11f   : > { %v1020_v21 = vadd.f32 %v1019_v10, %v1018_v14  ;;  %v6308_v26 = vadd.f32 %v6185_v60, %v6164_v51  ;;  %v928_v51 = vsel %vm685_vm2, %v6299_v20, 0.0 }
 0x121   : > { %4958 = vmatmul.msk.f32.gmra.mxu0 %vm685_vm2, %v675_v52  ;;  %v915_v52 = vadd.f32 %v914_v36, %v913_v43  ;;  %v1022_v27 = vadd.f32 %v1021_v45, %v1020_v21  ;;  %v1027_v36 = vsel %vm685_vm2, %v984_v24, 0.0  ;;  %v986_v37 = vmul.f32 %v6308_v26, %v6308_v26 }
 0x122   : > { %v930_v46 = vsel %vm685_vm2, %v6308_v26, 0.0 }
 0x123   : > { %v917_v8 = vadd.f32 %v916_v44, %v915_v52  ;;  %v1024_v33 = vadd.f32 %v1023_v47, %v1022_v27 }
 0x125   : > { %v919_v15 = vadd.f32 %v918_v40, %v917_v8  ;;  %v1026_v43 = vadd.f32 %v1025_v29, %v1024_v33 }
 0x126   : > { %v6168_v53 = vpop.f32.mrf.mxu0 }
 0x127   : > { %v921_v22 = vadd.f32 %v920_v42, %v919_v15  ;;  %v6317_v32 = vadd.f32 %v6185_v60, %v6168_v53  ;;  %v1029_v53 = vsel %vm685_vm2, %v985_v30, 0.0  ;;  %v1028_v1 = vadd.f32 %v1027_v36, %v1026_v43  ;;  %v899_v43 = vld [vmem:[%s8777_s5 + $0x10] sm:$0xff] }
 0x129   : > { %v923_v28 = vadd.f32 %v922_v17, %v921_v22  ;;  %v987_v50 = vmul.f32 %v6317_v32, %v6317_v32  ;;  %v932_v4 = vsel %vm685_vm2, %v6317_v32, 0.0  ;;  %v1030_v10 = vadd.f32 %v1029_v53, %v1028_v1 }
 0x12b   : > { %v925_v35 = vadd.f32 %v924_v23, %v923_v28  ;;  %v1033_v11 = vsel %vm685_vm2, %v987_v50, 0.0 }
 0x12d   : > { %v927_v38 = vadd.f32 %v926_v49, %v925_v35 }
 0x12e   : > { %v6170_v54 = vpop.f32.mrf.mxu0 }
 0x12f   : > { %v6326_v41 = vadd.f32 %v6185_v60, %v6170_v54  ;;  %v929_v40 = vadd.f32 %v928_v51, %v927_v38  ;;  %v1031_v54 = vsel %vm685_vm2, %v986_v37, 0.0 }
 0x130   : > { %v1032_v45 = vadd.f32 %v1031_v54, %v1030_v10 }
 0x131   : > { %v988_v6 = vmul.f32 %v6326_v41, %v6326_v41  ;;  %v931_v42 = vadd.f32 %v930_v46, %v929_v40  ;;  %v898_v40 = vld [vmem:[%s8777_s5 + $0x8] sm:$0xff] }
 0x132   : > { %v1034_v47 = vadd.f32 %v1033_v11, %v1032_v45 }
 0x133   : > { %v933_v17 = vadd.f32 %v932_v4, %v931_v42  ;;  %v1035_v18 = vsel %vm685_vm2, %v988_v6, 0.0 }
 0x134   : > { %v1036_v49 = vadd.f32 %v1035_v18, %v1034_v47 }
 0x136   : > { %v6172_v55 = vpop.f32.mrf.mxu0 }
 0x137   : > { %v6337_v52 = vadd.f32 %v6185_v60, %v6172_v55  ;;  %v934_v55 = vsel %vm685_vm2, %v6326_v41, 0.0 }
 0x138   : > { %v935_v23 = vadd.f32 %v934_v55, %v933_v17  ;;  %v897_v55 = vld [vmem:[%s8777_s5] sm:$0xff] }
 0x139   : > { %v989_v14 = vmul.f32 %v6337_v52, %v6337_v52 }
 0x13e   : > { %v6174_v56 = vpop.f32.mrf.mxu0 }
 0x13f   : > { %v6346_v8 = vadd.f32 %v6185_v60, %v6174_v56  ;;  %v936_v56 = vsel %vm685_vm2, %v6337_v52, 0.0 }
 0x140   : > { %v937_v30 = vadd.f32 %v936_v56, %v935_v23 }
 0x141   : > { %v990_v21 = vmul.f32 %v6346_v8, %v6346_v8  ;;  %v938_v27 = vsel %vm685_vm2, %v6346_v8, 0.0 }
 0x142   : > { %v939_v37 = vadd.f32 %v938_v27, %v937_v30 }
 0x146   : > { %v6176_v57 = vpop.f32.mrf.mxu0 }
 0x147   : > { %v6355_v15 = vadd.f32 %v6185_v60, %v6176_v57  ;;  %v1037_v57 = vsel %vm685_vm2, %v989_v14, 0.0 }
 0x148   : > { %v1038_v51 = vadd.f32 %v1037_v57, %v1036_v49 }
 0x149   : > { %v991_v28 = vmul.f32 %v6355_v15, %v6355_v15  ;;  %v940_v33 = vsel %vm685_vm2, %v6355_v15, 0.0 }
 0x14a   : > { %v941_v1 = vadd.f32 %v940_v33, %v939_v37 }
 0x14b   : > { %v1041_v38 = vsel %vm685_vm2, %v991_v28, 0.0 }
 0x14e   : > { %v6178_v58 = vpop.f32.mrf.mxu0 }
 0x14f   : > { %v6364_v22 = vadd.f32 %v6185_v60, %v6178_v58  ;;  %v1039_v58 = vsel %vm685_vm2, %v990_v21, 0.0 }
 0x150   : > { %v1040_v50 = vadd.f32 %v1039_v58, %v1038_v51 }
 0x151   : > { %v992_v35 = vmul.f32 %v6364_v22, %v6364_v22  ;;  %v942_v53 = vsel %vm685_vm2, %v6364_v22, 0.0 }
 0x152   : > { %v943_v42 = vadd.f32 %v942_v53, %v941_v1 }
 0x153   : > { %v1043_v54 = vsel %vm685_vm2, %v992_v35, 0.0 }
 0x156   : > { %v6180_v59 = vpop.f32.mrf.mxu0 }
 0x157   : > { %v6373_v29 = vadd.f32 %v6185_v60, %v6180_v59  ;;  %v900_v59 = vld [vmem:[%s8777_s5 + $0x18] sm:$0xff] }
 0x158   : > { %1092 = vmatpush.msrb.mxu1 %v900_v59 }
 0x159   : > { %v993_v46 = vmul.f32 %v6373_v29, %v6373_v29  ;;  %v944_v4 = vsel %vm685_vm2, %v6373_v29, 0.0 }
 0x15a   : > { %1093 = vmatpush.msrb.mxu1 %v899_v43  ;;  %v945_v56 = vadd.f32 %v944_v4, %v943_v42  ;;  %v892_v4 = vpop.f32.mrf.mxu1 }
 0x15b   : > { %v1045_v14 = vsel %vm685_vm2, %v993_v46, 0.0 }
 0x15c   : > { %1094 = vmatpush.msrb.mxu1 %v898_v40 }
 0x15e   : > { %v6187_v61 = vpop.f32.mrf.mxu0  ;;  %1095 = vmatpush.msrb.mxu1 %v897_v55 }
 0x15f   : > { %v6382_v36 = vadd.f32 %v6185_v60, %v6187_v61 }
 0x161   : > { %v994_v6 = vmul.f32 %v6382_v36, %v6382_v36  ;;  %v946_v45 = vsel %vm685_vm2, %v6382_v36, 0.0 }
 0x162   : > { %v947_v28 = vadd.f32 %v946_v45, %v945_v56 }
 0x163   : > { %v1047_v21 = vsel %vm685_vm2, %v994_v6, 0.0 }
 0x166   : > { %v6216_v9 = vpop.f32.mrf.mxu0 }
 0x167   : > { %v6397_v61 = vadd.f32 %v6185_v60, %v6216_v9  ;;  %v1042_v9 = vadd.f32 %v1041_v38, %v1040_v50 }
 0x169   : > { %v995_v17 = vmul.f32 %v6397_v61, %v6397_v61  ;;  %v1044_v18 = vadd.f32 %v1043_v54, %v1042_v9  ;;  %v948_v47 = vsel %vm685_vm2, %v6397_v61, 0.0 }
 0x16a   : > { %v949_v35 = vadd.f32 %v948_v47, %v947_v28 }
 0x16b   : > { %v1046_v27 = vadd.f32 %v1045_v14, %v1044_v18  ;;  %v6467_v18 = vadd.f32 %v6185_v60, %v892_v4 }
 0x16d   : > { %v1048_v33 = vadd.f32 %v1047_v21, %v1046_v27 }
 0x16e   : > { %v6252_v34 = vpop.f32.mrf.mxu0 }
 0x16f   : > { %v6409_v10 = vadd.f32 %v6185_v60, %v6252_v34 }
 0x171   : > { %v996_v23 = vmul.f32 %v6409_v10, %v6409_v10  ;;  %v950_v49 = vsel %vm685_vm2, %v6409_v10, 0.0 }
 0x172   : > { %v951_v38 = vadd.f32 %v950_v49, %v949_v35 }
 0x173   : > { %v1051_v51 = vsel %vm685_vm2, %v996_v23, 0.0 }
 0x176   : > { %v6290_v16 = vpop.f32.mrf.mxu0 }
 0x177   : > { %v6421_v34 = vadd.f32 %v6185_v60, %v6290_v16  ;;  %v1049_v16 = vsel %vm685_vm2, %v995_v17, 0.0 }
 0x178   : > { %v1050_v43 = vadd.f32 %v1049_v16, %v1048_v33  ;;  %v1003_v33 = vmul.f32 %v6467_v18, %v6467_v18 }
 0x179   : > { %v997_v30 = vmul.f32 %v6421_v34, %v6421_v34 }
 0x17a   : > { %v1052_v40 = vadd.f32 %v1051_v51, %v1050_v43  ;;  %v964_v43 = vsel %vm685_vm2, %v6467_v18, 0.0 }
 0x17b   : > { %v1053_v46 = vsel %vm685_vm2, %v997_v30, 0.0 }
 0x17e   : > { %v6328_v44 = vpop.f32.mrf.mxu0 }
 0x17f   : > { %v6430_v57 = vadd.f32 %v6185_v60, %v6328_v44  ;;  %v952_v44 = vsel %vm685_vm2, %v6421_v34, 0.0 }
 0x180   : > { %v953_v54 = vadd.f32 %v952_v44, %v951_v38 }
 0x181   : > { %v998_v37 = vmul.f32 %v6430_v57, %v6430_v57 }
 0x183   : > { %v1055_v6 = vsel %vm685_vm2, %v998_v37, 0.0 }
 0x186   : > { %v880_v24 = vpop.f32.mrf.mxu0 }
 0x187   : > { %v6438_v58 = vadd.f32 %v6185_v60, %v880_v24  ;;  %v954_v24 = vsel %vm685_vm2, %v6430_v57, 0.0 }
 0x188   : > { %v955_v55 = vadd.f32 %v954_v24, %v953_v54 }
 0x189   : > { %v999_v50 = vmul.f32 %v6438_v58, %v6438_v58  ;;  %v956_v9 = vsel %vm685_vm2, %v6438_v58, 0.0 }
 0x18a   : > { %v957_v21 = vadd.f32 %v956_v9, %v955_v55  ;;  %v1073_v9 = vlaneseq }
 0x18b   : > { %v1057_v14 = vsel %vm685_vm2, %v999_v50, 0.0 }
 0x18e   : > { %v883_v11 = vpop.f32.mrf.mxu0 }
 0x18f   : > { %v6446_v59 = vadd.f32 %v6185_v60, %v883_v11  ;;  %v1054_v11 = vadd.f32 %v1053_v46, %v1052_v40 }
 0x191   : > { %v1000_v42 = vmul.f32 %v6446_v59, %v6446_v59  ;;  %v958_v45 = vsel %vm685_vm2, %v6446_v59, 0.0  ;;  %v1056_v56 = vadd.f32 %v1055_v6, %v1054_v11 }
 0x192   : > { %v959_v28 = vadd.f32 %v958_v45, %v957_v21  ;;  %v6486_v45 = vshrl.u32 %v1073_v9, 7  ;;  %v1229_v9 = vld [vmem:[%s8719_s7 + $0x8] sm:$0xff] }
 0x193   : > { %v1059_v47 = vsel %vm685_vm2, %v1000_v42, 0.0  ;;  %v1058_v27 = vadd.f32 %v1057_v14, %v1056_v56 }
 0x194   : > { %8778 = vst [vmem:[#allocation18_spill] sm:$0xff] %v6486_v45  ;;  %vm1075_vm4 = vcmp.eq.s32.totalorder %v6486_v45, 0 }
 0x195   : > { %v1060_v35 = vadd.f32 %v1059_v47, %v1058_v27 }
 0x196   : > { %v886_v53 = vpop.f32.mrf.mxu0 }
 0x197   : > { %v6454_v1 = vadd.f32 %v6185_v60, %v886_v53 }
 0x199   : > { %v1001_v17 = vmul.f32 %v6454_v1, %v6454_v1  ;;  %v960_v23 = vsel %vm685_vm2, %v6454_v1, 0.0 }
 0x19a   : > { %v961_v51 = vadd.f32 %v960_v23, %v959_v28  ;;  %v5588_v28 = vmov 512.0  }
 0x19b   : > { %v1061_v49 = vsel %vm685_vm2, %v1001_v17, 0.0  ;;  %5395 = vrcp.f32 %v5588_v28 }
 0x19c   : > { %v1062_v38 = vadd.f32 %v1061_v49, %v1060_v35  ;;  %v901_v49 = vld [vmem:[%s8718_s6] sm:$0xff] }
 0x19e   : > { %v889_v16 = vpop.f32.mrf.mxu0 }
 0x19f   : > { %v6474_v30 = vadd.f32 %v6185_v60, %v889_v16  ;;  %v1065_v60 = vsel %vm685_vm2, %v1003_v33, 0.0  ;;  %v902_v16 = vld [vmem:[%s8718_s6 + $0x8] sm:$0xff] }
 0x1a0   : > { %1134 = vmatpush.msra.mxu1 %v902_v16 }
 0x1a1   : > { %v962_v44 = vsel %vm685_vm2, %v6474_v30, 0.0  ;;  %v1002_v37 = vmul.f32 %v6474_v30, %v6474_v30  ;;  %v5396_v33 = vpop.eup %5395 }
 0x1a2   : > { %v963_v53 = vadd.f32 %v962_v44, %v961_v51  ;;  %1135 = vmatpush.msra.mxu1 %v901_v49  ;;  %v1101_v35 = vmul.f32 512.0, %v5396_v33  ;;  %vm1105_vm5 = vweird.f32 %v5396_v33 }
 0x1a3   : > { %v1063_v46 = vsel %vm685_vm2, %v1002_v37, 0.0 }
 0x1a4   : > { %v1064_v24 = vadd.f32 %v1063_v46, %v1062_v38  ;;  %v965_v50 = vadd.f32 %v964_v43, %v963_v53  ;;  %v1102_v51 = vsub.f32 1.0, %v1101_v35 }
 0x1a6   : > { %v966_v40 = vrot.slane %v965_v50, 4  ;;  %v1066_v54 = vadd.f32 %v1065_v60, %v1064_v24  ;;  %v1103_v44 = vmul.f32 %v5396_v33, %v1102_v51 }
 0x1a8   : > { %v967_v4 = vadd.f32 %v966_v40, %v965_v50  ;;  %v1067_v6 = vrot.slane %v1066_v54, 4  ;;  %v1104_v37 = vadd.f32 %v5396_v33, %v1103_v44 }
 0x1aa   : > { %v968_v42 = vrot.slane %v967_v4, 2  ;;  %v1068_v11 = vadd.f32 %v1067_v6, %v1066_v54  ;;  %v1106_v43 = vsel %vm1105_vm5, %v5396_v33, %v1104_v37  ;;  %v1230_v6 = vld [vmem:[%s8719_s7 + $0x10] sm:$0xff]  ;;  %v896_v33 = vld [vmem:[%s8780_s25] sm:$0x1]  ;;  %s4925_s25 = sshll.u32 %s637_s24, 6 }
 0x1ab   : > { %s639_s2 = scalar_lea.vmem [#allocation9], %s4925_s25 }
 0x1ac   : > { %v969_v55 = vadd.f32 %v968_v42, %v967_v4  ;;  %v1069_v14 = vrot.slane %v1068_v11, 2  ;;  %v1231_v4 = vld [vmem:[%s8719_s7 + $0x18] sm:$0xff]  ;;  %s4842_s30 = sshll.u32 %s639_s2, 4  ;;  %s4843_s30 = int_to_ptr.vmem [resolvable:$true] %s4842_s30 }
 0x1ad   : > { %5327 = vmatpush.msra.mxu3 %v1231_v4 }
 0x1ae   : > { %v970_v17 = vrot.slane %v969_v55, 1  ;;  %v1070_v56 = vadd.f32 %v1069_v14, %v1068_v11 }
 0x1af   : > { %5328 = vmatpush.msra.mxu3 %v1230_v6 }
 0x1b0   : > { %v1071_v21 = vrot.slane %v1070_v56, 1  ;;  %v971_v47 = vadd.f32 %v970_v17, %v969_v55  ;;  %v1228_v55 = vld [vmem:[%s8719_s7] sm:$0xff] }
 0x1b1   : > { %5329 = vmatpush.msra.mxu3 %v1229_v9 }
 0x1b2   : > { %v1072_v23 = vadd.f32 %v1071_v21, %v1070_v56 }
 0x1b3   : > { %5330 = vmatpush.msra.mxu3 %v1228_v55 }
 0x1b4   : > { %v1076_v27 = vsel %vm1075_vm4, %v971_v47, %v1072_v23  ;;  %v5390_v23 = vld [vmem:[%s8779_s29] ss:$0 sm:$0xff]  ;;  %s5531_s29 = scalar_lea.hbm %s5530_s1, 64 }
 0x1b5   : > { %4960 = vmatmul.msk.f32.vlgmr.msrb.gmra.mxu1 %vm685_vm2, %v1076_v27  ;;  %p5532_p0 = scmp.ne.s32.totalorder %s5530_s1, %s5531_s29  ;;  %p5537_p4 = scmp.lt.s32.totalorder %s5535_s28, %s5531_s29 }
 0x1b6   : > { %1344 = vmatpush.msrb.mxu1 %v1231_v4 }
 0x1b7   : > { %p5533_p1 = pnand %p5532_p0, %p5735_p5  ;;  %p5538_p7 = por %p5537_p4, %p5536_p3 }
 0x1b8   : > { %1345 = vmatpush.msrb.mxu1 %v1230_v6 }
 0x1b9   : > { %p5534_p2 = pneg %p5533_p1 }
 0x1ba   : > { %1346 = vmatpush.msrb.mxu1 %v1229_v9 }
 0x1bb   : > { %p5539_p8 = pnand %p5538_p7, %p5534_p2 }
 0x1bc   : > { %1347 = vmatpush.msrb.mxu1 %v1228_v55 }
 0x232   : > { %v1097_v38 = vpop.f32.mrf.mxu1 }
 0x233   : > { %v1107_v53 = vmul.f32 %v1106_v43, %v1097_v38 }
 0x235   : > { %v1108_v46 = vmul.f32 %v1107_v53, %v1107_v53  ;;  %v1113_v50 = vperm.slane %v1107_v53, 0 }
 0x237   : > { %v1110_v60 = vrot.slane %v1108_v46, 7 }
 0x239   : > { %v1112_v24 = vsub.f32 %v1107_v53, %v1110_v60 }
 0x23b   : > { %v1114_v40 = vperm.slane %v1112_v24, 1 }
 0x23d   : > { %v1115_v54 = vsel %vm1075_vm4, %v1113_v50, %v1114_v40 }
 0x23e   : > { %4961 = vmatmul.msk.f32.vlgmr.msra.gmra.mxu1 %vm1116_vm0, %v1115_v54 }
 0x2bb   : > { %v1137_v42 = vpop.f32.mrf.mxu1 }
 0x2bc   : > { %v1140_v11 = vadd.f32 1e-05, %v1137_v42 }
 0x2be   : > { %5397 = vrsqrt.f32 %v1140_v11  ;;  %vm1147_vm7 = vweird.f32 %v1140_v11 }
 0x2c4   : > { %v5398_v14 = vpop.eup %5397 }
 0x2c5   : > { %v1142_v17 = vmul.f32 %v5398_v14, %v1140_v11  ;;  %vm1148_vm6 = vweird.f32 %v5398_v14 }
 0x2c6   : > { %vm1149_vm8 = vmor %vm1147_vm7, %vm1148_vm6 }
 0x2c7   : > { %v1143_v56 = vmul.f32 %v5398_v14, %v1142_v17  ;;  %v2150_v17 = vld [vmem:[#allocation3 + $0x121] sm:$0xff] }
 0x2c9   : > { %v1144_v21 = vmul.f32 0.5, %v1143_v56 }
 0x2cb   : > { %v1145_v47 = vsub.f32 1.5, %v1144_v21 }
 0x2cd   : > { %v1146_v27 = vmul.f32 %v5398_v14, %v1145_v47 }
 0x2cf   : > { %v1150_v28 = vsel %vm1149_vm8, %v5398_v14, %v1146_v27  ;;  %v2130_v14 = vld [vmem:[#allocation3 + $0x1b0] sm:$0xff] }
 0x2d0   : > { %v1154_v16 = vmul.f32 %v5390_v23, %v1150_v28  ;;  %v2291_v27 = vmax.f32 %v2130_v14, %v2150_v17 }
 0x2d2   : > { %v1156_v49 = vrot.slane %v1154_v16, 1  ;;  %v6519_v51 = vperm.slane %v1154_v16, 1 }
 0x2d4   : > { %v1158_v35 = vmul.f32 %v1156_v49, %v1137_v42  ;;  %v1161_v43 = vmul.f32 %v6519_v51, %v6195_v63  ;;  %v1162_v38 = vmul.f32 %v6519_v51, %v6191_v62  ;;  %v1163_v53 = vmul.f32 %v6519_v51, %v6198_v0 }
 0x2d5   : > { %v1164_v46 = vmul.f32 %v6519_v51, %v6203_v3  ;;  %v1165_v40 = vmul.f32 %v6519_v51, %v6212_v7  ;;  %v1166_v62 = vmul.f32 %v6519_v51, %v6224_v13  ;;  %v1167_v3 = vmul.f32 %v6519_v51, %v6233_v19 }
 0x2d6   : > { %v1159_v44 = vsub.f32 %v896_v33, %v1158_v35  ;;  %v1168_v13 = vmul.f32 %v6519_v51, %v6241_v25  ;;  %v1169_v4 = vmul.f32 %v6519_v51, %v6250_v31  ;;  %v1170_v6 = vmul.f32 %v6519_v51, %v6261_v39 }
 0x2d7   : > { %v1171_v9 = vmul.f32 %v6519_v51, %v6270_v48  ;;  %v1172_v42 = vmul.f32 %v6519_v51, %v6279_v5  ;;  %v1173_v11 = vmul.f32 %v6519_v51, %v6288_v12  ;;  %v1174_v55 = vmul.f32 %v6519_v51, %v6299_v20 }
 0x2d8   : > { %v6521_v37 = vperm.slane %v1159_v44, 0  ;;  %v1175_v12 = vmul.f32 %v6519_v51, %v6308_v26  ;;  %v1176_v20 = vmul.f32 %v6519_v51, %v6317_v32  ;;  %v1177_v26 = vmul.f32 %v6519_v51, %v6326_v41  ;;  %v2307_v41 = vld [vmem:[#allocation3 + $0x1b1] sm:$0xff] }
 0x2d9   : > { %v1178_v23 = vmul.f32 %v6519_v51, %v6337_v52  ;;  %v1179_v28 = vmul.f32 %v6519_v51, %v6346_v8  ;;  %v1180_v52 = vmul.f32 %v6519_v51, %v6355_v15  ;;  %v1181_v33 = vmul.f32 %v6519_v51, %v6364_v22 }
 0x2da   : > { %v1196_v60 = vadd.f32 %v6521_v37, %v1161_v43  ;;  %v1197_v24 = vadd.f32 %v6521_v37, %v1162_v38  ;;  %v1198_v50 = vadd.f32 %v6521_v37, %v1163_v53  ;;  %v1199_v63 = vadd.f32 %v6521_v37, %v1164_v46 }
 0x2db   : > { %v6543_v0 = vadd.f32 %v6521_v37, %v1165_v40  ;;  %v6549_v7 = vadd.f32 %v6521_v37, %v1166_v62  ;;  %v6555_v54 = vadd.f32 %v6521_v37, %v1167_v3  ;;  %v6561_v19 = vadd.f32 %v6521_v37, %v1168_v13 }
 0x2dc   : > { %2058 = vst.msk [vmem:[#allocation3 + $0x11] sm:$0xff] %vm685_vm2, %v1196_v60  ;;  %4962 = vmatmul.msk.f32.vlgmr.msrb.gmra.mxu1 %vm685_vm2, %v1196_v60  ;;  %4963 = vmatmul.msk.f32.vlgmr.msra.gmra.mxu3 %vm685_vm2, %v1197_v24  ;;  %v6568_v25 = vadd.f32 %v6521_v37, %v1169_v4  ;;  %v6575_v31 = vadd.f32 %v6521_v37, %v1170_v6 }
 0x2dd   : > { %2059 = vst.msk [vmem:[#allocation3 + $0x21] sm:$0xff] %vm685_vm2, %v1197_v24  ;;  %v6582_v39 = vadd.f32 %v6521_v37, %v1171_v9  ;;  %v6589_v48 = vadd.f32 %v6521_v37, %v1172_v42  ;;  %v6597_v5 = vadd.f32 %v6521_v37, %v1173_v11  ;;  %v6604_v56 = vadd.f32 %v6521_v37, %v1174_v55 }
 0x2de   : > { %2060 = vst.msk [vmem:[#allocation3 + $0x31] sm:$0xff] %vm685_vm2, %v1198_v50  ;;  %v6611_v21 = vadd.f32 %v6521_v37, %v1175_v12  ;;  %v6618_v47 = vadd.f32 %v6521_v37, %v1176_v20  ;;  %v6625_v32 = vadd.f32 %v6521_v37, %v1177_v26  ;;  %v6632_v16 = vadd.f32 %v6521_v37, %v1178_v23 }
 0x2df   : > { %2061 = vst.msk [vmem:[#allocation3 + $0x41] sm:$0xff] %vm685_vm2, %v1199_v63  ;;  %v6639_v49 = vadd.f32 %v6521_v37, %v1179_v28  ;;  %v6646_v8 = vadd.f32 %v6521_v37, %v1180_v52  ;;  %v1182_v35 = vmul.f32 %v6519_v51, %v6373_v29  ;;  %v2391_v15 = vmax.f32 %v2291_v27, %v2307_v41 }
 0x2e0   : > { %2062 = vst.msk [vmem:[#allocation3 + $0x51] sm:$0xff] %vm685_vm2, %v6543_v0  ;;  %v6654_v44 = vadd.f32 %v6521_v37, %v1181_v33  ;;  %v1183_v22 = vmul.f32 %v6519_v51, %v6382_v36  ;;  %v1184_v29 = vmul.f32 %v6519_v51, %v6397_v61  ;;  %v1185_v46 = vmul.f32 %v6519_v51, %v6409_v10 }
 0x2e1   : > { %2063 = vst.msk [vmem:[#allocation3 + $0x61] sm:$0xff] %vm685_vm2, %v6549_v7  ;;  %v6661_v38 = vadd.f32 %v6521_v37, %v1182_v35  ;;  %v1186_v36 = vmul.f32 %v6519_v51, %v6421_v34  ;;  %v1187_v61 = vmul.f32 %v6519_v51, %v6430_v57  ;;  %v1188_v10 = vmul.f32 %v6519_v51, %v6438_v58 }
 0x2e2   : > { %2064 = vst.msk [vmem:[#allocation3 + $0x71] sm:$0xff] %vm685_vm2, %v6555_v54  ;;  %v6668_v53 = vadd.f32 %v6521_v37, %v1183_v22  ;;  %v6677_v60 = vadd.f32 %v6521_v37, %v1184_v29  ;;  %v1189_v40 = vmul.f32 %v6519_v51, %v6446_v59  ;;  %v1191_v3 = vmul.f32 %v6519_v51, %v6474_v30 }
 0x2e3   : > { %2065 = vst.msk [vmem:[#allocation3 + $0x81] sm:$0xff] %vm685_vm2, %v6561_v19  ;;  %v6691_v34 = vadd.f32 %v6521_v37, %v1186_v36  ;;  %v6698_v57 = vadd.f32 %v6521_v37, %v1187_v61  ;;  %v2507_v62 = vld [vmem:[#allocation3 + $0x11] sm:$0xff]  ;;  %v6705_v58 = vadd.f32 %v6521_v37, %v1188_v10 }
 0x2e4   : > { %4964 = vmatmul.msk.f32.gmra.mxu3 %vm685_vm2, %v1198_v50  ;;  %2076 = vst.msk [vmem:[#allocation3 + $0xa1] sm:$0xff] %vm685_vm2, %v6568_v25  ;;  %v6684_v50 = vadd.f32 %v6521_v37, %v1185_v46  ;;  %v6714_v13 = vadd.f32 %v6521_v37, %v1189_v40  ;;  %v6726_v30 = vadd.f32 %v6521_v37, %v1191_v3 }
 0x2e5   : > { %2077 = vst.msk [vmem:[#allocation3 + $0xb1] sm:$0xff] %vm685_vm2, %v6575_v31  ;;  %v2509_v61 = vld [vmem:[#allocation3 + $0x31] sm:$0xff] }
 0x2e6   : > { %2078 = vst.msk [vmem:[#allocation3 + $0xc1] sm:$0xff] %vm685_vm2, %v6582_v39 }
 0x2e7   : > { %2079 = vst.msk [vmem:[#allocation3 + $0xd1] sm:$0xff] %vm685_vm2, %v6589_v48 }
 0x2e8   : > { %2080 = vst.msk [vmem:[#allocation3 + $0xe1] sm:$0xff] %vm685_vm2, %v6597_v5 }
 0x2e9   : > { %2081 = vst.msk [vmem:[#allocation3 + $0xf1] sm:$0xff] %vm685_vm2, %v6604_v56 }
 0x2ea   : > { %2082 = vst.msk [vmem:[#allocation3 + $0x101] sm:$0xff] %vm685_vm2, %v6611_v21 }
 0x2eb   : > { %2083 = vst.msk [vmem:[#allocation3 + $0x111] sm:$0xff] %vm685_vm2, %v6618_v47  ;;  %v2407_v43 = vld [vmem:[#allocation3 + $0xa0] sm:$0xff] }
 0x2ec   : > { %4965 = vmatmul.msk.f32.gmra.mxu3 %vm685_vm2, %v1199_v63  ;;  %2094 = vst.msk [vmem:[#allocation3 + $0x131] sm:$0xff] %vm685_vm2, %v6625_v32  ;;  %v2491_v24 = vmax.f32 %v2391_v15, %v2407_v43  ;;  %v1190_v63 = vmul.f32 %v6519_v51, %v6454_v1  ;;  %v1192_v1 = vmul.f32 %v6519_v51, %v6467_v18  ;;  %v2408_v17 = vld [vmem:[#allocation3 + $0xb0] sm:$0xff]  ;;  %v2508_v15 = vld [vmem:[#allocation3 + $0x21] sm:$0xff] }
 0x2ed   : > { %2095 = vst.msk [vmem:[#allocation3 + $0x141] sm:$0xff] %vm685_vm2, %v6632_v16 }
 0x2ee   : > { %2096 = vst.msk [vmem:[#allocation3 + $0x151] sm:$0xff] %vm685_vm2, %v6639_v49  ;;  %v2591_v59 = vmax.f32 %v2491_v24, %v2507_v62  ;;  %v6721_v4 = vadd.f32 %v6521_v37, %v1190_v63  ;;  %v6731_v6 = vadd.f32 %v6521_v37, %v1192_v1  ;;  %v2409_v24 = vld [vmem:[#allocation3 + $0xc0] sm:$0xff]  ;;  %v2410_v1 = vld [vmem:[#allocation3 + $0xd0] sm:$0xff] }
 0x2ef   : > { %2097 = vst.msk [vmem:[#allocation3 + $0x161] sm:$0xff] %vm685_vm2, %v6646_v8 }
 0x2f0   : > { %2098 = vst.msk [vmem:[#allocation3 + $0x171] sm:$0xff] %vm685_vm2, %v6654_v44 }
 0x2f1   : > { %2099 = vst.msk [vmem:[#allocation3 + $0x181] sm:$0xff] %vm685_vm2, %v6661_v38 }
 0x2f2   : > { %2100 = vst.msk [vmem:[#allocation3 + $0x191] sm:$0xff] %vm685_vm2, %v6668_v53 }
 0x2f3   : > { %8781 = vst [vmem:[#allocation19_spill] sm:$0xff] %v6698_v57  ;;  %v2151_v51 = vld [vmem:[#allocation3 + $0x131] sm:$0xff] }
 0x2f4   : > { %2101 = vst.msk [vmem:[#allocation3 + $0x1a1] sm:$0xff] %vm685_vm2, %v6677_v60  ;;  %4966 = vmatmul.msk.f32.gmra.mxu3 %vm685_vm2, %v6543_v0  ;;  %v2607_v0 = vld [vmem:[#allocation3 + $0xa1] sm:$0xff] }
 0x2f5   : > { %8782 = vst [vmem:[#allocation20_spill] sm:$0xff] %v6705_v58  ;;  %v2691_v18 = vmax.f32 %v2591_v59, %v2607_v0  ;;  %v6737_v9 = vld [vmem:[#allocation3 + $0x141] sm:$0xff]  ;;  %v6741_v42 = vld [vmem:[#allocation3 + $0x151] sm:$0xff] }
 0x2f6   : > { %2112 = vst.msk [vmem:[#allocation3 + $0x1c1] sm:$0xff] %vm685_vm2, %v6684_v50  ;;  %v6747_v37 = vld [vmem:[#allocation3 + $0x161] sm:$0xff] }
 0x2f7   : > { %8783 = vst [vmem:[#allocation21_spill] sm:$0xff] %v6714_v13  ;;  %v6753_v20 = vld [vmem:[#allocation3 + $0x171] sm:$0xff] }
 0x2f8   : > { %2113 = vst.msk [vmem:[#allocation3 + $0x1d1] sm:$0xff] %vm685_vm2, %v6691_v34 }
 0x2f9   : > { %8784 = vst [vmem:[#allocation22_spill] sm:$0xff] %v6721_v4  ;;  %v6771_v22 = vld [vmem:[#allocation3 + $0x191] sm:$0xff] }
 0x2fa   : > { %2114 = vst.msk [vmem:[#allocation3 + $0x1e1] sm:$0xff] %vm685_vm2, %v6698_v57 }
 0x2fb   : > { %8785 = vst [vmem:[#allocation23_spill] sm:$0xff] %v6726_v30 }
 0x2fc   : > { %2115 = vst.msk [vmem:[#allocation3 + $0x1f1] sm:$0xff] %vm685_vm2, %v6705_v58  ;;  %4967 = vmatmul.msk.f32.gmra.mxu3 %vm685_vm2, %v6549_v7  ;;  %v6761_v7 = vld [vmem:[#allocation3 + $0x181] sm:$0xff] }
 0x2fd   : > { %8786 = vst [vmem:[#allocation24_spill] sm:$0xff] %v6731_v6  ;;  %v2131_v11 = vld [vmem:[#allocation3 + $0x1c0] sm:$0xff] }
 0x2fe   : > { %2116 = vst.msk [vmem:[#allocation3 + $0x201] sm:$0xff] %vm685_vm2, %v6714_v13  ;;  %v2292_v55 = vmax.f32 %v2131_v11, %v2151_v51  ;;  %v2791_v12 = vmax.f32 %v2691_v18, %v2131_v11  ;;  %v2308_v26 = vld [vmem:[#allocation3 + $0x1c1] sm:$0xff]  ;;  %v2513_v13 = vld [vmem:[#allocation3 + $0x71] sm:$0xff] }
 0x2ff   : > { %2117 = vst.msk [vmem:[#allocation3 + $0x211] sm:$0xff] %vm685_vm2, %v6721_v4  ;;  %v6749_v14 = vld [vmem:[#allocation3 + $0x1d0] sm:$0xff]  ;;  %v2611_v58 = vld [vmem:[#allocation3 + $0xe1] sm:$0xff] }
 0x300   : > { %2118 = vst.msk [vmem:[#allocation3 + $0x221] sm:$0xff] %vm685_vm2, %v6726_v30  ;;  %v2293_v23 = vmax.f32 %v6749_v14, %v6737_v9  ;;  %v2392_v28 = vmax.f32 %v2292_v55, %v2308_v26  ;;  %v6763_v41 = vld [vmem:[#allocation3 + $0x1d1] sm:$0xff]  ;;  %v2891_v35 = vmax.f32 %v2791_v12, %v2151_v51  ;;  %v2510_v12 = vld [vmem:[#allocation3 + $0x41] sm:$0xff] }
 0x301   : > { %2119 = vst.msk [vmem:[#allocation3 + $0x231] sm:$0xff] %vm685_vm2, %v6731_v6  ;;  %v6757_v27 = vld [vmem:[#allocation3 + $0x1e0] sm:$0xff] }
 0x302   : > { %v2294_v52 = vmax.f32 %v6757_v27, %v6741_v42  ;;  %v2393_v43 = vmax.f32 %v2293_v23, %v6763_v41  ;;  %v6774_v29 = vld [vmem:[#allocation3 + $0x1e1] sm:$0xff]  ;;  %v2492_v10 = vmax.f32 %v2392_v28, %v2408_v17  ;;  %v2991_v59 = vmax.f32 %v2891_v35, %v2308_v26 }
 0x303   : > { %v6767_v33 = vld [vmem:[#allocation3 + $0x1f0] sm:$0xff]  ;;  %v2411_v17 = vld [vmem:[#allocation3 + $0xe0] sm:$0xff] }
 0x304   : > { %v2295_v46 = vmax.f32 %v6767_v33, %v6747_v37  ;;  %v2394_v40 = vmax.f32 %v2294_v52, %v6774_v29  ;;  %v6783_v63 = vld [vmem:[#allocation3 + $0x1f1] sm:$0xff]  ;;  %v2493_v0 = vmax.f32 %v2393_v43, %v2409_v24  ;;  %v2592_v26 = vmax.f32 %v2492_v10, %v2508_v15  ;;  %3062 = vst.msk [vmem:[#allocation5 + $0x11] sm:$0xff] %vm685_vm2, %v2991_v59 }
 0x305   : > { %v6778_v36 = vld [vmem:[#allocation3 + $0x200] sm:$0xff]  ;;  %v2608_v43 = vld [vmem:[#allocation3 + $0xb1] sm:$0xff]  ;;  %4968 = vmatmul.msk.f32.gmra.mxu3 %vm685_vm2, %v6555_v54 }
 0x306   : > { %v2296_v62 = vmax.f32 %v6778_v36, %v6753_v20  ;;  %v6787_v3 = vld [vmem:[#allocation3 + $0x210] sm:$0xff]  ;;  %v2395_v18 = vmax.f32 %v2295_v46, %v6783_v63  ;;  %v6792_v51 = vld [vmem:[#allocation3 + $0x201] sm:$0xff]  ;;  %v2494_v23 = vmax.f32 %v2394_v40, %v2410_v1  ;;  %v2593_v15 = vmax.f32 %v2493_v0, %v2509_v61 }
 0x307   : > { %v2297_v11 = vmax.f32 %v6787_v3, %v6761_v7  ;;  %v6796_v55 = vld [vmem:[#allocation3 + $0x220] sm:$0xff]  ;;  %v6801_v52 = vld [vmem:[#allocation3 + $0x211] sm:$0xff] }
 0x308   : > { %v2396_v28 = vmax.f32 %v2296_v62, %v6792_v51  ;;  %v2298_v35 = vmax.f32 %v6796_v55, %v6771_v22  ;;  %v2412_v46 = vld [vmem:[#allocation3 + $0xf0] sm:$0xff]  ;;  %v2495_v24 = vmax.f32 %v2395_v18, %v2411_v17  ;;  %v6807_v6 = vld [vmem:[#allocation3 + $0x221] sm:$0xff]  ;;  %v2692_v18 = vmax.f32 %v2592_v26, %v2608_v43 }
 0x309   : > { %v2397_v45 = vmax.f32 %v2297_v11, %v6801_v52  ;;  %v2511_v10 = vld [vmem:[#allocation3 + $0x51] sm:$0xff]  ;;  %v2609_v40 = vld [vmem:[#allocation3 + $0xc1] sm:$0xff]  ;;  %v2594_v0 = vmax.f32 %v2494_v23, %v2510_v12 }
 0x30a   : > { %v2413_v62 = vld [vmem:[#allocation3 + $0x100] sm:$0xff]  ;;  %v2496_v1 = vmax.f32 %v2396_v28, %v2412_v46  ;;  %v2398_v59 = vmax.f32 %v2298_v35, %v6807_v6  ;;  %v2414_v17 = vld [vmem:[#allocation3 + $0x110] sm:$0xff]  ;;  %v2693_v61 = vmax.f32 %v2593_v15, %v2609_v40  ;;  %v2595_v4 = vmax.f32 %v2495_v24, %v2511_v10 }
 0x30b   : > { %v2512_v11 = vld [vmem:[#allocation3 + $0x61] sm:$0xff]  ;;  %v2497_v30 = vmax.f32 %v2397_v45, %v2413_v62  ;;  %v2610_v54 = vld [vmem:[#allocation3 + $0xd1] sm:$0xff]  ;;  %v2792_v28 = vmax.f32 %v2692_v18, %v6749_v14 }
 0x30c   : > { %v2498_v57 = vmax.f32 %v2398_v59, %v2414_v17  ;;  %v2596_v35 = vmax.f32 %v2496_v1, %v2512_v11  ;;  %v2514_v26 = vld [vmem:[#allocation3 + $0x81] sm:$0xff]  ;;  %v2612_v43 = vld [vmem:[#allocation3 + $0xf1] sm:$0xff]  ;;  %v2793_v45 = vmax.f32 %v2693_v61, %v6757_v27  ;;  %v2694_v46 = vmax.f32 %v2594_v0, %v2610_v54 }
 0x30d   : > { %v2695_v12 = vmax.f32 %v2595_v4, %v2611_v58  ;;  %v2597_v23 = vmax.f32 %v2497_v30, %v2513_v13  ;;  %v2613_v24 = vld [vmem:[#allocation3 + $0x101] sm:$0xff]  ;;  %v2614_v40 = vld [vmem:[#allocation3 + $0x111] sm:$0xff]  ;;  %v2892_v14 = vmax.f32 %v2792_v28, %v6737_v9  ;;  %4969 = vmatmul.msk.f32.gmra.mxu3 %vm685_vm2, %v6561_v19 }
 0x30e   : > { %v2696_v15 = vmax.f32 %v2596_v35, %v2612_v43  ;;  %v2598_v10 = vmax.f32 %v2498_v57, %v2514_v26  ;;  %v2794_v62 = vmax.f32 %v2694_v46, %v6767_v33  ;;  %v2893_v58 = vmax.f32 %v2793_v45, %v6741_v42  ;;  %v2714_v57 = vld [vmem:[#allocation3 + $0x230] sm:$0xff]  ;;  %v2814_v59 = vld [vmem:[#allocation3 + $0x1a1] sm:$0xff] }
 0x30f   : > { %v2795_v1 = vmax.f32 %v2695_v12, %v6778_v36  ;;  %v2697_v27 = vmax.f32 %v2597_v23, %v2613_v24  ;;  %v2992_v36 = vmax.f32 %v2892_v14, %v6763_v41  ;;  %v8792_v11 = vld [vmem:[#allocation24_spill] sm:$0xff]  ;;  %v3079_v54 = vld [vmem:[#allocation5 + $0x10] sm:$0xff] }
 0x310   : > { %v2796_v13 = vmax.f32 %v2696_v15, %v6787_v3  ;;  %v2698_v4 = vmax.f32 %v2598_v10, %v2614_v40  ;;  %v2894_v30 = vmax.f32 %v2794_v62, %v6747_v37  ;;  %v2993_v37 = vmax.f32 %v2893_v58, %v6774_v29  ;;  %v3078_v61 = vld [vmem:[#allocation5] sm:$0xff] }
 0x311   : > { %v2797_v9 = vmax.f32 %v2697_v27, %v6796_v55  ;;  %v2895_v33 = vmax.f32 %v2795_v1, %v6753_v20  ;;  %3063 = vst.msk [vmem:[#allocation5 + $0x21] sm:$0xff] %vm685_vm2, %v2992_v36  ;;  %v6979_v40 = vld [vmem:[%s8720_s8] ss:$0 sm:$0xff] }
 0x312   : > { %v2798_v42 = vmax.f32 %v2698_v4, %v2714_v57  ;;  %v2896_v3 = vmax.f32 %v2796_v13, %v6761_v7  ;;  %v2994_v20 = vmax.f32 %v2894_v30, %v6783_v63  ;;  %3064 = vst.msk [vmem:[#allocation5 + $0x31] sm:$0xff] %vm685_vm2, %v2993_v37 }
 0x313   : > { %v2897_v19 = vmax.f32 %v2797_v9, %v6771_v22  ;;  %v2995_v41 = vmax.f32 %v2895_v33, %v6792_v51  ;;  %v2914_v22 = vld [vmem:[#allocation3 + $0x231] sm:$0xff] }
 0x314   : > { %v2898_v55 = vmax.f32 %v2798_v42, %v2814_v59  ;;  %v2996_v7 = vmax.f32 %v2896_v3, %v6801_v52  ;;  %3065 = vst.msk [vmem:[#allocation5 + $0x41] sm:$0xff] %vm685_vm2, %v2994_v20  ;;  %v8791_v51 = vld [vmem:[#allocation23_spill] sm:$0xff] }
 0x315   : > { %v2997_v29 = vmax.f32 %v2897_v19, %v6807_v6  ;;  %4970 = vmatmul.msk.f32.gmra.mxu3 %vm685_vm2, %v6568_v25  ;;  %3066 = vst.msk [vmem:[#allocation5 + $0x51] sm:$0xff] %vm685_vm2, %v2995_v41  ;;  %v8790_v6 = vld [vmem:[#allocation22_spill] sm:$0xff] }
 0x316   : > { %v2998_v18 = vmax.f32 %v2898_v55, %v2914_v22  ;;  %3067 = vst.msk [vmem:[#allocation5 + $0x61] sm:$0xff] %vm685_vm2, %v2996_v7 }
 0x317   : > { %3068 = vst.msk [vmem:[#allocation5 + $0x71] sm:$0xff] %vm685_vm2, %v2997_v29 }
 0x318   : > { %3069 = vst.msk [vmem:[#allocation5 + $0x81] sm:$0xff] %vm685_vm2, %v2998_v18  ;;  %v3080_v35 = vld [vmem:[#allocation5 + $0x20] sm:$0xff] }
 0x319   : > { %v3081_v43 = vld [vmem:[#allocation5 + $0x30] sm:$0xff] }
 0x31b   : > { %v3082_v46 = vld [vmem:[#allocation5 + $0x40] sm:$0xff] }
 0x31c   : > { %v3083_v23 = vld [vmem:[#allocation5 + $0x50] sm:$0xff] }
 0x31d   : > { %4971 = vmatmul.msk.f32.gmra.mxu3 %vm685_vm2, %v6575_v31  ;;  %v3084_v15 = vld [vmem:[#allocation5 + $0x60] sm:$0xff] }
 0x31e   : > { %v3085_v14 = vld [vmem:[#allocation5 + $0x70] sm:$0xff] }
 0x325   : > { %4972 = vmatmul.msk.f32.gmra.mxu3 %vm685_vm2, %v6582_v39 }
 0x32d   : > { %4973 = vmatmul.msk.f32.gmra.mxu3 %vm685_vm2, %v6589_v48 }
 0x335   : > { %4974 = vmatmul.msk.f32.gmra.mxu3 %vm685_vm2, %v6597_v5 }
 0x33d   : > { %4975 = vmatmul.msk.f32.gmra.mxu3 %vm685_vm2, %v6604_v56 }
 0x345   : > { %4976 = vmatmul.msk.f32.gmra.mxu3 %vm685_vm2, %v6611_v21 }
 0x34d   : > { %4977 = vmatmul.msk.f32.gmra.mxu3 %vm685_vm2, %v6618_v47 }
 0x355   : > { %4978 = vmatmul.msk.f32.gmra.mxu3 %vm685_vm2, %v6625_v32  ;;  %v8787_v32 = vld [vmem:[#allocation19_spill] sm:$0xff] }
 0x359   : > { %v1349_v62 = vpop.f32.mrf.mxu1 }
 0x35a   : > { %v6986_v27 = vadd.f32 %v6979_v40, %v1349_v62 }
 0x35c   : > { %v1522_v30 = vmul.f32 %v6986_v27, %v6986_v27  ;;  %v1445_v36 = vsel %vm1116_vm0, %v6986_v27, 0.0 }
 0x35d   : > { %4979 = vmatmul.msk.f32.gmra.mxu3 %vm685_vm2, %v6632_v16 }
 0x35e   : > { %v1554_v20 = vsel %vm1116_vm0, %v1522_v30, 0.0 }
 0x35f   : > { %v1352_v2 = vpop.f32.mrf.mxu3 }
 0x360   : > { %v6983_v1 = vadd.f32 %v6979_v40, %v1352_v2 }
 0x362   : > { %v1523_v4 = vmul.f32 %v6983_v1, %v6983_v1  ;;  %v1446_v9 = vsel %vm1116_vm0, %v6983_v1, 0.0 }
 0x363   : > { %v1447_v55 = vadd.f32 %v1446_v9, %v1445_v36 }
 0x364   : > { %v1555_v3 = vsel %vm1116_vm0, %v1523_v4, 0.0 }
 0x365   : > { %4980 = vmatmul.msk.f32.gmra.mxu3 %vm685_vm2, %v6639_v49  ;;  %v8788_v49 = vld [vmem:[#allocation20_spill] sm:$0xff]  ;;  %v1556_v2 = vadd.f32 %v1555_v3, %v1554_v20 }
 0x367   : > { %v6889_v25 = vpop.f32.mrf.mxu3 }
 0x368   : > { %v6992_v13 = vadd.f32 %v6979_v40, %v6889_v25 }
 0x36a   : > { %v1524_v33 = vmul.f32 %v6992_v13, %v6992_v13  ;;  %v1448_v59 = vsel %vm1116_vm0, %v6992_v13, 0.0 }
 0x36b   : > { %v1449_v25 = vadd.f32 %v1448_v59, %v1447_v55 }
 0x36c   : > { %v1557_v7 = vsel %vm1116_vm0, %v1524_v33, 0.0 }
 0x36d   : > { %4981 = vmatmul.msk.f32.gmra.mxu3 %vm685_vm2, %v6646_v8  ;;  %v3093_v8 = vld [vmem:[%s8726_s14 + $0x18] sm:$0xff] }
 0x36e   : > { %3130 = vmatpush.msrb.mxu3 %v3093_v8 }
 0x36f   : > { %v6893_v31 = vpop.f32.mrf.mxu3 }
 0x370   : > { %v6998_v57 = vadd.f32 %v6979_v40, %v6893_v31 }
 0x372   : > { %v1525_v37 = vmul.f32 %v6998_v57, %v6998_v57  ;;  %v1450_v29 = vsel %vm1116_vm0, %v6998_v57, 0.0 }
 0x373   : > { %v1451_v8 = vadd.f32 %v1450_v29, %v1449_v25 }
 0x374   : > { %v1559_v31 = vsel %vm1116_vm0, %v1525_v37, 0.0 }
 0x375   : > { %4982 = vmatmul.msk.f32.gmra.mxu3 %vm685_vm2, %v6654_v44 }
 0x377   : > { %v6897_v39 = vpop.f32.mrf.mxu3 }
 0x378   : > { %v7008_v42 = vadd.f32 %v6979_v40, %v6897_v39 }
 0x37a   : > { %v1526_v22 = vmul.f32 %v7008_v42, %v7008_v42  ;;  %v1452_v39 = vsel %vm1116_vm0, %v7008_v42, 0.0 }
 0x37d   : > { %4983 = vmatmul.msk.f32.gmra.mxu3 %vm685_vm2, %v6661_v38  ;;  %v8789_v38 = vld [vmem:[#allocation21_spill] sm:$0xff] }
 0x37f   : > { %v6901_v48 = vpop.f32.mrf.mxu3 }
 0x380   : > { %v7019_v19 = vadd.f32 %v6979_v40, %v6901_v48 }
 0x382   : > { %v1527_v48 = vmul.f32 %v7019_v19, %v7019_v19 }
 0x385   : > { %4984 = vmatmul.msk.f32.gmra.mxu3 %vm685_vm2, %v6668_v53  ;;  %v3092_v53 = vld [vmem:[%s8726_s14 + $0x10] sm:$0xff] }
 0x386   : > { %3131 = vmatpush.msrb.mxu3 %v3092_v53 }
 0x388   : > { %v6905_v5 = vpop.f32.mrf.mxu3 }
 0x389   : > { %v7031_v18 = vadd.f32 %v6979_v40, %v6905_v5  ;;  %v1454_v5 = vsel %vm1116_vm0, %v7019_v19, 0.0 }
 0x38b   : > { %v1528_v53 = vmul.f32 %v7031_v18, %v7031_v18 }
 0x38d   : > { %4985 = vmatmul.msk.f32.gmra.mxu3 %vm685_vm2, %v6677_v60  ;;  %v3091_v60 = vld [vmem:[%s8726_s14 + $0x8] sm:$0xff] }
 0x38e   : > { %3132 = vmatpush.msrb.mxu3 %v3091_v60 }
 0x390   : > { %v6909_v56 = vpop.f32.mrf.mxu3 }
 0x395   : > { %4986 = vmatmul.msk.f32.gmra.mxu3 %vm685_vm2, %v6684_v50 }
 0x398   : > { %v6913_v21 = vpop.f32.mrf.mxu3 }
 0x399   : > { %v7049_v60 = vadd.f32 %v6979_v40, %v6913_v21  ;;  %v1565_v21 = vsel %vm1116_vm0, %v1528_v53, 0.0 }
 0x39b   : > { %v1460_v4 = vsel %vm1116_vm0, %v7049_v60, 0.0 }
 0x39d   : > { %4987 = vmatmul.msk.f32.gmra.mxu3 %vm685_vm2, %v6691_v34  ;;  %v3090_v34 = vld [vmem:[%s8726_s14] sm:$0xff] }
 0x39e   : > { %3133 = vmatpush.msrb.mxu3 %v3090_v34 }
 0x3a0   : > { %v6917_v47 = vpop.f32.mrf.mxu3 }
 0x3a5   : > { %4988 = vmatmul.msk.f32.gmra.mxu3 %vm685_vm2, %v8787_v32  ;;  %v7040_v32 = vadd.f32 %v6979_v40, %v6909_v56  ;;  %v1456_v56 = vsel %vm1116_vm0, %v7031_v18, 0.0 }
 0x3a8   : > { %v6921_v16 = vpop.f32.mrf.mxu3 }
 0x3ad   : > { %4989 = vmatmul.msk.f32.gmra.mxu3 %vm685_vm2, %v8788_v49  ;;  %v1558_v49 = vadd.f32 %v1557_v7, %v1556_v2 }
 0x3af   : > { %v1560_v34 = vadd.f32 %v1559_v31, %v1558_v49 }
 0x3b0   : > { %v6928_v44 = vpop.f32.mrf.mxu3 }
 0x3b1   : > { %v7078_v9 = vadd.f32 %v6979_v40, %v6928_v44 }
 0x3b3   : > { %v1533_v29 = vmul.f32 %v7078_v9, %v7078_v9 }
 0x3b5   : > { %4990 = vmatmul.msk.f32.gmra.mxu3 %vm685_vm2, %v8789_v38  ;;  %v1561_v38 = vsel %vm1116_vm0, %v1526_v22, 0.0 }
 0x3b8   : > { %v6938_v50 = vpop.f32.mrf.mxu3 }
 0x3b9   : > { %v7087_v37 = vadd.f32 %v6979_v40, %v6938_v50 }
 0x3bd   : > { %4991 = vmatmul.msk.f32.gmra.mxu3 %vm685_vm2, %v8790_v6  ;;  %v1453_v6 = vadd.f32 %v1452_v39, %v1451_v8  ;;  %v1466_v39 = vsel %vm1116_vm0, %v7078_v9, 0.0 }
 0x3c0   : > { %v6945_v63 = vpop.f32.mrf.mxu3 }
 0x3c1   : > { %v7096_v22 = vadd.f32 %v6979_v40, %v6945_v63  ;;  %v1575_v63 = vsel %vm1116_vm0, %v1533_v29, 0.0 }
 0x3c3   : > { %v1535_v53 = vmul.f32 %v7096_v22, %v7096_v22 }
 0x3c5   : > { %4992 = vmatmul.msk.f32.gmra.mxu3 %vm685_vm2, %v8791_v51  ;;  %v1563_v51 = vsel %vm1116_vm0, %v1527_v48, 0.0  ;;  %v1534_v48 = vmul.f32 %v7087_v37, %v7087_v37 }
 0x3c8   : > { %v6949_v52 = vpop.f32.mrf.mxu3 }
 0x3c9   : > { %v7107_v49 = vadd.f32 %v6979_v40, %v6949_v52  ;;  %v1470_v52 = vsel %vm1116_vm0, %v7096_v22, 0.0 }
 0x3cd   : > { %4993 = vmatmul.msk.f32.gmra.mxu3 %vm685_vm2, %v8792_v11  ;;  %v1529_v11 = vmul.f32 %v7040_v32, %v7040_v32 }
 0x3d0   : > { %v6953_v17 = vpop.f32.mrf.mxu3 }
 0x3d5   : > { %5098 = vmatmul.msk.f32.vlgmr.msrb.gmra.mxu3 %vm685_vm2, %v3078_v61  ;;  %v7058_v61 = vadd.f32 %v6979_v40, %v6917_v47  ;;  %v1567_v47 = vsel %vm1116_vm0, %v1529_v11, 0.0  ;;  %v1536_v11 = vmul.f32 %v7107_v49, %v7107_v49 }
 0x3d7   : > { %v1531_v30 = vmul.f32 %v7058_v61, %v7058_v61 }
 0x3d8   : > { %v6956_v0 = vpop.f32.mrf.mxu3 }
 0x3d9   : > { %v1571_v7 = vsel %vm1116_vm0, %v1531_v30, 0.0 }
 0x3dd   : > { %5099 = vmatmul.msk.f32.gmra.mxu3 %vm685_vm2, %v3079_v54  ;;  %v1562_v54 = vadd.f32 %v1561_v38, %v1560_v34  ;;  %v7116_v34 = vadd.f32 %v6979_v40, %v6953_v17  ;;  %v1472_v17 = vsel %vm1116_vm0, %v7107_v49, 0.0 }
 0x3df   : > { %v1474_v30 = vsel %vm1116_vm0, %v7116_v34, 0.0 }
 0x3e0   : > { %v6959_v28 = vpop.f32.mrf.mxu3 }
 0x3e5   : > { %5100 = vmatmul.msk.f32.gmra.mxu3 %vm685_vm2, %v3080_v35  ;;  %v1455_v35 = vadd.f32 %v1454_v5, %v1453_v6  ;;  %v1468_v5 = vsel %vm1116_vm0, %v7087_v37, 0.0 }
 0x3e7   : > { %v1457_v62 = vadd.f32 %v1456_v56, %v1455_v35  ;;  %v1577_v56 = vsel %vm1116_vm0, %v1534_v48, 0.0 }
 0x3e8   : > { %v6962_v26 = vpop.f32.mrf.mxu3 }
 0x3ed   : > { %5101 = vmatmul.msk.f32.gmra.mxu3 %vm685_vm2, %v3081_v43 }
 0x3f0   : > { %v6965_v45 = vpop.f32.mrf.mxu3 }
 0x3f5   : > { %5102 = vmatmul.msk.f32.gmra.mxu3 %vm685_vm2, %v3082_v46  ;;  %v1458_v46 = vsel %vm1116_vm0, %v7040_v32, 0.0 }
 0x3f6   : > { %v1459_v36 = vadd.f32 %v1458_v46, %v1457_v62  ;;  %v1579_v46 = vsel %vm1116_vm0, %v1535_v53, 0.0 }
 0x3f8   : > { %v6968_v12 = vpop.f32.mrf.mxu3  ;;  %v1461_v55 = vadd.f32 %v1460_v4, %v1459_v36  ;;  %v7143_v36 = vadd.f32 %v6979_v40, %v6962_v26 }
 0x3fd   : > { %5103 = vmatmul.msk.f32.gmra.mxu3 %vm685_vm2, %v3083_v23  ;;  %v1530_v23 = vmul.f32 %v7049_v60, %v7049_v60 }
 0x3ff   : > { %v1569_v3 = vsel %vm1116_vm0, %v1530_v23, 0.0  ;;  %v1537_v23 = vmul.f32 %v7116_v34, %v7116_v34 }
 0x400   : > { %v6971_v24 = vpop.f32.mrf.mxu3 }
 0x405   : > { %5104 = vmatmul.msk.f32.gmra.mxu3 %vm685_vm2, %v3084_v15  ;;  %v7069_v15 = vadd.f32 %v6979_v40, %v6921_v16  ;;  %v1462_v16 = vsel %vm1116_vm0, %v7058_v61, 0.0 }
 0x406   : > { %v1463_v25 = vadd.f32 %v1462_v16, %v1461_v55  ;;  %v7152_v55 = vadd.f32 %v6979_v40, %v6965_v45  ;;  %v1480_v45 = vsel %vm1116_vm0, %v7143_v36, 0.0 }
 0x407   : > { %v1532_v59 = vmul.f32 %v7069_v15, %v7069_v15  ;;  %v1464_v44 = vsel %vm1116_vm0, %v7069_v15, 0.0 }
 0x408   : > { %v6974_v10 = vpop.f32.mrf.mxu3  ;;  %v1465_v38 = vadd.f32 %v1464_v44, %v1463_v25  ;;  %v7161_v25 = vadd.f32 %v6979_v40, %v6968_v12 }
 0x409   : > { %v1573_v50 = vsel %vm1116_vm0, %v1532_v59, 0.0 }
 0x40d   : > { %5105 = vmatmul.msk.f32.gmra.mxu3 %vm685_vm2, %v3085_v14  ;;  %v1564_v14 = vadd.f32 %v1563_v51, %v1562_v54  ;;  %v1467_v51 = vadd.f32 %v1466_v39, %v1465_v38  ;;  %v7125_v54 = vadd.f32 %v6979_v40, %v6956_v0  ;;  %v1581_v0 = vsel %vm1116_vm0, %v1536_v11, 0.0 }
 0x40e   : > { %v7170_v38 = vadd.f32 %v6979_v40, %v6971_v24 }
 0x40f   : > { %v1566_v33 = vadd.f32 %v1565_v21, %v1564_v14  ;;  %v1469_v21 = vadd.f32 %v1468_v5, %v1467_v51  ;;  %v7134_v14 = vadd.f32 %v6979_v40, %v6959_v28  ;;  %v1583_v28 = vsel %vm1116_vm0, %v1537_v23, 0.0 }
 0x410   : > { %v6988_v58 = vpop.f32.mrf.mxu3  ;;  %v1476_v59 = vsel %vm1116_vm0, %v7125_v54, 0.0  ;;  %v1542_v51 = vmul.f32 %v7161_v25, %v7161_v25 }
 0x411   : > { %v1568_v20 = vadd.f32 %v1567_v47, %v1566_v33  ;;  %v1471_v47 = vadd.f32 %v1470_v52, %v1469_v21  ;;  %v1538_v33 = vmul.f32 %v7125_v54, %v7125_v54  ;;  %v1478_v26 = vsel %vm1116_vm0, %v7134_v14, 0.0 }
 0x412   : > { %v7183_v24 = vadd.f32 %v6979_v40, %v6988_v58  ;;  %v1484_v21 = vsel %vm1116_vm0, %v7161_v25, 0.0 }
 0x413   : > { %v1570_v2 = vadd.f32 %v1569_v3, %v1568_v20  ;;  %v1473_v16 = vadd.f32 %v1472_v17, %v1471_v47  ;;  %v1539_v20 = vmul.f32 %v7134_v14, %v7134_v14  ;;  %v1585_v29 = vsel %vm1116_vm0, %v1538_v33, 0.0 }
 0x414   : > { %v1545_v33 = vmul.f32 %v7183_v24, %v7183_v24 }
 0x415   : > { %v1572_v8 = vadd.f32 %v1571_v7, %v1570_v2  ;;  %v1475_v44 = vadd.f32 %v1474_v30, %v1473_v16  ;;  %v1540_v2 = vmul.f32 %v7143_v36, %v7143_v36  ;;  %v1587_v48 = vsel %vm1116_vm0, %v1539_v20, 0.0 }
 0x417   : > { %v1574_v6 = vadd.f32 %v1573_v50, %v1572_v8  ;;  %v1477_v39 = vadd.f32 %v1476_v59, %v1475_v44  ;;  %v1541_v8 = vmul.f32 %v7152_v55, %v7152_v55  ;;  %v1589_v12 = vsel %vm1116_vm0, %v1540_v2, 0.0 }
 0x418   : > { %v7022_v41 = vpop.f32.mrf.mxu3  ;;  %v1490_v44 = vsel %vm1116_vm0, %v7183_v24, 0.0 }
 0x419   : > { %v1576_v35 = vadd.f32 %v1575_v63, %v1574_v6  ;;  %v1479_v5 = vadd.f32 %v1478_v26, %v1477_v39  ;;  %v1482_v6 = vsel %vm1116_vm0, %v7152_v55, 0.0  ;;  %v7197_v58 = vadd.f32 %v6979_v40, %v7022_v41 }
 0x41b   : > { %v1578_v62 = vadd.f32 %v1577_v56, %v1576_v35  ;;  %v7179_v56 = vadd.f32 %v6979_v40, %v6974_v10  ;;  %v1481_v11 = vadd.f32 %v1480_v45, %v1479_v5  ;;  %v1591_v35 = vsel %vm1116_vm0, %v1541_v8, 0.0 }
 0x41c   : > { %v1486_v10 = vsel %vm1116_vm0, %v7170_v38, 0.0  ;;  %v1492_v39 = vsel %vm1116_vm0, %v7197_v58, 0.0 }
 0x41d   : > { %v1580_v3 = vadd.f32 %v1579_v46, %v1578_v62  ;;  %v1543_v46 = vmul.f32 %v7170_v38, %v7170_v38  ;;  %v1483_v23 = vadd.f32 %v1482_v6, %v1481_v11  ;;  %v1593_v62 = vsel %vm1116_vm0, %v1542_v51, 0.0 }
 0x41e   : > { %v1544_v47 = vmul.f32 %v7179_v56, %v7179_v56  ;;  %v1488_v16 = vsel %vm1116_vm0, %v7179_v56, 0.0  ;;  %v5589_v11 = vmov 256.0  }
 0x41f   : > { %v1582_v7 = vadd.f32 %v1581_v0, %v1580_v3  ;;  %v1485_v30 = vadd.f32 %v1484_v21, %v1483_v23  ;;  %v1595_v3 = vsel %vm1116_vm0, %v1543_v46, 0.0  ;;  %5399 = vrcp.f32 %v5589_v11 }
 0x420   : > { %v7060_v43 = vpop.f32.mrf.mxu3  ;;  %v1597_v41 = vsel %vm1116_vm0, %v1544_v47, 0.0 }
 0x421   : > { %v1584_v50 = vadd.f32 %v1583_v28, %v1582_v7  ;;  %v7206_v28 = vadd.f32 %v6979_v40, %v7060_v43  ;;  %v1487_v20 = vadd.f32 %v1486_v10, %v1485_v30  ;;  %v1599_v43 = vsel %vm1116_vm0, %v1545_v33, 0.0 }
 0x423   : > { %v1586_v63 = vadd.f32 %v1585_v29, %v1584_v50  ;;  %v1546_v29 = vmul.f32 %v7197_v58, %v7197_v58  ;;  %v1489_v50 = vadd.f32 %v1488_v16, %v1487_v20 }
 0x425   : > { %v1588_v52 = vadd.f32 %v1587_v48, %v1586_v63  ;;  %v1547_v48 = vmul.f32 %v7206_v28, %v7206_v28  ;;  %v1491_v63 = vadd.f32 %v1490_v44, %v1489_v50  ;;  %v1601_v5 = vsel %vm1116_vm0, %v1546_v29, 0.0  ;;  %v5400_v20 = vpop.eup %5399 }
 0x426   : > { %vm1519_vm10 = vweird.f32 %v5400_v20 }
 0x427   : > { %v1590_v17 = vadd.f32 %v1589_v12, %v1588_v52  ;;  %v1493_v52 = vadd.f32 %v1492_v39, %v1491_v63 }
 0x428   : > { %v7098_v31 = vpop.f32.mrf.mxu3 }
 0x429   : > { %v1592_v0 = vadd.f32 %v1591_v35, %v1590_v17  ;;  %v7215_v26 = vadd.f32 %v6979_v40, %v7098_v31  ;;  %v1494_v31 = vsel %vm1116_vm0, %v7206_v28, 0.0 }
 0x42a   : > { %v1495_v23 = vadd.f32 %v1494_v31, %v1493_v52 }
 0x42b   : > { %v1594_v59 = vadd.f32 %v1593_v62, %v1592_v0  ;;  %v1548_v12 = vmul.f32 %v7215_v26, %v7215_v26  ;;  %v1496_v35 = vsel %vm1116_vm0, %v7215_v26, 0.0 }
 0x42c   : > { %v1497_v33 = vadd.f32 %v1496_v35, %v1495_v23 }
 0x42d   : > { %v1596_v2 = vadd.f32 %v1595_v3, %v1594_v59 }
 0x42f   : > { %v1598_v8 = vadd.f32 %v1597_v41, %v1596_v2 }
 0x430   : > { %v1430_v4 = vpop.f32.mrf.mxu3 }
 0x431   : > { %v7223_v45 = vadd.f32 %v6979_v40, %v1430_v4  ;;  %v1600_v51 = vadd.f32 %v1599_v43, %v1598_v8  ;;  %v1603_v4 = vsel %vm1116_vm0, %v1547_v48, 0.0  ;;  %v1515_v8 = vmul.f32 256.0, %v5400_v20 }
 0x433   : > { %v1549_v21 = vmul.f32 %v7223_v45, %v7223_v45  ;;  %v1602_v17 = vadd.f32 %v1601_v5, %v1600_v51  ;;  %v1498_v10 = vsel %vm1116_vm0, %v7223_v45, 0.0  ;;  %v1516_v35 = vsub.f32 1.0, %v1515_v8 }
 0x434   : > { %v1499_v41 = vadd.f32 %v1498_v10, %v1497_v33 }
 0x435   : > { %v1604_v30 = vadd.f32 %v1603_v4, %v1602_v17  ;;  %v1607_v3 = vsel %vm1116_vm0, %v1549_v21, 0.0 }
 0x438   : > { %v1433_v53 = vpop.f32.mrf.mxu3 }
 0x439   : > { %v7231_v6 = vadd.f32 %v6979_v40, %v1433_v53  ;;  %v1605_v53 = vsel %vm1116_vm0, %v1548_v12, 0.0 }
 0x43b   : > { %v1550_v47 = vmul.f32 %v7231_v6, %v7231_v6  ;;  %v1500_v16 = vsel %vm1116_vm0, %v7231_v6, 0.0 }
 0x43c   : > { %v1501_v43 = vadd.f32 %v1500_v16, %v1499_v41 }
 0x43d   : > { %v1609_v44 = vsel %vm1116_vm0, %v1550_v47, 0.0  ;;  %v1517_v47 = vmul.f32 %v5400_v20, %v1516_v35 }
 0x440   : > { %v1436_v7 = vpop.f32.mrf.mxu3 }
 0x441   : > { %v7239_v46 = vadd.f32 %v6979_v40, %v1436_v7  ;;  %v1606_v7 = vadd.f32 %v1605_v53, %v1604_v30 }
 0x443   : > { %v1551_v59 = vmul.f32 %v7239_v46, %v7239_v46  ;;  %v1502_v29 = vsel %vm1116_vm0, %v7239_v46, 0.0  ;;  %v1608_v50 = vadd.f32 %v1607_v3, %v1606_v7 }
 0x444   : > { %v1503_v5 = vadd.f32 %v1502_v29, %v1501_v43 }
 0x445   : > { %v1611_v39 = vsel %vm1116_vm0, %v1551_v59, 0.0  ;;  %v1610_v63 = vadd.f32 %v1609_v44, %v1608_v50  ;;  %v1518_v59 = vadd.f32 %v5400_v20, %v1517_v47  ;;  %v2917_v47 = vld [vmem:[#allocation6 + $0x88] sm:$0xff] }
 0x446   : > { %2956 = vmatpush.msrb.mxu0 %v2917_v47 }
 0x447   : > { %v1612_v52 = vadd.f32 %v1611_v39, %v1610_v63  ;;  %v7266_v29 = vsel %vm1519_vm10, %v5400_v20, %v1518_v59  ;;  %v1637_v20 = vld [vmem:[%s8721_s9] sm:$0x1] }
 0x448   : > { %v1439_v62 = vpop.f32.mrf.mxu3  ;;  %8793 = vst [vmem:[#allocation19_spill] sm:$0xff] %v7266_v29 }
 0x449   : > { %v7247_v0 = vadd.f32 %v6979_v40, %v1439_v62 }
 0x44b   : > { %v1552_v2 = vmul.f32 %v7247_v0, %v7247_v0  ;;  %v1504_v48 = vsel %vm1116_vm0, %v7247_v0, 0.0 }
 0x44c   : > { %v1505_v11 = vadd.f32 %v1504_v48, %v1503_v5 }
 0x44d   : > { %v1613_v12 = vsel %vm1116_vm0, %v1552_v2, 0.0 }
 0x44e   : > { %v1614_v17 = vadd.f32 %v1613_v12, %v1612_v52 }
 0x450   : > { %v1442_v31 = vpop.f32.mrf.mxu3 }
 0x451   : > { %v1443_v51 = vadd.f32 %v6979_v40, %v1442_v31 }
 0x453   : > { %v1506_v4 = vsel %vm1116_vm0, %v1443_v51, 0.0  ;;  %v1553_v21 = vmul.f32 %v1443_v51, %v1443_v51 }
 0x454   : > { %v1507_v23 = vadd.f32 %v1506_v4, %v1505_v11 }
 0x455   : > { %v1615_v62 = vsel %vm1116_vm0, %v1553_v21, 0.0 }
 0x456   : > { %v1508_v53 = vrot.slane %v1507_v23, 4  ;;  %v1616_v10 = vadd.f32 %v1615_v62, %v1614_v17 }
 0x458   : > { %v1509_v30 = vadd.f32 %v1508_v53, %v1507_v23  ;;  %v1617_v33 = vrot.slane %v1616_v10, 4  ;;  %v1672_v23 = vld [vmem:[%s8722_s10] sm:$0x1] }
 0x45a   : > { %v1510_v3 = vrot.slane %v1509_v30, 2  ;;  %v1618_v16 = vadd.f32 %v1617_v33, %v1616_v10 }
 0x45c   : > { %v1511_v7 = vadd.f32 %v1510_v3, %v1509_v30  ;;  %v1619_v40 = vrot.slane %v1618_v16, 2 }
 0x45e   : > { %v1512_v41 = vrot.slane %v1511_v7, 1  ;;  %v1620_v44 = vadd.f32 %v1619_v40, %v1618_v16 }
 0x460   : > { %v1513_v2 = vadd.f32 %v1512_v41, %v1511_v7  ;;  %v1621_v50 = vrot.slane %v1620_v44, 1 }
 0x462   : > { %v1521_v43 = vmul.f32 %v7266_v29, %v1513_v2  ;;  %v1622_v39 = vadd.f32 %v1621_v50, %v1620_v44 }
 0x464   : > { %v1623_v48 = vmul.f32 %v1622_v39, %v7266_v29  ;;  %v1624_v8 = vmul.f32 %v1521_v43, %v1521_v43 }
 0x466   : > { %v1625_v63 = vsub.f32 %v1623_v48, %v1624_v8 }
 0x468   : > { %v1626_v5 = vadd.f32 1e-05, %v1625_v63 }
 0x46a   : > { %5401 = vrsqrt.f32 %v1626_v5  ;;  %vm1633_vm12 = vweird.f32 %v1626_v5 }
 0x470   : > { %v5402_v31 = vpop.eup %5401 }
 0x471   : > { %v1628_v12 = vmul.f32 %v5402_v31, %v1626_v5  ;;  %vm1634_vm11 = vweird.f32 %v5402_v31 }
 0x472   : > { %vm1635_vm13 = vmor %vm1633_vm12, %vm1634_vm11 }
 0x473   : > { %v1629_v52 = vmul.f32 %v5402_v31, %v1628_v12 }
 0x475   : > { %v1630_v11 = vmul.f32 0.5, %v1629_v52 }
 0x477   : > { %v1631_v4 = vsub.f32 1.5, %v1630_v11 }
 0x479   : > { %v1632_v35 = vmul.f32 %v5402_v31, %v1631_v4 }
 0x47b   : > { %v1636_v21 = vsel %vm1635_vm13, %v5402_v31, %v1632_v35 }
 0x47c   : > { %v1638_v17 = vmul.f32 %v1637_v20, %v1636_v21 }
 0x47e   : > { %v1639_v62 = vperm.slane %v1638_v17, 0  ;;  %v1673_v53 = vmul.f32 %v1638_v17, %v1521_v43 }
 0x480   : > { %v1674_v10 = vsub.f32 %v1672_v23, %v1673_v53  ;;  %v1671_v30 = vmul.f32 %v1639_v62, %v1443_v51  ;;  %v1640_v7 = vmul.f32 %v1639_v62, %v6986_v27  ;;  %v1641_v40 = vmul.f32 %v1639_v62, %v6983_v1 }
 0x481   : > { %v1642_v41 = vmul.f32 %v1639_v62, %v6992_v13  ;;  %v1643_v44 = vmul.f32 %v1639_v62, %v6998_v57  ;;  %v1644_v2 = vmul.f32 %v1639_v62, %v7008_v42  ;;  %v1645_v51 = vmul.f32 %v1639_v62, %v7019_v19 }
 0x482   : > { %v7276_v33 = vperm.slane %v1674_v10, 0  ;;  %v1646_v50 = vmul.f32 %v1639_v62, %v7031_v18  ;;  %v1647_v43 = vmul.f32 %v1639_v62, %v7040_v32  ;;  %v1648_v48 = vmul.f32 %v1639_v62, %v7049_v60 }
 0x483   : > { %v1649_v8 = vmul.f32 %v1639_v62, %v7058_v61  ;;  %v1650_v27 = vmul.f32 %v1639_v62, %v7069_v15  ;;  %v1651_v1 = vmul.f32 %v1639_v62, %v7078_v9  ;;  %v1652_v57 = vmul.f32 %v1639_v62, %v7087_v37 }
 0x484   : > { %v1709_v3 = vadd.f32 %v7276_v33, %v1671_v30  ;;  %v1653_v42 = vmul.f32 %v1639_v62, %v7096_v22  ;;  %v1654_v19 = vmul.f32 %v1639_v62, %v7107_v49  ;;  %v1655_v18 = vmul.f32 %v1639_v62, %v7116_v34 }
 0x485   : > { %v1656_v32 = vmul.f32 %v1639_v62, %v7125_v54  ;;  %v1657_v60 = vmul.f32 %v1639_v62, %v7134_v14  ;;  %v1658_v61 = vmul.f32 %v1639_v62, %v7143_v36  ;;  %v1659_v15 = vmul.f32 %v1639_v62, %v7152_v55 }
 0x486   : > { %v1773_v16 = vmin.f32 %v1709_v3, 0.0  ;;  %vm1741_vm14 = vcmp.gt.f32.partialorder %v1709_v3, 0.0  ;;  %v1660_v9 = vmul.f32 %v1639_v62, %v7161_v25  ;;  %v1661_v37 = vmul.f32 %v1639_v62, %v7170_v38 }
 0x487   : > { %v1662_v22 = vmul.f32 %v1639_v62, %v7179_v56  ;;  %v1663_v49 = vmul.f32 %v1639_v62, %v7183_v24  ;;  %v1664_v34 = vmul.f32 %v1639_v62, %v7197_v58  ;;  %v1665_v54 = vmul.f32 %v1639_v62, %v7206_v28 }
 0x488   : > { %v1836_v59 = vmul.f32 1.442695, %v1773_v16  ;;  %v1666_v14 = vmul.f32 %v1639_v62, %v7215_v26  ;;  %v1667_v36 = vmul.f32 %v1639_v62, %v7223_v45  ;;  %v1668_v55 = vmul.f32 %v1639_v62, %v7231_v6 }
 0x489   : > { %v1669_v25 = vmul.f32 %v1639_v62, %v7239_v46  ;;  %v1670_v5 = vmul.f32 %v1639_v62, %v7247_v0  ;;  %v7312_v38 = vadd.f32 %v7276_v33, %v1640_v7  ;;  %v7315_v56 = vadd.f32 %v7276_v33, %v1641_v40 }
 0x48a   : > { %5403 = vpow2.f32 %v1836_v59  ;;  %v7318_v24 = vadd.f32 %v7276_v33, %v1642_v41  ;;  %v7321_v58 = vadd.f32 %v7276_v33, %v1643_v44  ;;  %v7324_v28 = vadd.f32 %v7276_v33, %v1644_v2 }
 0x48b   : > { %v7327_v26 = vadd.f32 %v7276_v33, %v1645_v51  ;;  %v7330_v45 = vadd.f32 %v7276_v33, %v1646_v50  ;;  %v7333_v6 = vadd.f32 %v7276_v33, %v1647_v43  ;;  %v7336_v46 = vadd.f32 %v7276_v33, %v1648_v48 }
 0x48c   : > { %v7339_v0 = vadd.f32 %v7276_v33, %v1649_v8  ;;  %v7342_v31 = vadd.f32 %v7276_v33, %v1650_v27  ;;  %v7345_v12 = vadd.f32 %v7276_v33, %v1651_v1  ;;  %v7348_v52 = vadd.f32 %v7276_v33, %v1652_v57 }
 0x48d   : > { %v7351_v11 = vadd.f32 %v7276_v33, %v1653_v42  ;;  %v7354_v4 = vadd.f32 %v7276_v33, %v1654_v19  ;;  %v7357_v35 = vadd.f32 %v7276_v33, %v1655_v18  ;;  %v7360_v20 = vadd.f32 %v7276_v33, %v1656_v32 }
 0x48e   : > { %v7363_v21 = vadd.f32 %v7276_v33, %v1657_v60  ;;  %v7366_v17 = vadd.f32 %v7276_v33, %v1658_v61  ;;  %v7369_v23 = vadd.f32 %v7276_v33, %v1659_v15  ;;  %v7372_v62 = vadd.f32 %v7276_v33, %v1660_v9 }
 0x48f   : > { %v7375_v53 = vadd.f32 %v7276_v33, %v1661_v37  ;;  %v7378_v10 = vadd.f32 %v7276_v33, %v1662_v22  ;;  %v7381_v47 = vadd.f32 %v7276_v33, %v1663_v49  ;;  %v7384_v30 = vadd.f32 %v7276_v33, %v1664_v34 }
 0x490   : > { %v5404_v39 = vpop.eup %5403  ;;  %v7390_v16 = vadd.f32 %v7276_v33, %v1666_v14  ;;  %v7393_v59 = vadd.f32 %v7276_v33, %v1667_v36  ;;  %v1742_v7 = vmin.f32 %v7312_v38, 0.0  ;;  %v1743_v40 = vmin.f32 %v7315_v56, 0.0 }
 0x491   : > { %v5025_v13 = vadd.f32 -1.0, %v5404_v39  ;;  %v7398_v41 = vadd.f32 %v7276_v33, %v1668_v55  ;;  %v7401_v44 = vadd.f32 %v7276_v33, %v1669_v25  ;;  %v1744_v2 = vmin.f32 %v7318_v24, 0.0 }
 0x492   : > { %v1745_v51 = vmin.f32 %v7321_v58, 0.0  ;;  %v7406_v50 = vadd.f32 %v7276_v33, %v1670_v5  ;;  %v1746_v43 = vmin.f32 %v7324_v28, 0.0  ;;  %v1747_v39 = vmin.f32 %v7327_v26, 0.0 }
 0x493   : > { %v1901_v63 = vsel %vm1741_vm14, %v1709_v3, %v5025_v13  ;;  %v7387_v3 = vadd.f32 %v7276_v33, %v1665_v54  ;;  %v1748_v48 = vmin.f32 %v7330_v45, 0.0  ;;  %v1749_v8 = vmin.f32 %v7333_v6, 0.0 }
 0x494   : > { %2110 = vst.msk [vmem:[#allocation2 + $0x231] sm:$0xff] %vm1116_vm0, %v1901_v63  ;;  %v1750_v27 = vmin.f32 %v7336_v46, 0.0  ;;  %v1751_v1 = vmin.f32 %v7339_v0, 0.0  ;;  %v1752_v13 = vmin.f32 %v7342_v31, 0.0  ;;  %v1753_v57 = vmin.f32 %v7345_v12, 0.0 }
 0x495   : > { %v1754_v42 = vmin.f32 %v7348_v52, 0.0  ;;  %v1774_v33 = vmul.f32 1.442695, %v1742_v7  ;;  %v1776_v19 = vmul.f32 1.442695, %v1743_v40  ;;  %v1755_v18 = vmin.f32 %v7351_v11, 0.0 }
 0x496   : > { %v1756_v32 = vmin.f32 %v7354_v4, 0.0  ;;  %v1778_v60 = vmul.f32 1.442695, %v1744_v2  ;;  %v1780_v63 = vmul.f32 1.442695, %v1745_v51  ;;  %v1757_v61 = vmin.f32 %v7357_v35, 0.0 }
 0x497   : > { %v1758_v15 = vmin.f32 %v7360_v20, 0.0  ;;  %v1782_v9 = vmul.f32 1.442695, %v1746_v43  ;;  %5405 = vpow2.f32 %v1774_v33  ;;  %vm1710_vm15 = vcmp.gt.f32.partialorder %v7312_v38, 0.0 }
 0x498   : > { %v1759_v37 = vmin.f32 %v7363_v21, 0.0  ;;  %v1760_v22 = vmin.f32 %v7366_v17, 0.0  ;;  %v1784_v49 = vmul.f32 1.442695, %v1747_v39  ;;  %5407 = vpow2.f32 %v1776_v19 }
 0x499   : > { %vm1711_vm1 = vcmp.gt.f32.partialorder %v7315_v56, 0.0  ;;  %vm1712_vm3 = vcmp.gt.f32.partialorder %v7318_v24, 0.0  ;;  %v1761_v34 = vmin.f32 %v7369_v23, 0.0  ;;  %v1762_v54 = vmin.f32 %v7372_v62, 0.0 }
 0x49a   : > { %v1786_v14 = vmul.f32 1.442695, %v1748_v48  ;;  %5409 = vpow2.f32 %v1778_v60  ;;  %vm1713_vm5 = vcmp.gt.f32.partialorder %v7321_v58, 0.0  ;;  %v1763_v36 = vmin.f32 %v7375_v53, 0.0  ;;  %v2160_v48 = vld [vmem:[#allocation6 + $0x18] sm:$0xff] }
 0x49b   : > { %v1764_v55 = vmin.f32 %v7378_v10, 0.0  ;;  %v1788_v25 = vmul.f32 1.442695, %v1749_v8  ;;  %5411 = vpow2.f32 %v1780_v63  ;;  %vm1714_vm6 = vcmp.gt.f32.partialorder %v7324_v28, 0.0  ;;  %2199 = vmatpush.msra.mxu2 %v2160_v48 }
 0x49c   : > { %v1765_v5 = vmin.f32 %v7381_v47, 0.0  ;;  %v1766_v7 = vmin.f32 %v7384_v30, 0.0  ;;  %v1790_v40 = vmul.f32 1.442695, %v1750_v27  ;;  %5413 = vpow2.f32 %v1782_v9 }
 0x49d   : > { %vm1715_vm7 = vcmp.gt.f32.partialorder %v7327_v26, 0.0  ;;  %v1792_v43 = vmul.f32 1.442695, %v1751_v1  ;;  %5415 = vpow2.f32 %v1784_v49  ;;  %v5406_v39 = vpop.eup %5405  ;;  %vm1716_vm8 = vcmp.gt.f32.partialorder %v7330_v45, 0.0 }
 0x49e   : > { %v1794_v33 = vmul.f32 1.442695, %v1752_v13  ;;  %5417 = vpow2.f32 %v1786_v14  ;;  %v5408_v19 = vpop.eup %5407  ;;  %vm1717_vm9 = vcmp.gt.f32.partialorder %v7333_v6, 0.0  ;;  %v1796_v60 = vmul.f32 1.442695, %v1753_v57  ;;  %v2139_v57 = vld [vmem:[#allocation6 + $0x8] sm:$0xff] }
 0x49f   : > { %v1798_v63 = vmul.f32 1.442695, %v1754_v42  ;;  %5419 = vpow2.f32 %v1788_v25  ;;  %vm1718_vm10 = vcmp.gt.f32.partialorder %v7336_v46, 0.0  ;;  %v1800_v1 = vmul.f32 1.442695, %v1755_v18  ;;  %v2159_v42 = vld [vmem:[#allocation6 + $0x10] sm:$0xff]  ;;  %2264 = vmatpush.msra.mxu1 %v2139_v57 }
 0x4a0   : > { %v5410_v9 = vpop.eup %5409  ;;  %v1802_v49 = vmul.f32 1.442695, %v1756_v32  ;;  %5421 = vpow2.f32 %v1790_v40  ;;  %v4994_v51 = vadd.f32 -1.0, %v5406_v39  ;;  %vm1719_vm11 = vcmp.gt.f32.partialorder %v7339_v0, 0.0  ;;  %v2138_v25 = vld [vmem:[#allocation6] sm:$0xff]  ;;  %v2121_v13 = vld [vmem:[#allocation2 + $0x1b0] sm:$0xff]  ;;  %2200 = vmatpush.msra.mxu2 %v2159_v42 }
 0x4a1   : > { %v5412_v2 = vpop.eup %5411  ;;  %5423 = vpow2.f32 %v1792_v43  ;;  %v4995_v14 = vadd.f32 -1.0, %v5408_v19  ;;  %v4996_v8 = vadd.f32 -1.0, %v5410_v9  ;;  %vm1720_vm12 = vcmp.gt.f32.partialorder %v7342_v31, 0.0  ;;  %v2141_v39 = vld [vmem:[#allocation2 + $0x121] sm:$0xff]  ;;  %2265 = vmatpush.msra.mxu1 %v2138_v25 }
 0x4a2   : > { %v5414_v27 = vpop.eup %5413  ;;  %v1804_v18 = vmul.f32 1.442695, %v1757_v61  ;;  %5425 = vpow2.f32 %v1794_v33  ;;  %v4997_v32 = vadd.f32 -1.0, %v5412_v2  ;;  %v1870_v40 = vsel %vm1710_vm15, %v7312_v38, %v4994_v51  ;;  %v2317_v43 = vld [vmem:[#allocation6 + $0x28] sm:$0xff]  ;;  %v2916_v38 = vld [vmem:[#allocation6 + $0x80] sm:$0xff]  ;;  %v2417_v2 = vld [vmem:[#allocation6 + $0x38] sm:$0xff]  ;;  %5026 = vmatmul.msk.f32.vlgmr.msra.gmra.mxu2 %vm1116_vm0, %v2141_v39  ;;  %5034 = vmatmul.msk.f32.vlgmr.msra.gmra.mxu1 %vm1116_vm0, %v2121_v13 }
 0x4a3   : > { %v5416_v19 = vpop.eup %5415  ;;  %vm1721_vm13 = vcmp.gt.f32.partialorder %v7345_v12, 0.0  ;;  %5427 = vpow2.f32 %v1796_v60  ;;  %v4998_v48 = vadd.f32 -1.0, %v5414_v27  ;;  %v1871_v9 = vsel %vm1711_vm1, %v7315_v56, %v4995_v14  ;;  %2049 = vst.msk [vmem:[#allocation2 + $0x11] sm:$0xff] %vm1116_vm0, %v1870_v40  ;;  %2356 = vmatpush.msrb.mxu2 %v2317_v43  ;;  %2957 = vmatpush.msrb.mxu0 %v2916_v38 }
 0x4a4   : > { %v1872_v61 = vsel %vm1712_vm3, %v7318_v24, %v4996_v8  ;;  %v5418_v51 = vpop.eup %5417  ;;  %vm1722_vm14 = vcmp.gt.f32.partialorder %v7348_v52, 0.0  ;;  %v1806_v33 = vmul.f32 1.442695, %v1758_v15  ;;  %5429 = vpow2.f32 %v1798_v63  ;;  %2050 = vst.msk [vmem:[#allocation2 + $0x21] sm:$0xff] %vm1116_vm0, %v1871_v9  ;;  %2456 = vmatpush.msrb.mxu1 %v2417_v2 }
 0x4a5   : > { %v4999_v27 = vadd.f32 -1.0, %v5416_v19  ;;  %v1873_v56 = vsel %vm1713_vm5, %v7321_v58, %v4997_v32  ;;  %v5420_v24 = vpop.eup %5419  ;;  %vm1723_vm15 = vcmp.gt.f32.partialorder %v7351_v11, 0.0  ;;  %v1808_v8 = vmul.f32 1.442695, %v1759_v37  ;;  %2051 = vst.msk [vmem:[#allocation2 + $0x31] sm:$0xff] %vm1116_vm0, %v1872_v61 }
 0x4a6   : > { %5431 = vpow2.f32 %v1800_v1  ;;  %v5000_v60 = vadd.f32 -1.0, %v5418_v51  ;;  %v1874_v15 = vsel %vm1714_vm6, %v7324_v28, %v4998_v48  ;;  %v5422_v58 = vpop.eup %5421  ;;  %vm1724_vm1 = vcmp.gt.f32.partialorder %v7354_v4, 0.0  ;;  %2052 = vst.msk [vmem:[#allocation2 + $0x41] sm:$0xff] %vm1116_vm0, %v1873_v56 }
 0x4a7   : > { %v1810_v63 = vmul.f32 1.442695, %v1760_v22  ;;  %5433 = vpow2.f32 %v1802_v49  ;;  %v5001_v14 = vadd.f32 -1.0, %v5420_v24  ;;  %v1875_v37 = vsel %vm1715_vm7, %v7327_v26, %v4999_v27  ;;  %v5424_v28 = vpop.eup %5423  ;;  %2053 = vst.msk [vmem:[#allocation2 + $0x51] sm:$0xff] %vm1116_vm0, %v1874_v15 }
 0x4a8   : > { %vm1725_vm3 = vcmp.gt.f32.partialorder %v7357_v35, 0.0  ;;  %v1812_v1 = vmul.f32 1.442695, %v1761_v34  ;;  %5435 = vpow2.f32 %v1804_v18  ;;  %v5002_v13 = vadd.f32 -1.0, %v5422_v58  ;;  %v5426_v49 = vpop.eup %5425  ;;  %2054 = vst.msk [vmem:[#allocation2 + $0x61] sm:$0xff] %vm1116_vm0, %v1875_v37 }
 0x4a9   : > { %v1876_v22 = vsel %vm1716_vm8, %v7330_v45, %v5000_v60  ;;  %vm1726_vm5 = vcmp.gt.f32.partialorder %v7360_v20, 0.0  ;;  %v1814_v26 = vmul.f32 1.442695, %v1762_v54  ;;  %5437 = vpow2.f32 %v1806_v33  ;;  %v5428_v42 = vpop.eup %5427 }
 0x4aa   : > { %v5003_v57 = vadd.f32 -1.0, %v5424_v28  ;;  %v1877_v34 = vsel %vm1717_vm9, %v7333_v6, %v5001_v14  ;;  %vm1727_vm6 = vcmp.gt.f32.partialorder %v7363_v21, 0.0  ;;  %v1816_v45 = vmul.f32 1.442695, %v1763_v36  ;;  %2055 = vst.msk [vmem:[#allocation2 + $0x71] sm:$0xff] %vm1116_vm0, %v1876_v22  ;;  %v5430_v18 = vpop.eup %5429 }
 0x4ab   : > { %5439 = vpow2.f32 %v1808_v8  ;;  %v5004_v25 = vadd.f32 -1.0, %v5426_v49  ;;  %v1878_v54 = vsel %vm1718_vm10, %v7336_v46, %v5002_v13  ;;  %vm1728_vm7 = vcmp.gt.f32.partialorder %v7366_v17, 0.0  ;;  %2056 = vst.msk [vmem:[#allocation2 + $0x81] sm:$0xff] %vm1116_vm0, %v1877_v34 }
 0x4ac   : > { %v1818_v6 = vmul.f32 1.442695, %v1764_v55  ;;  %5441 = vpow2.f32 %v1810_v63  ;;  %v5005_v32 = vadd.f32 -1.0, %v5428_v42  ;;  %v1879_v36 = vsel %vm1719_vm11, %v7339_v0, %v5003_v57  ;;  %v5432_v40 = vpop.eup %5431  ;;  %2067 = vst.msk [vmem:[#allocation2 + $0xa1] sm:$0xff] %vm1116_vm0, %v1878_v54 }
 0x4ad   : > { %v1820_v46 = vmul.f32 1.442695, %v1765_v5  ;;  %5443 = vpow2.f32 %v1812_v1  ;;  %v5006_v39 = vadd.f32 -1.0, %v5430_v18  ;;  %v1880_v43 = vsel %vm1720_vm12, %v7342_v31, %v5004_v25  ;;  %v5434_v55 = vpop.eup %5433  ;;  %2068 = vst.msk [vmem:[#allocation2 + $0xb1] sm:$0xff] %vm1116_vm0, %v1879_v36 }
 0x4ae   : > { %v1822_v19 = vmul.f32 1.442695, %v1766_v7  ;;  %5445 = vpow2.f32 %v1814_v26  ;;  %v5007_v0 = vadd.f32 -1.0, %v5432_v40  ;;  %v1881_v48 = vsel %vm1721_vm13, %v7345_v12, %v5005_v32  ;;  %v5436_v5 = vpop.eup %5435  ;;  %2069 = vst.msk [vmem:[#allocation2 + $0xc1] sm:$0xff] %vm1116_vm0, %v1880_v43 }
 0x4af   : > { %v8794_v9 = vmin.f32 %v7387_v3, 0.0  ;;  %5447 = vpow2.f32 %v1816_v45  ;;  %v5008_v31 = vadd.f32 -1.0, %v5434_v55  ;;  %v1882_v38 = vsel %vm1722_vm14, %v7348_v52, %v5006_v39  ;;  %v5438_v7 = vpop.eup %5437  ;;  %2070 = vst.msk [vmem:[#allocation2 + $0xd1] sm:$0xff] %vm1116_vm0, %v1881_v48 }
 0x4b0   : > { %v8795_v2 = vmin.f32 %v7390_v16, 0.0  ;;  %5449 = vpow2.f32 %v1818_v6  ;;  %v5009_v12 = vadd.f32 -1.0, %v5436_v5  ;;  %v1883_v33 = vsel %vm1723_vm15, %v7351_v11, %v5007_v0  ;;  %2071 = vst.msk [vmem:[#allocation2 + $0xe1] sm:$0xff] %vm1116_vm0, %v1882_v38 }
 0x4b1   : > { %v1824_v61 = vmul.f32 1.442695, %v8794_v9  ;;  %v5440_v27 = vpop.eup %5439  ;;  %v8796_v56 = vmin.f32 %v7393_v59, 0.0  ;;  %5451 = vpow2.f32 %v1820_v46  ;;  %v5010_v52 = vadd.f32 -1.0, %v5438_v7  ;;  %2072 = vst.msk [vmem:[#allocation2 + $0xf1] sm:$0xff] %vm1116_vm0, %v1883_v33 }
 0x4b2   : > { %v1826_v51 = vmul.f32 1.442695, %v8795_v2  ;;  %v1884_v8 = vsel %vm1724_vm1, %v7354_v4, %v5008_v31  ;;  %v5442_v60 = vpop.eup %5441  ;;  %v8797_v15 = vmin.f32 %v7398_v41, 0.0  ;;  %5453 = vpow2.f32 %v1822_v19 }
 0x4b3   : > { %v1828_v24 = vmul.f32 1.442695, %v8796_v56  ;;  %v5011_v11 = vadd.f32 -1.0, %v5440_v27  ;;  %v1885_v63 = vsel %vm1725_vm3, %v7357_v35, %v5009_v12  ;;  %v5444_v14 = vpop.eup %5443  ;;  %v8798_v37 = vmin.f32 %v7401_v44, 0.0  ;;  %2073 = vst.msk [vmem:[#allocation2 + $0x101] sm:$0xff] %vm1116_vm0, %v1884_v8 }
 0x4b4   : > { %v1830_v58 = vmul.f32 1.442695, %v8797_v15  ;;  %5455 = vpow2.f32 %v1824_v61  ;;  %v5012_v4 = vadd.f32 -1.0, %v5442_v60  ;;  %v1886_v1 = vsel %vm1726_vm5, %v7360_v20, %v5010_v52  ;;  %v5446_v13 = vpop.eup %5445  ;;  %2074 = vst.msk [vmem:[#allocation2 + $0x111] sm:$0xff] %vm1116_vm0, %v1885_v63  ;;  %v2517_v15 = vld [vmem:[#allocation6 + $0x48] sm:$0xff] }
 0x4b5   : > { %v1832_v28 = vmul.f32 1.442695, %v8798_v37  ;;  %v8799_v22 = vmin.f32 %v7406_v50, 0.0  ;;  %5457 = vpow2.f32 %v1826_v51  ;;  %v5013_v35 = vadd.f32 -1.0, %v5444_v14  ;;  %v5448_v57 = vpop.eup %5447  ;;  %2085 = vst.msk [vmem:[#allocation2 + $0x131] sm:$0xff] %vm1116_vm0, %v1886_v1  ;;  %v5127_v63 = vld [vmem:[%s8726_s14 + $0x28] sm:$0xff] }
 0x4b6   : > { %v1887_v26 = vsel %vm1727_vm6, %v7363_v21, %v5011_v11  ;;  %vm1729_vm8 = vcmp.gt.f32.partialorder %v7369_v23, 0.0  ;;  %5459 = vpow2.f32 %v1828_v24  ;;  %v5014_v34 = vadd.f32 -1.0, %v5446_v13  ;;  %v5450_v42 = vpop.eup %5449  ;;  %v5128_v11 = vld [vmem:[%s8726_s14 + $0x30] sm:$0xff]  ;;  %v5126_v14 = vld [vmem:[%s8726_s14 + $0x20] sm:$0xff]  ;;  %v2617_v1 = vld [vmem:[#allocation6 + $0x58] sm:$0xff] }
 0x4b7   : > { %v1834_v49 = vmul.f32 1.442695, %v8799_v22  ;;  %v1888_v20 = vsel %vm1728_vm7, %v7366_v17, %v5012_v4  ;;  %vm1730_vm9 = vcmp.gt.f32.partialorder %v7372_v62, 0.0  ;;  %5461 = vpow2.f32 %v1830_v58  ;;  %2086 = vst.msk [vmem:[#allocation2 + $0x141] sm:$0xff] %vm1116_vm0, %v1887_v26  ;;  %v5452_v25 = vpop.eup %5451  ;;  %v5129_v58 = vld [vmem:[%s8726_s14 + $0x38] sm:$0xff] }
 0x4b8   : > { %v5015_v45 = vadd.f32 -1.0, %v5448_v57  ;;  %v1889_v21 = vsel %vm1729_vm8, %v7369_v23, %v5013_v35  ;;  %vm1731_vm10 = vcmp.gt.f32.partialorder %v7375_v53, 0.0  ;;  %5463 = vpow2.f32 %v1832_v28  ;;  %2087 = vst.msk [vmem:[#allocation2 + $0x151] sm:$0xff] %vm1116_vm0, %v1888_v20  ;;  %v5454_v17 = vpop.eup %5453  ;;  %3359 = vmatpush.msra.mxu0 %v5129_v58  ;;  %v2299_v35 = vld [vmem:[#allocation2 + $0x1b1] sm:$0xff]  ;;  %v3577_v58 = vld [vmem:[#allocation5 + $0x20] sm:$0xff] }
 0x4b9   : > { %v5016_v54 = vadd.f32 -1.0, %v5450_v42  ;;  %v1890_v18 = vsel %vm1730_vm9, %v7372_v62, %v5014_v34  ;;  %vm1732_vm11 = vcmp.gt.f32.partialorder %v7378_v10, 0.0  ;;  %5465 = vpow2.f32 %v1834_v49  ;;  %2088 = vst.msk [vmem:[#allocation2 + $0x161] sm:$0xff] %vm1116_vm0, %v1889_v21  ;;  %v2399_v34 = vld [vmem:[#allocation2 + $0xa0] sm:$0xff]  ;;  %v2906_v20 = vld [vmem:[#allocation2 + $0x231] sm:$0xff] }
 0x4ba   : > { %v5017_v6 = vadd.f32 -1.0, %v5452_v25  ;;  %v1891_v32 = vsel %vm1731_vm10, %v7375_v53, %v5015_v45  ;;  %v5456_v23 = vpop.eup %5455  ;;  %vm1733_vm12 = vcmp.gt.f32.partialorder %v7381_v47, 0.0  ;;  %v5018_v36 = vadd.f32 -1.0, %v5454_v17  ;;  %2089 = vst.msk [vmem:[#allocation2 + $0x171] sm:$0xff] %vm1116_vm0, %v1890_v18  ;;  %3360 = vmatpush.msra.mxu0 %v5128_v11  ;;  %v2516_v42 = vld [vmem:[#allocation6 + $0x40] sm:$0xff]  ;;  %v2400_v21 = vld [vmem:[#allocation2 + $0xb0] sm:$0xff] }
 0x4bb   : > { %v1892_v40 = vsel %vm1732_vm11, %v7378_v10, %v5016_v54  ;;  %v5458_v62 = vpop.eup %5457  ;;  %vm1734_vm13 = vcmp.gt.f32.partialorder %v7384_v30, 0.0  ;;  %v5019_v46 = vadd.f32 -1.0, %v5456_v23  ;;  %2090 = vst.msk [vmem:[#allocation2 + $0x181] sm:$0xff] %vm1116_vm0, %v1891_v32  ;;  %vm1735_vm14 = vcmp.gt.f32.partialorder %v7387_v3, 0.0  ;;  %v3232_v45 = vld [vmem:[#allocation5 + $0x1] sm:$0xff]  ;;  %v2616_v25 = vld [vmem:[#allocation6 + $0x50] sm:$0xff] }
 0x4bc   : > { %v1893_v39 = vsel %vm1733_vm12, %v7381_v47, %v5017_v6  ;;  %v5460_v43 = vpop.eup %5459  ;;  %v5020_v53 = vadd.f32 -1.0, %v5458_v62  ;;  %v1894_v55 = vsel %vm1734_vm13, %v7384_v30, %v5018_v36  ;;  %2091 = vst.msk [vmem:[#allocation2 + $0x191] sm:$0xff] %vm1116_vm0, %v1892_v40  ;;  %vm1736_vm15 = vcmp.gt.f32.partialorder %v7390_v16, 0.0  ;;  %v7582_v48 = vld [vmem:[#allocation2 + $0x131] sm:$0xff]  ;;  %v2316_v30 = vld [vmem:[#allocation6 + $0x20] sm:$0xff]  ;;  %3361 = vmatpush.msra.mxu0 %v5127_v63  ;;  %v2717_v36 = vld [vmem:[#allocation6 + $0x68] sm:$0xff] }
 0x4bd   : > { %v5462_v19 = vpop.eup %5461  ;;  %v5021_v10 = vadd.f32 -1.0, %v5460_v43  ;;  %v1895_v0 = vsel %vm1735_vm14, %v7387_v3, %v5019_v46  ;;  %2092 = vst.msk [vmem:[#allocation2 + $0x1a1] sm:$0xff] %vm1116_vm0, %v1893_v39  ;;  %vm1737_vm1 = vcmp.gt.f32.partialorder %v7393_v59, 0.0  ;;  %5027 = vmatmul.msk.f32.gmra.mxu2 %vm1116_vm0, %v7582_v48  ;;  %vm1738_vm3 = vcmp.gt.f32.partialorder %v7398_v41, 0.0  ;;  %v2401_v54 = vld [vmem:[#allocation2 + $0xc0] sm:$0xff]  ;;  %v3233_v18 = vld [vmem:[#allocation5 + $0x11] sm:$0xff] }
 0x4be   : > { %v5464_v47 = vpop.eup %5463  ;;  %v5022_v5 = vadd.f32 -1.0, %v5462_v19  ;;  %v1896_v9 = vsel %vm1736_vm15, %v7390_v16, %v5020_v53  ;;  %2103 = vst.msk [vmem:[#allocation2 + $0x1c1] sm:$0xff] %vm1116_vm0, %v1894_v55  ;;  %2357 = vmatpush.msrb.mxu2 %v2316_v30  ;;  %vm1739_vm5 = vcmp.gt.f32.partialorder %v7401_v44, 0.0  ;;  %vm1740_vm6 = vcmp.gt.f32.partialorder %v7406_v50, 0.0  ;;  %3362 = vmatpush.msra.mxu0 %v5126_v14  ;;  %v2402_v17 = vld [vmem:[#allocation2 + $0xd0] sm:$0xff]  ;;  %v7683_v6 = vld [vmem:[#allocation5 + $0x21] sm:$0xff] }
 0x4bf   : > { %v5466_v61 = vpop.eup %5465  ;;  %v5023_v3 = vadd.f32 -1.0, %v5464_v47  ;;  %v1897_v31 = vsel %vm1737_vm1, %v7393_v59, %v5021_v10  ;;  %2104 = vst.msk [vmem:[#allocation2 + $0x1d1] sm:$0xff] %vm1116_vm0, %v1895_v0  ;;  %v7616_v33 = vld [vmem:[#allocation2 + $0x151] sm:$0xff]  ;;  %v2403_v32 = vld [vmem:[#allocation2 + $0xe0] sm:$0xff]  ;;  %v5175_v46 = vld [vmem:[%s8726_s14 + $0x68] sm:$0xff] }
 0x4c0   : > { %v5024_v38 = vadd.f32 -1.0, %v5466_v61  ;;  %v1898_v16 = vsel %vm1738_vm3, %v7398_v41, %v5022_v5  ;;  %2105 = vst.msk [vmem:[#allocation2 + $0x1e1] sm:$0xff] %vm1116_vm0, %v1896_v9  ;;  %v7607_v41 = vld [vmem:[#allocation2 + $0x141] sm:$0xff]  ;;  %2556 = vmatpush.msra.mxu2 %v2517_v15  ;;  %v7689_v23 = vld [vmem:[#allocation5 + $0x31] sm:$0xff] }
 0x4c1   : > { %v1899_v7 = vsel %vm1739_vm5, %v7401_v44, %v5023_v3  ;;  %2106 = vst.msk [vmem:[#allocation2 + $0x1f1] sm:$0xff] %vm1116_vm0, %v1897_v31  ;;  %v2416_v44 = vld [vmem:[#allocation6 + $0x30] sm:$0xff]  ;;  %v7625_v24 = vld [vmem:[#allocation2 + $0x161] sm:$0xff]  ;;  %v5177_v40 = vld [vmem:[%s8726_s14 + $0x78] sm:$0xff] }
 0x4c2   : > { %v1900_v2 = vsel %vm1740_vm6, %v7406_v50, %v5024_v38  ;;  %2107 = vst.msk [vmem:[#allocation2 + $0x201] sm:$0xff] %vm1116_vm0, %v1898_v16  ;;  %2457 = vmatpush.msrb.mxu1 %v2416_v44  ;;  %v7631_v60 = vld [vmem:[#allocation2 + $0x171] sm:$0xff]  ;;  %v7655_v4 = vld [vmem:[#allocation2 + $0x181] sm:$0xff]  ;;  %2557 = vmatpush.msra.mxu2 %v2516_v42 }
 0x4c3   : > { %2108 = vst.msk [vmem:[#allocation2 + $0x211] sm:$0xff] %vm1116_vm0, %v1899_v7  ;;  %v7664_v49 = vld [vmem:[#allocation2 + $0x191] sm:$0xff]  ;;  %v5174_v39 = vld [vmem:[%s8726_s14 + $0x60] sm:$0xff] }
 0x4c4   : > { %2109 = vst.msk [vmem:[#allocation2 + $0x221] sm:$0xff] %vm1116_vm0, %v1900_v2  ;;  %2656 = vmatpush.msra.mxu1 %v2617_v1  ;;  %v5176_v62 = vld [vmem:[%s8726_s14 + $0x70] sm:$0xff]  ;;  %v7707_v53 = vld [vmem:[#allocation5 + $0x41] sm:$0xff]  ;;  %v2817_v55 = vld [vmem:[#allocation6 + $0x78] sm:$0xff] }
 0x4c5   : > { %v7602_v59 = vld [vmem:[#allocation2 + $0x1c0] sm:$0xff]  ;;  %5028 = vmatmul.msk.f32.gmra.mxu2 %vm1116_vm0, %v7607_v41  ;;  %v2404_v43 = vld [vmem:[#allocation2 + $0xf0] sm:$0xff] }
 0x4c6   : > { %v2899_v51 = vld [vmem:[#allocation2 + $0x1c1] sm:$0xff]  ;;  %5035 = vmatmul.msk.f32.gmra.mxu1 %vm1116_vm0, %v7602_v59  ;;  %v7611_v50 = vld [vmem:[#allocation2 + $0x1d0] sm:$0xff] }
 0x4c7   : > { %5090 = vmatmul.msk.f32.vlgmr.msrb.gmra.mxu0 %vm1116_vm0, %v2899_v51  ;;  %v2900_v12 = vld [vmem:[#allocation2 + $0x1d1] sm:$0xff]  ;;  %v7620_v27 = vld [vmem:[#allocation2 + $0x1e0] sm:$0xff]  ;;  %2657 = vmatpush.msra.mxu1 %v2616_v25 }
 0x4c8   : > { %v2901_v56 = vld [vmem:[#allocation2 + $0x1e1] sm:$0xff]  ;;  %v7629_v52 = vld [vmem:[#allocation2 + $0x1f0] sm:$0xff]  ;;  %3703 = vmatpush.msrb.mxu0 %v5177_v40 }
 0x4c9   : > { %v2902_v8 = vld [vmem:[#allocation2 + $0x1f1] sm:$0xff]  ;;  %v7650_v37 = vld [vmem:[#allocation2 + $0x200] sm:$0xff] }
 0x4ca   : > { %v2903_v28 = vld [vmem:[#allocation2 + $0x201] sm:$0xff]  ;;  %v7659_v13 = vld [vmem:[#allocation2 + $0x210] sm:$0xff]  ;;  %3704 = vmatpush.msrb.mxu0 %v5176_v62 }
 0x4cb   : > { %v2904_v22 = vld [vmem:[#allocation2 + $0x211] sm:$0xff]  ;;  %v7668_v26 = vld [vmem:[#allocation2 + $0x220] sm:$0xff] }
 0x4cc   : > { %v2905_v57 = vld [vmem:[#allocation2 + $0x221] sm:$0xff]  ;;  %3705 = vmatpush.msrb.mxu0 %v5175_v46  ;;  %v7713_v10 = vld [vmem:[#allocation5 + $0x51] sm:$0xff] }
 0x4cd   : > { %5029 = vmatmul.msk.f32.gmra.mxu2 %vm1116_vm0, %v7616_v33  ;;  %v2405_v19 = vld [vmem:[#allocation2 + $0x100] sm:$0xff]  ;;  %v2406_v0 = vld [vmem:[#allocation2 + $0x110] sm:$0xff] }
 0x4ce   : > { %5036 = vmatmul.msk.f32.gmra.mxu1 %vm1116_vm0, %v7611_v50  ;;  %3706 = vmatpush.msrb.mxu0 %v5174_v39  ;;  %v7719_v47 = vld [vmem:[#allocation5 + $0x61] sm:$0xff]  ;;  %v2499_v5 = vld [vmem:[#allocation2 + $0x11] sm:$0xff] }
 0x4cf   : > { %5091 = vmatmul.msk.f32.gmra.mxu0 %vm1116_vm0, %v2900_v12  ;;  %v2599_v61 = vld [vmem:[#allocation2 + $0xa1] sm:$0xff]  ;;  %v7729_v3 = vld [vmem:[#allocation5 + $0x71] sm:$0xff] }
 0x4d0   : > { %v2500_v31 = vld [vmem:[#allocation2 + $0x21] sm:$0xff]  ;;  %v2600_v2 = vld [vmem:[#allocation2 + $0xb1] sm:$0xff] }
 0x4d1   : > { %v2716_v38 = vld [vmem:[#allocation6 + $0x60] sm:$0xff]  ;;  %v2501_v44 = vld [vmem:[#allocation2 + $0x31] sm:$0xff] }
 0x4d2   : > { %v2601_v15 = vld [vmem:[#allocation2 + $0xc1] sm:$0xff]  ;;  %v3578_v1 = vld [vmem:[#allocation5 + $0x30] sm:$0xff] }
 0x4d3   : > { %v2502_v11 = vld [vmem:[#allocation2 + $0x41] sm:$0xff]  ;;  %v2505_v40 = vld [vmem:[#allocation2 + $0x71] sm:$0xff] }
 0x4d4   : > { %v2504_v42 = vld [vmem:[#allocation2 + $0x61] sm:$0xff] }
 0x4d5   : > { %5030 = vmatmul.msk.f32.gmra.mxu2 %vm1116_vm0, %v7625_v24 }
 0x4d6   : > { %5037 = vmatmul.msk.f32.gmra.mxu1 %vm1116_vm0, %v7620_v27 }
 0x4d7   : > { %5092 = vmatmul.msk.f32.gmra.mxu0 %vm1116_vm0, %v2901_v56 }
 0x4dd   : > { %5031 = vmatmul.msk.f32.gmra.mxu2 %vm1116_vm0, %v7631_v60 }
 0x4de   : > { %5038 = vmatmul.msk.f32.gmra.mxu1 %vm1116_vm0, %v7629_v52 }
 0x4df   : > { %5093 = vmatmul.msk.f32.gmra.mxu0 %vm1116_vm0, %v2902_v8 }
 0x4e5   : > { %5032 = vmatmul.msk.f32.gmra.mxu2 %vm1116_vm0, %v7655_v4 }
 0x4e6   : > { %5039 = vmatmul.msk.f32.gmra.mxu1 %vm1116_vm0, %v7650_v37 }
 0x4e7   : > { %5094 = vmatmul.msk.f32.gmra.mxu0 %vm1116_vm0, %v2903_v28 }
 0x4ed   : > { %5033 = vmatmul.msk.f32.gmra.mxu2 %vm1116_vm0, %v7664_v49 }
 0x4ee   : > { %5040 = vmatmul.msk.f32.gmra.mxu1 %vm1116_vm0, %v7659_v13 }
 0x4ef   : > { %5095 = vmatmul.msk.f32.gmra.mxu0 %vm1116_vm0, %v2904_v22 }
 0x4f5   : > { %5042 = vmatmul.msk.f32.vlgmr.msrb.gmra.mxu2 %vm1116_vm0, %v2299_v35 }
 0x4f6   : > { %5041 = vmatmul.msk.f32.gmra.mxu1 %vm1116_vm0, %v7668_v26  ;;  %2756 = vmatpush.msrb.mxu2 %v2717_v36  ;;  %v3580_v36 = vld [vmem:[#allocation5 + $0x50] sm:$0xff] }
 0x4f7   : > { %5096 = vmatmul.msk.f32.gmra.mxu0 %vm1116_vm0, %v2905_v57 }
 0x4f8   : > { %2757 = vmatpush.msrb.mxu2 %v2716_v38  ;;  %v3582_v38 = vld [vmem:[#allocation5 + $0x70] sm:$0xff] }
 0x4fd   : > { %5043 = vmatmul.msk.f32.gmra.mxu2 %vm1116_vm0, %v2899_v51  ;;  %v3576_v51 = vld [vmem:[#allocation5 + $0x10] sm:$0xff] }
 0x4fe   : > { %5050 = vmatmul.msk.f32.vlgmr.msrb.gmra.mxu1 %vm1116_vm0, %v2399_v34  ;;  %v2603_v34 = vld [vmem:[#allocation2 + $0xe1] sm:$0xff] }
 0x4ff   : > { %5097 = vmatmul.msk.f32.gmra.mxu0 %vm1116_vm0, %v2906_v20  ;;  %2856 = vmatpush.msrb.mxu1 %v2817_v55  ;;  %v3579_v20 = vld [vmem:[#allocation5 + $0x40] sm:$0xff] }
 0x500   : > { %v3581_v55 = vld [vmem:[#allocation5 + $0x60] sm:$0xff] }
 0x505   : > { %5044 = vmatmul.msk.f32.gmra.mxu2 %vm1116_vm0, %v2900_v12  ;;  %v2816_v12 = vld [vmem:[#allocation6 + $0x70] sm:$0xff] }
 0x506   : > { %5051 = vmatmul.msk.f32.gmra.mxu1 %vm1116_vm0, %v2400_v21  ;;  %v5224_v21 = vld [vmem:[%s8726_s14 + $0xb0] sm:$0xff] }
 0x507   : > { %5130 = vmatmul.msk.f32.vlgmr.msra.gmra.mxu0 %vm685_vm2, %v3232_v45  ;;  %2857 = vmatpush.msrb.mxu1 %v2816_v12  ;;  %v5225_v45 = vld [vmem:[%s8726_s14 + $0xb8] sm:$0xff] }
 0x508   : > { %4047 = vmatpush.msra.mxu0 %v5225_v45 }
 0x50a   : > { %4048 = vmatpush.msra.mxu0 %v5224_v21  ;;  %v5270_v21 = vld [vmem:[%s8726_s14 + $0xe0] sm:$0xff] }
 0x50d   : > { %5045 = vmatmul.msk.f32.gmra.mxu2 %vm1116_vm0, %v2901_v56 }
 0x50e   : > { %5052 = vmatmul.msk.f32.gmra.mxu1 %vm1116_vm0, %v2401_v54 }
 0x50f   : > { %5131 = vmatmul.msk.f32.gmra.mxu0 %vm685_vm2, %v3233_v18  ;;  %v5223_v18 = vld [vmem:[%s8726_s14 + $0xa8] sm:$0xff] }
 0x510   : > { %4049 = vmatpush.msra.mxu0 %v5223_v18  ;;  %v7882_v18 = vld [vmem:[#allocation5 + $0x52] sm:$0xff] }
 0x511   : > { %8804 = vst [vmem:[#allocation24_spill] sm:$0xff] %v7882_v18 }
 0x515   : > { %5046 = vmatmul.msk.f32.gmra.mxu2 %vm1116_vm0, %v2902_v8 }
 0x516   : > { %5053 = vmatmul.msk.f32.gmra.mxu1 %vm1116_vm0, %v2402_v17  ;;  %v5222_v17 = vld [vmem:[%s8726_s14 + $0xa0] sm:$0xff] }
 0x517   : > { %5132 = vmatmul.msk.f32.gmra.mxu0 %vm685_vm2, %v7683_v6 }
 0x518   : > { %4050 = vmatpush.msra.mxu0 %v5222_v17 }
 0x51d   : > { %5047 = vmatmul.msk.f32.gmra.mxu2 %vm1116_vm0, %v2903_v28  ;;  %v2602_v28 = vld [vmem:[#allocation2 + $0xd1] sm:$0xff] }
 0x51e   : > { %5054 = vmatmul.msk.f32.gmra.mxu1 %vm1116_vm0, %v2403_v32  ;;  %v2604_v32 = vld [vmem:[#allocation2 + $0xf1] sm:$0xff] }
 0x51f   : > { %5133 = vmatmul.msk.f32.gmra.mxu0 %vm685_vm2, %v7689_v23  ;;  %v7727_v30 = vpop.f32.mrf.mxu1 }
 0x525   : > { %5048 = vmatmul.msk.f32.gmra.mxu2 %vm1116_vm0, %v2904_v22  ;;  %v7725_v9 = vpop.f32.mrf.mxu2  ;;  %v2503_v22 = vld [vmem:[#allocation2 + $0x51] sm:$0xff] }
 0x526   : > { %5055 = vmatmul.msk.f32.gmra.mxu1 %vm1116_vm0, %v2404_v43  ;;  %v2605_v43 = vld [vmem:[#allocation2 + $0x101] sm:$0xff] }
 0x527   : > { %5134 = vmatmul.msk.f32.gmra.mxu0 %vm685_vm2, %v7707_v53 }
 0x52d   : > { %5049 = vmatmul.msk.f32.gmra.mxu2 %vm1116_vm0, %v2905_v57 }
 0x52e   : > { %5056 = vmatmul.msk.f32.gmra.mxu1 %vm1116_vm0, %v2405_v19  ;;  %v2506_v19 = vld [vmem:[#allocation2 + $0x81] sm:$0xff] }
 0x52f   : > { %5135 = vmatmul.msk.f32.gmra.mxu0 %vm685_vm2, %v7713_v10 }
 0x535   : > { %5058 = vmatmul.msk.f32.vlgmr.msra.gmra.mxu2 %vm1116_vm0, %v2499_v5 }
 0x536   : > { %5057 = vmatmul.msk.f32.gmra.mxu1 %vm1116_vm0, %v2406_v0 }
 0x537   : > { %5136 = vmatmul.msk.f32.gmra.mxu0 %vm685_vm2, %v7719_v47 }
 0x53d   : > { %5059 = vmatmul.msk.f32.gmra.mxu2 %vm1116_vm0, %v2500_v31  ;;  %v2606_v31 = vld [vmem:[#allocation2 + $0x111] sm:$0xff] }
 0x53e   : > { %5066 = vmatmul.msk.f32.vlgmr.msra.gmra.mxu1 %vm1116_vm0, %v2599_v61 }
 0x53f   : > { %5137 = vmatmul.msk.f32.gmra.mxu0 %vm685_vm2, %v7729_v3 }
 0x540   : > { %v7735_v16 = vpop.f32.mrf.mxu2 }
 0x543   : > { %v7737_v7 = vpop.f32.mrf.mxu1 }
 0x544   : > { %v7782_v62 = vpop.f32.mrf.mxu0 }
 0x545   : > { %5060 = vmatmul.msk.f32.gmra.mxu2 %vm1116_vm0, %v2501_v44  ;;  %v3583_v44 = vld [vmem:[#allocation5 + $0x80] sm:$0xff] }
 0x546   : > { %5067 = vmatmul.msk.f32.gmra.mxu1 %vm1116_vm0, %v2600_v2 }
 0x547   : > { %5178 = vmatmul.msk.f32.vlgmr.msrb.gmra.mxu0 %vm685_vm2, %v3576_v51 }
 0x548   : > { %v7742_v56 = vpop.f32.mrf.mxu2 }
 0x54b   : > { %v7744_v8 = vpop.f32.mrf.mxu1 }
 0x54c   : > { %v7795_v61 = vpop.f32.mrf.mxu0 }
 0x54d   : > { %5061 = vmatmul.msk.f32.gmra.mxu2 %vm1116_vm0, %v2502_v11 }
 0x54e   : > { %5068 = vmatmul.msk.f32.gmra.mxu1 %vm1116_vm0, %v2601_v15 }
 0x54f   : > { %5179 = vmatmul.msk.f32.gmra.mxu0 %vm685_vm2, %v3577_v58 }
 0x550   : > { %v7749_v63 = vpop.f32.mrf.mxu2 }
 0x553   : > { %v7751_v14 = vpop.f32.mrf.mxu1 }
 0x554   : > { %v7805_v12 = vpop.f32.mrf.mxu0 }
 0x555   : > { %5062 = vmatmul.msk.f32.gmra.mxu2 %vm1116_vm0, %v2503_v22  ;;  %v7844_v22 = vld [vmem:[#allocation5 + $0x32] sm:$0xff] }
 0x556   : > { %5069 = vmatmul.msk.f32.gmra.mxu1 %vm1116_vm0, %v2602_v28  ;;  %v7830_v28 = vld [vmem:[#allocation5 + $0x22] sm:$0xff]  ;;  %8802 = vst [vmem:[#allocation22_spill] sm:$0xff] %v7844_v22 }
 0x557   : > { %5180 = vmatmul.msk.f32.gmra.mxu0 %vm685_vm2, %v3578_v1  ;;  %8801 = vst [vmem:[#allocation21_spill] sm:$0xff] %v7830_v28 }
 0x558   : > { %v7756_v35 = vpop.f32.mrf.mxu2 }
 0x55b   : > { %v7758_v57 = vpop.f32.mrf.mxu1 }
 0x55d   : > { %5063 = vmatmul.msk.f32.gmra.mxu2 %vm1116_vm0, %v2504_v42 }
 0x55e   : > { %5070 = vmatmul.msk.f32.gmra.mxu1 %vm1116_vm0, %v2603_v34 }
 0x55f   : > { %5181 = vmatmul.msk.f32.gmra.mxu0 %vm685_vm2, %v3579_v20  ;;  %v7858_v20 = vld [vmem:[#allocation5 + $0x42] sm:$0xff] }
 0x560   : > { %v7769_v25 = vpop.f32.mrf.mxu2  ;;  %8803 = vst [vmem:[#allocation23_spill] sm:$0xff] %v7858_v20 }
 0x563   : > { %v7771_v54 = vpop.f32.mrf.mxu1 }
 0x565   : > { %5064 = vmatmul.msk.f32.gmra.mxu2 %vm1116_vm0, %v2505_v40  ;;  %v7899_v40 = vld [vmem:[#allocation5 + $0x62] sm:$0xff] }
 0x566   : > { %5071 = vmatmul.msk.f32.gmra.mxu1 %vm1116_vm0, %v2604_v32  ;;  %8805 = vst [vmem:[#allocation25_spill] sm:$0xff] %v7899_v40 }
 0x567   : > { %5182 = vmatmul.msk.f32.gmra.mxu0 %vm685_vm2, %v3580_v36 }
 0x568   : > { %v7784_v46 = vpop.f32.mrf.mxu2 }
 0x56b   : > { %v7786_v39 = vpop.f32.mrf.mxu1 }
 0x56d   : > { %5065 = vmatmul.msk.f32.gmra.mxu2 %vm1116_vm0, %v2506_v19  ;;  %v2806_v19 = vld [vmem:[#allocation2 + $0x1a1] sm:$0xff] }
 0x56e   : > { %5072 = vmatmul.msk.f32.gmra.mxu1 %vm1116_vm0, %v2605_v43 }
 0x56f   : > { %5183 = vmatmul.msk.f32.gmra.mxu0 %vm685_vm2, %v3581_v55 }
 0x570   : > { %v7791_v0 = vpop.f32.mrf.mxu2 }
 0x573   : > { %v7793_v5 = vpop.f32.mrf.mxu1 }
 0x575   : > { %5074 = vmatmul.msk.f32.vlgmr.msrb.gmra.mxu2 %vm1116_vm0, %v7602_v59  ;;  %v7816_v59 = vld [vmem:[#allocation5 + $0x12] sm:$0xff] }
 0x576   : > { %5073 = vmatmul.msk.f32.gmra.mxu1 %vm1116_vm0, %v2606_v31  ;;  %8800 = vst [vmem:[#allocation20_spill] sm:$0xff] %v7816_v59  ;;  %v7912_v31 = vld [vmem:[#allocation5 + $0x72] sm:$0xff] }
 0x577   : > { %5184 = vmatmul.msk.f32.gmra.mxu0 %vm685_vm2, %v3582_v38  ;;  %8806 = vst [vmem:[#allocation26_spill] sm:$0xff] %v7912_v31 }
 0x578   : > { %v7801_v2 = vpop.f32.mrf.mxu2 }
 0x57b   : > { %v7803_v51 = vpop.f32.mrf.mxu1 }
 0x57d   : > { %5075 = vmatmul.msk.f32.gmra.mxu2 %vm1116_vm0, %v7611_v50 }
 0x57e   : > { %5082 = vmatmul.msk.f32.vlgmr.msrb.gmra.mxu1 %vm1116_vm0, %v7582_v48  ;;  %v7824_v48 = vpop.f32.mrf.mxu0 }
 0x57f   : > { %5185 = vmatmul.msk.f32.gmra.mxu0 %vm685_vm2, %v3583_v44 }
 0x580   : > { %v7812_v15 = vpop.f32.mrf.mxu2 }
 0x583   : > { %v7814_v58 = vpop.f32.mrf.mxu1 }
 0x585   : > { %5076 = vmatmul.msk.f32.gmra.mxu2 %vm1116_vm0, %v7620_v27 }
 0x586   : > { %5083 = vmatmul.msk.f32.gmra.mxu1 %vm1116_vm0, %v7607_v41  ;;  %v7838_v41 = vpop.f32.mrf.mxu0 }
 0x587   : > { %5226 = vmatmul.msk.f32.vlgmr.msra.gmra.mxu0 %vm685_vm2, %v7816_v59  ;;  %v2271_v59 = vadd.f32 %v7737_v7, %v7735_v16  ;;  %v5152_v16 = vld [vmem:[%s8726_s14 + $0x50] sm:$0xff]  ;;  %v2274_v7 = vadd.f32 %v7744_v8, %v7742_v56 }
 0x588   : > { %v7826_v11 = vpop.f32.mrf.mxu2 }
 0x58b   : > { %v7828_v50 = vpop.f32.mrf.mxu1 }
 0x58d   : > { %5077 = vmatmul.msk.f32.gmra.mxu2 %vm1116_vm0, %v7629_v52 }
 0x58e   : > { %5084 = vmatmul.msk.f32.gmra.mxu1 %vm1116_vm0, %v7616_v33  ;;  %v7856_v34 = vpop.f32.mrf.mxu0 }
 0x58f   : > { %5227 = vmatmul.msk.f32.gmra.mxu0 %vm685_vm2, %v7830_v28 }
 0x590   : > { %v7840_v27 = vpop.f32.mrf.mxu2 }
 0x593   : > { %v7842_v1 = vpop.f32.mrf.mxu1 }
 0x595   : > { %5078 = vmatmul.msk.f32.gmra.mxu2 %vm1116_vm0, %v7650_v37  ;;  %v5272_v37 = vld [vmem:[%s8726_s14 + $0xf0] sm:$0xff] }
 0x596   : > { %5085 = vmatmul.msk.f32.gmra.mxu1 %vm1116_vm0, %v7625_v24  ;;  %v5273_v24 = vld [vmem:[%s8726_s14 + $0xf8] sm:$0xff]  ;;  %v7884_v17 = vpop.f32.mrf.mxu0 }
 0x597   : > { %5228 = vmatmul.msk.f32.gmra.mxu0 %vm685_vm2, %v7844_v22  ;;  %v5114_v22 = vld [vmem:[%s8725_s13 + $0x20] sm:$0xff] }
 0x598   : > { %v7852_v33 = vpop.f32.mrf.mxu2  ;;  %4393 = vmatpush.msrb.mxu0 %v5273_v24 }
 0x59a   : > { %4394 = vmatpush.msrb.mxu0 %v5272_v37  ;;  %v3927_v37 = vld [vmem:[#allocation5 + $0x82] sm:$0xff] }
 0x59b   : > { %v7854_v52 = vpop.f32.mrf.mxu1 }
 0x59d   : > { %5079 = vmatmul.msk.f32.gmra.mxu2 %vm1116_vm0, %v7659_v13  ;;  %v3089_v13 = vld [vmem:[%s8725_s13 + $0x18] sm:$0xff] }
 0x59e   : > { %5086 = vmatmul.msk.f32.gmra.mxu1 %vm1116_vm0, %v7631_v60  ;;  %v5271_v60 = vld [vmem:[%s8726_s14 + $0xe8] sm:$0xff]  ;;  %3195 = vmatpush.msra.mxu2 %v3089_v13  ;;  %v7906_v43 = vpop.f32.mrf.mxu0 }
 0x59f   : > { %5229 = vmatmul.msk.f32.gmra.mxu0 %vm685_vm2, %v7858_v20  ;;  %v5139_v20 = vld [vmem:[%s8725_s13 + $0x48] sm:$0xff] }
 0x5a0   : > { %v7872_v42 = vpop.f32.mrf.mxu2  ;;  %4395 = vmatpush.msrb.mxu0 %v5271_v60 }
 0x5a2   : > { %4396 = vmatpush.msrb.mxu0 %v5270_v21 }
 0x5a3   : > { %v7874_v45 = vpop.f32.mrf.mxu1 }
 0x5a5   : > { %5080 = vmatmul.msk.f32.gmra.mxu2 %vm1116_vm0, %v7668_v26 }
 0x5a6   : > { %5087 = vmatmul.msk.f32.gmra.mxu1 %vm1116_vm0, %v7655_v4  ;;  %v2706_v4 = vld [vmem:[#allocation2 + $0x230] sm:$0xff]  ;;  %v7920_v38 = vpop.f32.mrf.mxu0 }
 0x5a7   : > { %5230 = vmatmul.msk.f32.gmra.mxu0 %vm685_vm2, %v7882_v18  ;;  %8807 = vst [vmem:[#allocation27_spill] sm:$0xff] %v7920_v38  ;;  %v3070_v18 = vld [vmem:[#allocation4] sm:$0xff] }
 0x5a8   : > { %v7895_v32 = vpop.f32.mrf.mxu2 }
 0x5ab   : > { %v7897_v36 = vpop.f32.mrf.mxu1 }
 0x5ad   : > { %5081 = vmatmul.msk.f32.gmra.mxu2 %vm1116_vm0, %v2706_v4  ;;  %v3087_v4 = vld [vmem:[%s8725_s13 + $0x8] sm:$0xff] }
 0x5ae   : > { %5088 = vmatmul.msk.f32.gmra.mxu1 %vm1116_vm0, %v7664_v49  ;;  %v3088_v49 = vld [vmem:[%s8725_s13 + $0x10] sm:$0xff]  ;;  %v7929_v13 = vpop.f32.mrf.mxu0 }
 0x5af   : > { %5231 = vmatmul.msk.f32.gmra.mxu0 %vm685_vm2, %v7899_v40  ;;  %3196 = vmatpush.msra.mxu2 %v3088_v49  ;;  %8808 = vst [vmem:[#allocation28_spill] sm:$0xff] %v7929_v13 }
 0x5b0   : > { %v7908_v26 = vpop.f32.mrf.mxu2 }
 0x5b1   : > { %3197 = vmatpush.msra.mxu2 %v3087_v4 }
 0x5b3   : > { %v7910_v55 = vpop.f32.mrf.mxu1 }
 0x5b6   : > { %5089 = vmatmul.msk.f32.gmra.mxu1 %vm1116_vm0, %v2806_v19  ;;  %v7940_v29 = vpop.f32.mrf.mxu0 }
 0x5b7   : > { %5232 = vmatmul.msk.f32.gmra.mxu0 %vm685_vm2, %v7912_v31  ;;  %8809 = vst [vmem:[#allocation29_spill] sm:$0xff] %v7940_v29 }
 0x5b8   : > { %v2559_v44 = vpop.f32.mrf.mxu2 }
 0x5bb   : > { %v7922_v24 = vpop.f32.mrf.mxu1 }
 0x5be   : > { %v7953_v4 = vpop.f32.mrf.mxu0 }
 0x5bf   : > { %5233 = vmatmul.msk.f32.gmra.mxu0 %vm685_vm2, %v3927_v37  ;;  %8810 = vst [vmem:[#allocation30_spill] sm:$0xff] %v7953_v4  ;;  %v5116_v4 = vld [vmem:[%s8725_s13 + $0x30] sm:$0xff] }
 0x5c0   : > { %v7925_v60 = vpop.f32.mrf.mxu2 }
 0x5c3   : > { %v7927_v21 = vpop.f32.mrf.mxu1 }
 0x5c7   : > { %5274 = vmatmul.msk.f32.vlgmr.msrb.gmra.mxu0 %vm685_vm2, %v7683_v6  ;;  %v3086_v6 = vld [vmem:[%s8725_s13] sm:$0xff] }
 0x5c8   : > { %v7936_v19 = vpop.f32.mrf.mxu2  ;;  %3198 = vmatpush.msra.mxu2 %v3086_v6  ;;  %v5141_v6 = vld [vmem:[%s8725_s13 + $0x58] sm:$0xff] }
 0x5c9   : > { %3453 = vmatpush.msra.mxu3 %v5141_v6  ;;  %5106 = vmatmul.msk.f32.vlgmr.msra.gmra.mxu2 %vm685_vm2, %v3070_v18  ;;  %v3396_v18 = vld [vmem:[#allocation4 + $0x2] sm:$0xff] }
 0x5cb   : > { %v7938_v49 = vpop.f32.mrf.mxu1 }
 0x5cf   : > { %5275 = vmatmul.msk.f32.gmra.mxu0 %vm685_vm2, %v7689_v23  ;;  %v7961_v23 = vpop.f32.mrf.mxu0 }
 0x5d0   : > { %v7944_v37 = vpop.f32.mrf.mxu2  ;;  %8811 = vst [vmem:[#allocation31_spill] sm:$0xff] %v7961_v23  ;;  %v5115_v23 = vld [vmem:[%s8725_s13 + $0x28] sm:$0xff] }
 0x5d3   : > { %v7946_v38 = vpop.f32.mrf.mxu1 }
 0x5d7   : > { %5276 = vmatmul.msk.f32.gmra.mxu0 %vm685_vm2, %v7707_v53  ;;  %v5117_v53 = vld [vmem:[%s8725_s13 + $0x38] sm:$0xff]  ;;  %v7998_v28 = vpop.f32.mrf.mxu0 }
 0x5d8   : > { %v7955_v13 = vpop.f32.mrf.mxu2  ;;  %3281 = vmatpush.msra.mxu1 %v5117_v53  ;;  %8812 = vst [vmem:[#allocation32_spill] sm:$0xff] %v7998_v28 }
 0x5da   : > { %3282 = vmatpush.msra.mxu1 %v5116_v4  ;;  %v3224_v4 = vld [vmem:[#allocation4 + $0x1] sm:$0xff] }
 0x5db   : > { %v7957_v29 = vpop.f32.mrf.mxu1 }
 0x5dc   : > { %3283 = vmatpush.msra.mxu1 %v5115_v23  ;;  %v2268_v23 = vadd.f32 %v7727_v30, %v7725_v9  ;;  %v8017_v30 = vld [vmem:[#allocation5 + $0x81] sm:$0xff] }
 0x5de   : > { %3284 = vmatpush.msra.mxu1 %v5114_v22 }
 0x5df   : > { %5277 = vmatmul.msk.f32.gmra.mxu0 %vm685_vm2, %v7713_v10  ;;  %v5140_v10 = vld [vmem:[%s8725_s13 + $0x50] sm:$0xff]  ;;  %5118 = vmatmul.msk.f32.vlgmr.msra.gmra.mxu1 %vm685_vm2, %v3224_v4  ;;  %v8019_v4 = vpop.f32.mrf.mxu0 }
 0x5e0   : > { %v7963_v31 = vpop.f32.mrf.mxu2  ;;  %3454 = vmatpush.msra.mxu3 %v5140_v10  ;;  %v2383_v10 = vadd.f32 %v7801_v2, %v2268_v23 }
 0x5e2   : > { %3455 = vmatpush.msra.mxu3 %v5139_v20  ;;  %v5153_v20 = vld [vmem:[%s8726_s14 + $0x58] sm:$0xff] }
 0x5e3   : > { %v7965_v40 = vpop.f32.mrf.mxu1  ;;  %3531 = vmatpush.msrb.mxu2 %v5153_v20 }
 0x5e5   : > { %3532 = vmatpush.msrb.mxu2 %v5152_v16 }
 0x5e7   : > { %5278 = vmatmul.msk.f32.gmra.mxu0 %vm685_vm2, %v7719_v47  ;;  %v5138_v47 = vld [vmem:[%s8725_s13 + $0x40] sm:$0xff] }
 0x5e8   : > { %v7988_v53 = vpop.f32.mrf.mxu2  ;;  %3456 = vmatpush.msra.mxu3 %v5138_v47  ;;  %v2483_v47 = vadd.f32 %v7803_v51, %v2383_v10 }
 0x5e9   : > { %5142 = vmatmul.msk.f32.vlgmr.msra.gmra.mxu3 %vm685_vm2, %v3396_v18 }
 0x5ea   : > { %v2583_v9 = vadd.f32 %v2559_v44, %v2483_v47 }
 0x5eb   : > { %v7990_v6 = vpop.f32.mrf.mxu1 }
 0x5ec   : > { %v2683_v2 = vadd.f32 %v7922_v24, %v2583_v9 }
 0x5ef   : > { %5279 = vmatmul.msk.f32.gmra.mxu0 %vm685_vm2, %v7729_v3  ;;  %v2384_v3 = vadd.f32 %v7812_v15, %v2271_v59  ;;  %v8035_v15 = vld [vmem:[%s8724_s12] ss:$0 sm:$0xff] }
 0x5f0   : > { %v8010_v22 = vpop.f32.mrf.mxu2 }
 0x5f1   : > { %v2484_v51 = vadd.f32 %v7814_v58, %v2384_v3  ;;  %v2385_v58 = vadd.f32 %v7826_v11, %v2274_v7 }
 0x5f3   : > { %v8013_v28 = vpop.f32.mrf.mxu1  ;;  %v2584_v44 = vadd.f32 %v7925_v60, %v2484_v51  ;;  %v2485_v3 = vadd.f32 %v7828_v50, %v2385_v58  ;;  %v2277_v60 = vadd.f32 %v7751_v14, %v7749_v63 }
 0x5f5   : > { %v2684_v47 = vadd.f32 %v7927_v21, %v2584_v44  ;;  %v2386_v11 = vadd.f32 %v7840_v27, %v2277_v60  ;;  %v2280_v27 = vadd.f32 %v7758_v57, %v7756_v35 }
 0x5f7   : > { %5280 = vmatmul.msk.f32.gmra.mxu0 %vm685_vm2, %v8017_v30  ;;  %v2486_v63 = vadd.f32 %v7842_v1, %v2386_v11  ;;  %v2387_v7 = vadd.f32 %v7852_v33, %v2280_v27 }
 0x5f8   : > { %v2759_v18 = vpop.f32.mrf.mxu2 }
 0x5f9   : > { %v2783_v23 = vadd.f32 %v2759_v18, %v2683_v2  ;;  %v2585_v2 = vadd.f32 %v7936_v19, %v2485_v3  ;;  %v2586_v1 = vadd.f32 %v7944_v37, %v2486_v63  ;;  %v2487_v35 = vadd.f32 %v7854_v52, %v2387_v7 }
 0x5fb   : > { %v2859_v20 = vpop.f32.mrf.mxu1  ;;  %v2685_v21 = vadd.f32 %v7938_v49, %v2585_v2  ;;  %v2686_v58 = vadd.f32 %v7946_v38, %v2586_v1  ;;  %v2587_v33 = vadd.f32 %v7955_v13, %v2487_v35 }
 0x5fc   : > { %v2883_v10 = vadd.f32 %v2859_v20, %v2783_v23 }
 0x5fe   : > { %v2983_v59 = vadd.f32 %v7782_v62, %v2883_v10 }
 0x600   : > { %v3003_v24 = vadd.f32 %v8035_v15, %v2983_v59  ;;  %v2762_v9 = vpop.f32.mrf.mxu2 }
 0x601   : > { %v2784_v8 = vadd.f32 %v2762_v9, %v2684_v47 }
 0x602   : > { %3053 = vst.msk [vmem:[#allocation4 + $0x11] sm:$0xff] %vm685_vm2, %v3003_v24 }
 0x603   : > { %v2862_v56 = vpop.f32.mrf.mxu1 }
 0x604   : > { %v2884_v18 = vadd.f32 %v2862_v56, %v2784_v8  ;;  %v2687_v8 = vadd.f32 %v7957_v29, %v2587_v33  ;;  %v5150_v29 = vld [vmem:[%s8726_s14 + $0x40] sm:$0xff] }
 0x606   : > { %v2984_v62 = vadd.f32 %v7795_v61, %v2884_v18  ;;  %v5151_v61 = vld [vmem:[%s8726_s14 + $0x48] sm:$0xff] }
 0x607   : > { %3533 = vmatpush.msrb.mxu2 %v5151_v61 }
 0x608   : > { %v3004_v51 = vadd.f32 %v8035_v15, %v2984_v62  ;;  %v2765_v20 = vpop.f32.mrf.mxu2 }
 0x609   : > { %v8050_v50 = vld [vmem:[#allocation4 + $0x10] sm:$0xff]  ;;  %v2785_v19 = vadd.f32 %v2765_v20, %v2685_v21  ;;  %3534 = vmatpush.msrb.mxu2 %v5150_v29  ;;  %v8201_v29 = vpop.f32.mrf.mxu3 }
 0x60a   : > { %v8052_v23 = vld [vmem:[#allocation4 + $0x11] sm:$0xff]  ;;  %3054 = vst.msk [vmem:[#allocation4 + $0x21] sm:$0xff] %vm685_vm2, %v3004_v51  ;;  %5107 = vmatmul.msk.f32.gmra.mxu2 %vm685_vm2, %v8050_v50 }
 0x60b   : > { %v8054_v16 = vld [vmem:[#allocation4 + $0x12] sm:$0xff]  ;;  %v2865_v14 = vpop.f32.mrf.mxu1  ;;  %5119 = vmatmul.msk.f32.gmra.mxu1 %vm685_vm2, %v8052_v23 }
 0x60c   : > { %5143 = vmatmul.msk.f32.gmra.mxu3 %vm685_vm2, %v8054_v16  ;;  %v2885_v49 = vadd.f32 %v2865_v14, %v2785_v19 }
 0x60e   : > { %v2985_v44 = vadd.f32 %v7805_v12, %v2885_v49  ;;  %v2283_v12 = vadd.f32 %v7771_v54, %v7769_v25  ;;  %v2289_v49 = vadd.f32 %v7793_v5, %v7791_v0 }
 0x610   : > { %v3005_v10 = vadd.f32 %v8035_v15, %v2985_v44  ;;  %v2768_v59 = vpop.f32.mrf.mxu2  ;;  %v2388_v52 = vadd.f32 %v7872_v42, %v2283_v12  ;;  %v5189_v42 = vld [vmem:[%s8725_s13 + $0x98] sm:$0xff]  ;;  %v2390_v0 = vadd.f32 %v7908_v26, %v2289_v49  ;;  %v5210_v49 = vld [vmem:[%s8725_s13 + $0xa0] sm:$0xff] }
 0x611   : > { %v8074_v24 = vld [vmem:[#allocation4 + $0x20] sm:$0xff]  ;;  %v2786_v37 = vadd.f32 %v2768_v59, %v2686_v58  ;;  %3797 = vmatpush.msrb.mxu3 %v5189_v42  ;;  %v5201_v58 = vld [vmem:[%s8726_s14 + $0x98] sm:$0xff] }
 0x612   : > { %v8076_v47 = vld [vmem:[#allocation4 + $0x21] sm:$0xff]  ;;  %3055 = vst.msk [vmem:[#allocation4 + $0x31] sm:$0xff] %vm685_vm2, %v3005_v10  ;;  %5108 = vmatmul.msk.f32.gmra.mxu2 %vm685_vm2, %v8074_v24  ;;  %v2488_v25 = vadd.f32 %v7874_v45, %v2388_v52  ;;  %v2286_v45 = vadd.f32 %v7786_v39, %v7784_v46 }
 0x613   : > { %v8078_v9 = vld [vmem:[#allocation4 + $0x22] sm:$0xff]  ;;  %v2868_v57 = vpop.f32.mrf.mxu1  ;;  %5120 = vmatmul.msk.f32.gmra.mxu1 %vm685_vm2, %v8076_v47  ;;  %3875 = vmatpush.msra.mxu2 %v5201_v58 }
 0x614   : > { %5144 = vmatmul.msk.f32.gmra.mxu3 %vm685_vm2, %v8078_v9  ;;  %v2886_v38 = vadd.f32 %v2868_v57, %v2786_v37  ;;  %v2588_v62 = vadd.f32 %v7963_v31, %v2488_v25  ;;  %v2389_v21 = vadd.f32 %v7895_v32, %v2286_v45  ;;  %v5188_v32 = vld [vmem:[%s8725_s13 + $0x90] sm:$0xff]  ;;  %v5162_v10 = vld [vmem:[%s8725_s13 + $0x60] sm:$0xff] }
 0x615   : > { %3798 = vmatpush.msrb.mxu3 %v5188_v32  ;;  %v5186_v59 = vld [vmem:[%s8725_s13 + $0x80] sm:$0xff]  ;;  %v5211_v32 = vld [vmem:[%s8725_s13 + $0xa8] sm:$0xff] }
 0x616   : > { %v2986_v3 = vadd.f32 %v7824_v48, %v2886_v38  ;;  %v5165_v48 = vld [vmem:[%s8725_s13 + $0x78] sm:$0xff]  ;;  %v2688_v14 = vadd.f32 %v7965_v40, %v2588_v62  ;;  %v2489_v46 = vadd.f32 %v7897_v36, %v2389_v21  ;;  %v5163_v36 = vld [vmem:[%s8725_s13 + $0x68] sm:$0xff]  ;;  %v2490_v38 = vadd.f32 %v7910_v55, %v2390_v0  ;;  %v8218_v21 = vpop.f32.mrf.mxu3 }
 0x617   : > { %3625 = vmatpush.msrb.mxu1 %v5165_v48  ;;  %v5187_v40 = vld [vmem:[%s8725_s13 + $0x88] sm:$0xff] }
 0x618   : > { %v3006_v56 = vadd.f32 %v8035_v15, %v2986_v3  ;;  %v2771_v60 = vpop.f32.mrf.mxu2  ;;  %v2589_v7 = vadd.f32 %v7988_v53, %v2489_v46  ;;  %3799 = vmatpush.msrb.mxu3 %v5187_v40  ;;  %v5213_v46 = vld [vmem:[%s8725_s13 + $0xb8] sm:$0xff] }
 0x619   : > { %v8095_v2 = vld [vmem:[#allocation4 + $0x30] sm:$0xff]  ;;  %v2787_v13 = vadd.f32 %v2771_v60, %v2687_v8 }
 0x61a   : > { %v8097_v18 = vld [vmem:[#allocation4 + $0x31] sm:$0xff]  ;;  %3056 = vst.msk [vmem:[#allocation4 + $0x41] sm:$0xff] %vm685_vm2, %v3006_v56  ;;  %5109 = vmatmul.msk.f32.gmra.mxu2 %vm685_vm2, %v8095_v2  ;;  %v2689_v35 = vadd.f32 %v7990_v6, %v2589_v7  ;;  %3800 = vmatpush.msrb.mxu3 %v5186_v59  ;;  %v2590_v6 = vadd.f32 %v8010_v22, %v2490_v38  ;;  %v5234_v7 = vld [vmem:[%s8725_s13 + $0xc0] sm:$0xff] }
 0x61b   : > { %v8099_v11 = vld [vmem:[#allocation4 + $0x32] sm:$0xff]  ;;  %v2871_v54 = vpop.f32.mrf.mxu1  ;;  %5121 = vmatmul.msk.f32.gmra.mxu1 %vm685_vm2, %v8097_v18  ;;  %v8817_v59 = vld [vmem:[#allocation24_spill] sm:$0xff] }
 0x61c   : > { %5145 = vmatmul.msk.f32.gmra.mxu3 %vm685_vm2, %v8099_v11  ;;  %v2887_v51 = vadd.f32 %v2871_v54, %v2787_v13  ;;  %v2690_v56 = vadd.f32 %v8013_v28, %v2590_v6  ;;  %v5200_v28 = vld [vmem:[%s8726_s14 + $0x90] sm:$0xff] }
 0x61d   : > { %3876 = vmatpush.msra.mxu2 %v5200_v28  ;;  %v3748_v6 = vld [vmem:[#allocation5 + $0x11] sm:$0xff] }
 0x61e   : > { %v2987_v20 = vadd.f32 %v7838_v41, %v2887_v51  ;;  %v5164_v41 = vld [vmem:[%s8725_s13 + $0x70] sm:$0xff] }
 0x61f   : > { %3626 = vmatpush.msrb.mxu1 %v5164_v41  ;;  %v5236_v41 = vld [vmem:[%s8725_s13 + $0xd0] sm:$0xff] }
 0x620   : > { %v3007_v63 = vadd.f32 %v8035_v15, %v2987_v20  ;;  %v2774_v19 = vpop.f32.mrf.mxu2  ;;  %v8228_v20 = vpop.f32.mrf.mxu3 }
 0x621   : > { %v8125_v61 = vld [vmem:[#allocation4 + $0x40] sm:$0xff]  ;;  %v2788_v31 = vadd.f32 %v2774_v19, %v2688_v14  ;;  %3627 = vmatpush.msrb.mxu1 %v5163_v36  ;;  %v8815_v19 = vld [vmem:[#allocation22_spill] sm:$0xff]  ;;  %v5235_v36 = vld [vmem:[%s8725_s13 + $0xc8] sm:$0xff] }
 0x622   : > { %v8127_v27 = vld [vmem:[#allocation4 + $0x41] sm:$0xff]  ;;  %3057 = vst.msk [vmem:[#allocation4 + $0x51] sm:$0xff] %vm685_vm2, %v3007_v63  ;;  %5110 = vmatmul.msk.f32.gmra.mxu2 %vm685_vm2, %v8125_v61 }
 0x623   : > { %v8129_v1 = vld [vmem:[#allocation4 + $0x42] sm:$0xff]  ;;  %v2874_v39 = vpop.f32.mrf.mxu1  ;;  %5122 = vmatmul.msk.f32.gmra.mxu1 %vm685_vm2, %v8127_v27 }
 0x624   : > { %5146 = vmatmul.msk.f32.gmra.mxu3 %vm685_vm2, %v8129_v1  ;;  %v2888_v44 = vadd.f32 %v2874_v39, %v2788_v31  ;;  %3628 = vmatpush.msrb.mxu1 %v5162_v10  ;;  %v8813_v63 = vld [vmem:[#allocation20_spill] sm:$0xff]  ;;  %v5237_v39 = vld [vmem:[%s8725_s13 + $0xd8] sm:$0xff]  ;;  %v5212_v31 = vld [vmem:[%s8725_s13 + $0xb0] sm:$0xff] }
 0x625   : > { %4143 = vmatpush.msra.mxu3 %v5237_v39  ;;  %v5249_v10 = vld [vmem:[%s8726_s14 + $0xd8] sm:$0xff] }
 0x626   : > { %v2988_v5 = vadd.f32 %v7856_v34, %v2888_v44  ;;  %3969 = vmatpush.msra.mxu1 %v5213_v46  ;;  %v8816_v44 = vld [vmem:[#allocation23_spill] sm:$0xff]  ;;  %v8821_v46 = vld [vmem:[#allocation29_spill] sm:$0xff] }
 0x627   : > { %4144 = vmatpush.msra.mxu3 %v5236_v41 }
 0x628   : > { %v3008_v53 = vadd.f32 %v8035_v15, %v2988_v5  ;;  %v2777_v57 = vpop.f32.mrf.mxu2  ;;  %v8245_v14 = vpop.f32.mrf.mxu3  ;;  %3970 = vmatpush.msra.mxu1 %v5212_v31  ;;  %v8818_v5 = vld [vmem:[#allocation25_spill] sm:$0xff]  ;;  %v5285_v31 = vld [vmem:[%s8725_s13 + $0x118] sm:$0xff] }
 0x629   : > { %v8167_v37 = vld [vmem:[#allocation4 + $0x50] sm:$0xff]  ;;  %v2789_v34 = vadd.f32 %v2777_v57, %v2689_v35  ;;  %4145 = vmatpush.msra.mxu3 %v5235_v36 }
 0x62a   : > { %v8169_v12 = vld [vmem:[#allocation4 + $0x51] sm:$0xff]  ;;  %3058 = vst.msk [vmem:[#allocation4 + $0x61] sm:$0xff] %vm685_vm2, %v3008_v53  ;;  %5111 = vmatmul.msk.f32.gmra.mxu2 %vm685_vm2, %v8167_v37  ;;  %3971 = vmatpush.msra.mxu1 %v5211_v32 }
 0x62b   : > { %v8171_v33 = vld [vmem:[#allocation4 + $0x52] sm:$0xff]  ;;  %v2877_v26 = vpop.f32.mrf.mxu1  ;;  %5123 = vmatmul.msk.f32.gmra.mxu1 %vm685_vm2, %v8169_v12  ;;  %4146 = vmatpush.msra.mxu3 %v5234_v7 }
 0x62c   : > { %5147 = vmatmul.msk.f32.gmra.mxu3 %vm685_vm2, %v8171_v33  ;;  %v2889_v52 = vadd.f32 %v2877_v26, %v2789_v34  ;;  %3972 = vmatpush.msra.mxu1 %v5210_v49  ;;  %v5248_v53 = vld [vmem:[%s8726_s14 + $0xd0] sm:$0xff] }
 0x62d   : > { %v8819_v57 = vld [vmem:[#allocation26_spill] sm:$0xff] }
 0x62e   : > { %v2989_v3 = vadd.f32 %v7884_v17, %v2889_v52 }
 0x630   : > { %v3009_v55 = vadd.f32 %v8035_v15, %v2989_v3  ;;  %v2780_v8 = vpop.f32.mrf.mxu2  ;;  %v8271_v40 = vpop.f32.mrf.mxu3  ;;  %v5247_v3 = vld [vmem:[%s8726_s14 + $0xc8] sm:$0xff] }
 0x631   : > { %v8185_v60 = vld [vmem:[#allocation4 + $0x60] sm:$0xff]  ;;  %v2790_v13 = vadd.f32 %v2780_v8, %v2690_v56 }
 0x632   : > { %v8187_v25 = vld [vmem:[#allocation4 + $0x61] sm:$0xff]  ;;  %3059 = vst.msk [vmem:[#allocation4 + $0x71] sm:$0xff] %vm685_vm2, %v3009_v55  ;;  %5112 = vmatmul.msk.f32.gmra.mxu2 %vm685_vm2, %v8185_v60 }
 0x633   : > { %v8189_v54 = vld [vmem:[#allocation4 + $0x62] sm:$0xff]  ;;  %5124 = vmatmul.msk.f32.gmra.mxu1 %vm685_vm2, %v8187_v25  ;;  %v2880_v17 = vpop.f32.mrf.mxu1 }
 0x634   : > { %5148 = vmatmul.msk.f32.gmra.mxu3 %vm685_vm2, %v8189_v54  ;;  %v2890_v22 = vadd.f32 %v2880_v17, %v2790_v13  ;;  %v3749_v8 = vld [vmem:[#allocation5 + $0x21] sm:$0xff] }
 0x636   : > { %v2990_v48 = vadd.f32 %v7906_v43, %v2890_v22  ;;  %v3404_v43 = vld [vmem:[#allocation5 + $0x2] sm:$0xff]  ;;  %v3750_v22 = vld [vmem:[#allocation5 + $0x31] sm:$0xff] }
 0x638   : > { %v3010_v42 = vadd.f32 %v8035_v15, %v2990_v48  ;;  %v5199_v15 = vld [vmem:[%s8726_s14 + $0x88] sm:$0xff]  ;;  %v8288_v58 = vpop.f32.mrf.mxu3  ;;  %v8820_v48 = vld [vmem:[#allocation28_spill] sm:$0xff] }
 0x639   : > { %v8205_v45 = vld [vmem:[#allocation4 + $0x70] sm:$0xff]  ;;  %3877 = vmatpush.msra.mxu2 %v5199_v15 }
 0x63a   : > { %v8207_v62 = vld [vmem:[#allocation4 + $0x71] sm:$0xff]  ;;  %3060 = vst.msk [vmem:[#allocation4 + $0x81] sm:$0xff] %vm685_vm2, %v3010_v42  ;;  %5113 = vmatmul.msk.f32.gmra.mxu2 %vm685_vm2, %v8205_v45 }
 0x63b   : > { %v8209_v51 = vld [vmem:[#allocation4 + $0x72] sm:$0xff]  ;;  %5125 = vmatmul.msk.f32.gmra.mxu1 %vm685_vm2, %v8207_v62 }
 0x63c   : > { %5149 = vmatmul.msk.f32.gmra.mxu3 %vm685_vm2, %v8209_v51 }
 0x640   : > { %v8296_v0 = vpop.f32.mrf.mxu3 }
 0x641   : > { %v8307_v35 = vld [vmem:[#allocation4 + $0x80] sm:$0xff] }
 0x642   : > { %5154 = vmatmul.msk.f32.vlgmr.msrb.gmra.mxu2 %vm685_vm2, %v3404_v43  ;;  %v8313_v38 = vld [vmem:[#allocation4 + $0x81] sm:$0xff] }
 0x643   : > { %5166 = vmatmul.msk.f32.vlgmr.msrb.gmra.mxu1 %vm685_vm2, %v8050_v50  ;;  %v8814_v50 = vld [vmem:[#allocation21_spill] sm:$0xff] }
 0x644   : > { %5190 = vmatmul.msk.f32.vlgmr.msrb.gmra.mxu3 %vm685_vm2, %v8052_v23  ;;  %v5198_v23 = vld [vmem:[%s8726_s14 + $0x80] sm:$0xff] }
 0x645   : > { %3878 = vmatpush.msra.mxu2 %v5198_v23  ;;  %4487 = vmatpush.msrb.mxu3 %v5285_v31 }
 0x647   : > { %4221 = vmatpush.msrb.mxu2 %v5249_v10 }
 0x648   : > { %v8317_v26 = vpop.f32.mrf.mxu3 }
 0x649   : > { %4222 = vmatpush.msrb.mxu2 %v5248_v53  ;;  %v5259_v53 = vld [vmem:[%s8725_s13 + $0xe8] sm:$0xff] }
 0x64a   : > { %5155 = vmatmul.msk.f32.gmra.mxu2 %vm685_vm2, %v8813_v63 }
 0x64b   : > { %5167 = vmatmul.msk.f32.gmra.mxu1 %vm685_vm2, %v8074_v24  ;;  %4223 = vmatpush.msrb.mxu2 %v5247_v3 }
 0x64c   : > { %5191 = vmatmul.msk.f32.gmra.mxu3 %vm685_vm2, %v8076_v47  ;;  %v8331_v55 = vpop.f32.mrf.mxu2 }
 0x652   : > { %5156 = vmatmul.msk.f32.gmra.mxu2 %vm685_vm2, %v8814_v50 }
 0x653   : > { %5168 = vmatmul.msk.f32.gmra.mxu1 %vm685_vm2, %v8095_v2 }
 0x654   : > { %5192 = vmatmul.msk.f32.gmra.mxu3 %vm685_vm2, %v8097_v18 }
 0x65a   : > { %5157 = vmatmul.msk.f32.gmra.mxu2 %vm685_vm2, %v8815_v19  ;;  %v3751_v19 = vld [vmem:[#allocation5 + $0x41] sm:$0xff] }
 0x65b   : > { %5169 = vmatmul.msk.f32.gmra.mxu1 %vm685_vm2, %v8125_v61 }
 0x65c   : > { %5193 = vmatmul.msk.f32.gmra.mxu3 %vm685_vm2, %v8127_v27  ;;  %v8319_v34 = vpop.f32.mrf.mxu1 }
 0x662   : > { %5158 = vmatmul.msk.f32.gmra.mxu2 %vm685_vm2, %v8816_v44  ;;  %v3752_v44 = vld [vmem:[#allocation5 + $0x51] sm:$0xff] }
 0x663   : > { %5170 = vmatmul.msk.f32.gmra.mxu1 %vm685_vm2, %v8167_v37 }
 0x664   : > { %5194 = vmatmul.msk.f32.gmra.mxu3 %vm685_vm2, %v8169_v12 }
 0x66a   : > { %5159 = vmatmul.msk.f32.gmra.mxu2 %vm685_vm2, %v8817_v59 }
 0x66b   : > { %5171 = vmatmul.msk.f32.gmra.mxu1 %vm685_vm2, %v8185_v60 }
 0x66c   : > { %5195 = vmatmul.msk.f32.gmra.mxu3 %vm685_vm2, %v8187_v25  ;;  %v8326_v52 = vpop.f32.mrf.mxu3 }
 0x672   : > { %5160 = vmatmul.msk.f32.gmra.mxu2 %vm685_vm2, %v8818_v5  ;;  %v5284_v5 = vld [vmem:[%s8725_s13 + $0x110] sm:$0xff] }
 0x673   : > { %5172 = vmatmul.msk.f32.gmra.mxu1 %vm685_vm2, %v8205_v45  ;;  %4488 = vmatpush.msrb.mxu3 %v5284_v5  ;;  %v8825_v5 = vld [vmem:[#allocation27_spill] sm:$0xff] }
 0x674   : > { %5196 = vmatmul.msk.f32.gmra.mxu3 %vm685_vm2, %v8207_v62 }
 0x67a   : > { %5161 = vmatmul.msk.f32.gmra.mxu2 %vm685_vm2, %v8819_v57  ;;  %v3385_v57 = vpop.f32.mrf.mxu0 }
 0x67b   : > { %5173 = vmatmul.msk.f32.gmra.mxu1 %vm685_vm2, %v8307_v35 }
 0x67c   : > { %5197 = vmatmul.msk.f32.gmra.mxu3 %vm685_vm2, %v8313_v38 }
 0x682   : > { %5202 = vmatmul.msk.f32.vlgmr.msra.gmra.mxu2 %vm685_vm2, %v3748_v6 }
 0x683   : > { %5214 = vmatmul.msk.f32.vlgmr.msra.gmra.mxu1 %vm685_vm2, %v8054_v16 }
 0x684   : > { %5238 = vmatmul.msk.f32.vlgmr.msra.gmra.mxu3 %vm685_vm2, %v8074_v24 }
 0x688   : > { %v3289_v56 = vpop.f32.mrf.mxu1 }
 0x68a   : > { %5203 = vmatmul.msk.f32.gmra.mxu2 %vm685_vm2, %v3749_v8  ;;  %v5258_v8 = vld [vmem:[%s8725_s13 + $0xe0] sm:$0xff] }
 0x68b   : > { %5215 = vmatmul.msk.f32.gmra.mxu1 %vm685_vm2, %v8078_v9 }
 0x68c   : > { %5239 = vmatmul.msk.f32.gmra.mxu3 %vm685_vm2, %v8095_v2  ;;  %v5246_v2 = vld [vmem:[%s8726_s14 + $0xc0] sm:$0xff] }
 0x68d   : > { %v3203_v16 = vpop.f32.mrf.mxu2  ;;  %4224 = vmatpush.msrb.mxu2 %v5246_v2 }
 0x68e   : > { %v3204_v24 = vadd.f32 %v3203_v16, %v8218_v21  ;;  %v5282_v16 = vld [vmem:[%s8725_s13 + $0x100] sm:$0xff] }
 0x68f   : > { %v3461_v13 = vpop.f32.mrf.mxu3 }
 0x690   : > { %v3292_v17 = vpop.f32.mrf.mxu1  ;;  %v3311_v28 = vadd.f32 %v3289_v56, %v3204_v24  ;;  %v5297_v24 = vld [vmem:[%s8726_s14 + $0x118] sm:$0xff] }
 0x691   : > { %4565 = vmatpush.msra.mxu2 %v5297_v24 }
 0x692   : > { %v3389_v42 = vadd.f32 %v8820_v48, %v3311_v28  ;;  %5204 = vmatmul.msk.f32.gmra.mxu2 %vm685_vm2, %v3750_v22  ;;  %v3753_v28 = vld [vmem:[#allocation5 + $0x61] sm:$0xff] }
 0x693   : > { %5216 = vmatmul.msk.f32.gmra.mxu1 %vm685_vm2, %v8099_v11 }
 0x694   : > { %5240 = vmatmul.msk.f32.gmra.mxu3 %vm685_vm2, %v8125_v61  ;;  %v8345_v43 = vadd.f32 %v3461_v13, %v3389_v42 }
 0x695   : > { %v3206_v21 = vpop.f32.mrf.mxu2 }
 0x696   : > { %v3207_v15 = vadd.f32 %v3206_v21, %v8228_v20  ;;  %v5261_v20 = vld [vmem:[%s8725_s13 + $0xf8] sm:$0xff] }
 0x697   : > { %v3464_v63 = vpop.f32.mrf.mxu3  ;;  %4315 = vmatpush.msrb.mxu1 %v5261_v20 }
 0x698   : > { %v3295_v50 = vpop.f32.mrf.mxu1  ;;  %v3312_v23 = vadd.f32 %v3292_v17, %v3207_v15  ;;  %v3708_v15 = vpop.f32.mrf.mxu0 }
 0x69a   : > { %v3390_v39 = vadd.f32 %v8821_v46, %v3312_v23  ;;  %5205 = vmatmul.msk.f32.gmra.mxu2 %vm685_vm2, %v3751_v19  ;;  %v3754_v23 = vld [vmem:[#allocation5 + $0x71] sm:$0xff]  ;;  %v8824_v19 = vld [vmem:[#allocation32_spill] sm:$0xff] }
 0x69b   : > { %5217 = vmatmul.msk.f32.gmra.mxu1 %vm685_vm2, %v8129_v1 }
 0x69c   : > { %5241 = vmatmul.msk.f32.gmra.mxu3 %vm685_vm2, %v8167_v37  ;;  %v8357_v61 = vadd.f32 %v3464_v63, %v3390_v39  ;;  %v8822_v37 = vld [vmem:[#allocation30_spill] sm:$0xff] }
 0x69d   : > { %v3209_v41 = vpop.f32.mrf.mxu2 }
 0x69e   : > { %v3210_v32 = vadd.f32 %v3209_v41, %v8245_v14  ;;  %v5260_v14 = vld [vmem:[%s8725_s13 + $0xf0] sm:$0xff] }
 0x69f   : > { %v3467_v36 = vpop.f32.mrf.mxu3  ;;  %4316 = vmatpush.msrb.mxu1 %v5260_v14 }
 0x6a0   : > { %v3298_v49 = vpop.f32.mrf.mxu1  ;;  %v3313_v7 = vadd.f32 %v3295_v50, %v3210_v32  ;;  %v3201_v32 = vadd.f32 %v8331_v55, %v8201_v29 }
 0x6a1   : > { %4317 = vmatpush.msrb.mxu1 %v5259_v53 }
 0x6a2   : > { %v3391_v10 = vadd.f32 %v8822_v37, %v3313_v7  ;;  %5206 = vmatmul.msk.f32.gmra.mxu2 %vm685_vm2, %v3752_v44  ;;  %v3711_v7 = vpop.f32.mrf.mxu0  ;;  %v8419_v44 = vld [vmem:[#allocation4 + $0x82] sm:$0xff] }
 0x6a3   : > { %5218 = vmatmul.msk.f32.gmra.mxu1 %vm685_vm2, %v8171_v33 }
 0x6a4   : > { %5242 = vmatmul.msk.f32.gmra.mxu3 %vm685_vm2, %v8185_v60  ;;  %v8372_v59 = vadd.f32 %v3467_v36, %v3391_v10  ;;  %v5283_v60 = vld [vmem:[%s8725_s13 + $0x108] sm:$0xff]  ;;  %4318 = vmatpush.msrb.mxu1 %v5258_v8 }
 0x6a5   : > { %v3212_v6 = vpop.f32.mrf.mxu2  ;;  %4489 = vmatpush.msrb.mxu3 %v5283_v60 }
 0x6a6   : > { %v3213_v3 = vadd.f32 %v3212_v6, %v8271_v40  ;;  %v8823_v40 = vld [vmem:[#allocation31_spill] sm:$0xff]  ;;  %v4094_v6 = vld [vmem:[#allocation5 + $0x20] sm:$0xff] }
 0x6a7   : > { %v3470_v56 = vpop.f32.mrf.mxu3  ;;  %4490 = vmatpush.msrb.mxu3 %v5282_v16 }
 0x6a8   : > { %v3301_v13 = vpop.f32.mrf.mxu1  ;;  %v3314_v17 = vadd.f32 %v3298_v49, %v3213_v3  ;;  %v4092_v49 = vld [vmem:[#allocation4 + $0x90] sm:$0xff] }
 0x6aa   : > { %v3392_v22 = vadd.f32 %v8823_v40, %v3314_v17  ;;  %5207 = vmatmul.msk.f32.gmra.mxu2 %vm685_vm2, %v3753_v28 }
 0x6ab   : > { %5219 = vmatmul.msk.f32.gmra.mxu1 %vm685_vm2, %v8189_v54 }
 0x6ac   : > { %5243 = vmatmul.msk.f32.gmra.mxu3 %vm685_vm2, %v8205_v45  ;;  %v8402_v48 = vadd.f32 %v3470_v56, %v3392_v22 }
 0x6ad   : > { %v3215_v42 = vpop.f32.mrf.mxu2 }
 0x6ae   : > { %v3216_v2 = vadd.f32 %v3215_v42, %v8288_v58  ;;  %v5296_v58 = vld [vmem:[%s8726_s14 + $0x110] sm:$0xff] }
 0x6af   : > { %v3473_v21 = vpop.f32.mrf.mxu3  ;;  %4566 = vmatpush.msra.mxu2 %v5296_v58 }
 0x6b0   : > { %v3304_v63 = vpop.f32.mrf.mxu1  ;;  %v3315_v50 = vadd.f32 %v3301_v13, %v3216_v2  ;;  %v4095_v13 = vld [vmem:[#allocation5 + $0x30] sm:$0xff]  ;;  %v4096_v2 = vld [vmem:[#allocation5 + $0x40] sm:$0xff] }
 0x6b2   : > { %v3393_v46 = vadd.f32 %v8824_v19, %v3315_v50  ;;  %5208 = vmatmul.msk.f32.gmra.mxu2 %vm685_vm2, %v3754_v23 }
 0x6b3   : > { %5220 = vmatmul.msk.f32.gmra.mxu1 %vm685_vm2, %v8209_v51 }
 0x6b4   : > { %5244 = vmatmul.msk.f32.gmra.mxu3 %vm685_vm2, %v8307_v35  ;;  %v8411_v45 = vadd.f32 %v3473_v21, %v3393_v46  ;;  %v4097_v46 = vld [vmem:[#allocation5 + $0x50] sm:$0xff] }
 0x6b5   : > { %v3218_v39 = vpop.f32.mrf.mxu2 }
 0x6b6   : > { %v3219_v20 = vadd.f32 %v3218_v39, %v8296_v0  ;;  %v3310_v0 = vadd.f32 %v8319_v34, %v3201_v32  ;;  %v4098_v32 = vld [vmem:[#allocation5 + $0x60] sm:$0xff] }
 0x6b7   : > { %v3476_v31 = vpop.f32.mrf.mxu3 }
 0x6b8   : > { %v3307_v41 = vpop.f32.mrf.mxu1  ;;  %v3316_v36 = vadd.f32 %v3304_v63, %v3219_v20  ;;  %v3388_v53 = vadd.f32 %v8825_v5, %v3310_v0 }
 0x6ba   : > { %v3394_v35 = vadd.f32 %v8019_v4, %v3316_v36  ;;  %5209 = vmatmul.msk.f32.gmra.mxu2 %vm685_vm2, %v8017_v30  ;;  %v3714_v30 = vpop.f32.mrf.mxu0  ;;  %v3482_v34 = vadd.f32 %v8326_v52, %v3388_v53 }
 0x6bb   : > { %5221 = vmatmul.msk.f32.gmra.mxu1 %vm685_vm2, %v8419_v44 }
 0x6bc   : > { %5245 = vmatmul.msk.f32.gmra.mxu3 %vm685_vm2, %v4092_v49  ;;  %v8428_v37 = vadd.f32 %v3476_v31, %v3394_v35 }
 0x6bd   : > { %v3221_v29 = vpop.f32.mrf.mxu2 }
 0x6be   : > { %v3222_v55 = vadd.f32 %v3221_v29, %v8317_v26  ;;  %v5295_v26 = vld [vmem:[%s8726_s14 + $0x108] sm:$0xff]  ;;  %v4099_v29 = vld [vmem:[#allocation5 + $0x70] sm:$0xff] }
 0x6bf   : > { %v3479_v10 = vpop.f32.mrf.mxu3  ;;  %4567 = vmatpush.msra.mxu2 %v5295_v26  ;;  %v4101_v26 = vld [vmem:[#allocation5 + $0x90] sm:$0xff] }
 0x6c0   : > { %v3630_v14 = vpop.f32.mrf.mxu1  ;;  %v3317_v4 = vadd.f32 %v3307_v41, %v3222_v55 }
 0x6c2   : > { %v3395_v60 = vadd.f32 %v3385_v57, %v3317_v4  ;;  %5250 = vmatmul.msk.f32.vlgmr.msrb.gmra.mxu2 %vm685_vm2, %v4094_v6  ;;  %v3717_v52 = vpop.f32.mrf.mxu0  ;;  %v4100_v4 = vld [vmem:[#allocation5 + $0x80] sm:$0xff] }
 0x6c3   : > { %5262 = vmatmul.msk.f32.vlgmr.msrb.gmra.mxu1 %vm685_vm2, %v8076_v47 }
 0x6c4   : > { %5286 = vmatmul.msk.f32.vlgmr.msrb.gmra.mxu3 %vm685_vm2, %v8078_v9  ;;  %v8438_v3 = vadd.f32 %v3479_v10, %v3395_v60 }
 0x6c5   : > { %v3536_v56 = vpop.f32.mrf.mxu2 }
 0x6c6   : > { %v3560_v57 = vadd.f32 %v3536_v56, %v3482_v34  ;;  %v4265_v56 = vld [vmem:[#allocation4 + $0x91] sm:$0xff] }
 0x6c7   : > { %v3802_v8 = vpop.f32.mrf.mxu3 }
 0x6c8   : > { %v3633_v16 = vpop.f32.mrf.mxu1  ;;  %v3654_v24 = vadd.f32 %v3630_v14, %v3560_v57 }
 0x6ca   : > { %v3732_v47 = vadd.f32 %v3708_v15, %v3654_v24  ;;  %5251 = vmatmul.msk.f32.gmra.mxu2 %vm685_vm2, %v4095_v13  ;;  %v3720_v50 = vpop.f32.mrf.mxu0 }
 0x6cb   : > { %5263 = vmatmul.msk.f32.gmra.mxu1 %vm685_vm2, %v8097_v18 }
 0x6cc   : > { %5287 = vmatmul.msk.f32.gmra.mxu3 %vm685_vm2, %v8099_v11  ;;  %v8448_v9 = vadd.f32 %v3802_v8, %v3732_v47  ;;  %v5294_v11 = vld [vmem:[%s8726_s14 + $0x100] sm:$0xff]  ;;  %v4437_v8 = vld [vmem:[#allocation4 + $0x92] sm:$0xff] }
 0x6cd   : > { %v3539_v17 = vpop.f32.mrf.mxu2  ;;  %4568 = vmatpush.msra.mxu2 %v5294_v11 }
 0x6ce   : > { %v3561_v28 = vadd.f32 %v3539_v17, %v8345_v43  ;;  %v4438_v17 = vld [vmem:[#allocation5 + $0x22] sm:$0xff] }
 0x6cf   : > { %v3805_v40 = vpop.f32.mrf.mxu3 }
 0x6d0   : > { %v3636_v22 = vpop.f32.mrf.mxu1  ;;  %v3655_v42 = vadd.f32 %v3633_v16, %v3561_v28 }
 0x6d2   : > { %v3733_v21 = vadd.f32 %v3711_v7, %v3655_v42  ;;  %5252 = vmatmul.msk.f32.gmra.mxu2 %vm685_vm2, %v4096_v2  ;;  %v3723_v41 = vpop.f32.mrf.mxu0 }
 0x6d3   : > { %5264 = vmatmul.msk.f32.gmra.mxu1 %vm685_vm2, %v8127_v27 }
 0x6d4   : > { %5288 = vmatmul.msk.f32.gmra.mxu3 %vm685_vm2, %v8129_v1  ;;  %v8456_v18 = vadd.f32 %v3805_v40, %v3733_v21 }
 0x6d5   : > { %v3542_v43 = vpop.f32.mrf.mxu2 }
 0x6d6   : > { %v3562_v15 = vadd.f32 %v3542_v43, %v8357_v61 }
 0x6d7   : > { %v3808_v63 = vpop.f32.mrf.mxu3 }
 0x6d8   : > { %v3639_v23 = vpop.f32.mrf.mxu1  ;;  %v3656_v19 = vadd.f32 %v3636_v22, %v3562_v15  ;;  %v4439_v15 = vld [vmem:[#allocation5 + $0x32] sm:$0xff] }
 0x6da   : > { %v3734_v58 = vadd.f32 %v3714_v30, %v3656_v19  ;;  %5253 = vmatmul.msk.f32.gmra.mxu2 %vm685_vm2, %v4097_v46 }
 0x6db   : > { %5265 = vmatmul.msk.f32.gmra.mxu1 %vm685_vm2, %v8169_v12 }
 0x6dc   : > { %5289 = vmatmul.msk.f32.gmra.mxu3 %vm685_vm2, %v8171_v33  ;;  %v8467_v27 = vadd.f32 %v3808_v63, %v3734_v58  ;;  %v4273_v33 = vld [vmem:[#allocation5 + $0x91] sm:$0xff] }
 0x6dd   : > { %v3545_v1 = vpop.f32.mrf.mxu2  ;;  %5281 = vmatmul.msk.f32.gmra.mxu0 %vm685_vm2, %v4273_v33 }
 0x6de   : > { %v3563_v39 = vadd.f32 %v3545_v1, %v8372_v59  ;;  %v4440_v1 = vld [vmem:[#allocation5 + $0x42] sm:$0xff] }
 0x6df   : > { %v3811_v61 = vpop.f32.mrf.mxu3 }
 0x6e0   : > { %v3642_v20 = vpop.f32.mrf.mxu1  ;;  %v3657_v31 = vadd.f32 %v3639_v23, %v3563_v39 }
 0x6e2   : > { %v3735_v36 = vadd.f32 %v3717_v52, %v3657_v31  ;;  %5254 = vmatmul.msk.f32.gmra.mxu2 %vm685_vm2, %v4098_v32 }
 0x6e3   : > { %5266 = vmatmul.msk.f32.gmra.mxu1 %vm685_vm2, %v8187_v25  ;;  %v3726_v25 = vpop.f32.mrf.mxu0 }
 0x6e4   : > { %5290 = vmatmul.msk.f32.gmra.mxu3 %vm685_vm2, %v8189_v54  ;;  %v8475_v12 = vadd.f32 %v3811_v61, %v3735_v36  ;;  %v4441_v36 = vld [vmem:[#allocation5 + $0x52] sm:$0xff] }
 0x6e5   : > { %v3548_v49 = vpop.f32.mrf.mxu2 }
 0x6e6   : > { %v3564_v59 = vadd.f32 %v3548_v49, %v8402_v48 }
 0x6e7   : > { %v3814_v7 = vpop.f32.mrf.mxu3 }
 0x6e8   : > { %v3645_v35 = vpop.f32.mrf.mxu1  ;;  %v3658_v0 = vadd.f32 %v3642_v20, %v3564_v59 }
 0x6ea   : > { %v3736_v55 = vadd.f32 %v3720_v50, %v3658_v0  ;;  %5255 = vmatmul.msk.f32.gmra.mxu2 %vm685_vm2, %v4099_v29 }
 0x6eb   : > { %5267 = vmatmul.msk.f32.gmra.mxu1 %vm685_vm2, %v8207_v62 }
 0x6ec   : > { %5291 = vmatmul.msk.f32.gmra.mxu3 %vm685_vm2, %v8209_v51  ;;  %v8484_v54 = vadd.f32 %v3814_v7, %v3736_v55  ;;  %v3729_v51 = vpop.f32.mrf.mxu0  ;;  %v4442_v55 = vld [vmem:[#allocation5 + $0x62] sm:$0xff] }
 0x6ed   : > { %v3551_v10 = vpop.f32.mrf.mxu2 }
 0x6ee   : > { %v3565_v14 = vadd.f32 %v3551_v10, %v8411_v45 }
 0x6ef   : > { %v3817_v48 = vpop.f32.mrf.mxu3 }
 0x6f0   : > { %v3648_v5 = vpop.f32.mrf.mxu1  ;;  %v3659_v53 = vadd.f32 %v3645_v35, %v3565_v14 }
 0x6f2   : > { %v3737_v6 = vadd.f32 %v3723_v41, %v3659_v53  ;;  %5256 = vmatmul.msk.f32.gmra.mxu2 %vm685_vm2, %v4100_v4 }
 0x6f3   : > { %5268 = vmatmul.msk.f32.gmra.mxu1 %vm685_vm2, %v8313_v38 }
 0x6f4   : > { %5292 = vmatmul.msk.f32.gmra.mxu3 %vm685_vm2, %v8419_v44  ;;  %v8492_v62 = vadd.f32 %v3817_v48, %v3737_v6  ;;  %v4443_v6 = vld [vmem:[#allocation5 + $0x72] sm:$0xff] }
 0x6f5   : > { %v3554_v60 = vpop.f32.mrf.mxu2 }
 0x6f6   : > { %v3566_v30 = vadd.f32 %v3554_v60, %v8428_v37  ;;  %v4052_v37 = vpop.f32.mrf.mxu0 }
 0x6f7   : > { %v3820_v45 = vpop.f32.mrf.mxu3 }
 0x6f8   : > { %v3651_v34 = vpop.f32.mrf.mxu1  ;;  %v3660_v57 = vadd.f32 %v3648_v5, %v3566_v30 }
 0x6fa   : > { %v3738_v16 = vadd.f32 %v3726_v25, %v3660_v57  ;;  %5257 = vmatmul.msk.f32.gmra.mxu2 %vm685_vm2, %v4101_v26 }
 0x6fb   : > { %5269 = vmatmul.msk.f32.gmra.mxu1 %vm685_vm2, %v4265_v56  ;;  %v4444_v56 = vld [vmem:[#allocation5 + $0x82] sm:$0xff] }
 0x6fc   : > { %5293 = vmatmul.msk.f32.gmra.mxu3 %vm685_vm2, %v4437_v8  ;;  %v8498_v38 = vadd.f32 %v3820_v45, %v3738_v16 }
 0x6fd   : > { %v3557_v44 = vpop.f32.mrf.mxu2 }
 0x6fe   : > { %v3567_v24 = vadd.f32 %v3557_v44, %v8438_v3  ;;  %v4055_v43 = vpop.f32.mrf.mxu0 }
 0x6ff   : > { %v3823_v13 = vpop.f32.mrf.mxu3 }
 0x700   : > { %v3974_v47 = vpop.f32.mrf.mxu1  ;;  %v3661_v52 = vadd.f32 %v3651_v34, %v3567_v24  ;;  %v4445_v24 = vld [vmem:[#allocation5 + $0x92] sm:$0xff] }
 0x702   : > { %v3739_v28 = vadd.f32 %v3729_v51, %v3661_v52  ;;  %5298 = vmatmul.msk.f32.vlgmr.msra.gmra.mxu2 %vm685_vm2, %v4438_v17 }
 0x704   : > { %v8502_v40 = vadd.f32 %v3823_v13, %v3739_v28 }
 0x705   : > { %v3880_v22 = vpop.f32.mrf.mxu2 }
 0x706   : > { %v3904_v42 = vadd.f32 %v3880_v22, %v8448_v9  ;;  %v4058_v9 = vpop.f32.mrf.mxu0 }
 0x707   : > { %v4148_v2 = vpop.f32.mrf.mxu3 }
 0x708   : > { %v3977_v21 = vpop.f32.mrf.mxu1  ;;  %v3998_v11 = vadd.f32 %v3974_v47, %v3904_v42 }
 0x70a   : > { %v4076_v63 = vadd.f32 %v4052_v37, %v3998_v11  ;;  %5299 = vmatmul.msk.f32.gmra.mxu2 %vm685_vm2, %v4439_v15 }
 0x70c   : > { %v4172_v3 = vadd.f32 %v4148_v2, %v4076_v63 }
 0x70d   : > { %v3883_v50 = vpop.f32.mrf.mxu2 }
 0x70e   : > { %v3905_v23 = vadd.f32 %v3883_v50, %v8456_v18  ;;  %v4061_v59 = vpop.f32.mrf.mxu0 }
 0x70f   : > { %v4151_v19 = vpop.f32.mrf.mxu3 }
 0x710   : > { %v3999_v46 = vadd.f32 %v3977_v21, %v3905_v23  ;;  %v3980_v58 = vpop.f32.mrf.mxu1 }
 0x712   : > { %v4077_v39 = vadd.f32 %v4055_v43, %v3999_v46  ;;  %5300 = vmatmul.msk.f32.gmra.mxu2 %vm685_vm2, %v4440_v1 }
 0x714   : > { %v4173_v61 = vadd.f32 %v4151_v19, %v4077_v39  ;;  %v4623_v39 = vld [vmem:[%s8730_s18 + $0x38] sm:$0xff] }
 0x715   : > { %v3886_v20 = vpop.f32.mrf.mxu2  ;;  %4689 = vmatpush.msra.mxu1 %v4623_v39 }
 0x716   : > { %v3906_v31 = vadd.f32 %v3886_v20, %v8467_v27  ;;  %v4064_v5 = vpop.f32.mrf.mxu0 }
 0x717   : > { %v4154_v41 = vpop.f32.mrf.mxu3 }
 0x718   : > { %v4000_v32 = vadd.f32 %v3980_v58, %v3906_v31  ;;  %v3983_v49 = vpop.f32.mrf.mxu1  ;;  %v4622_v31 = vld [vmem:[%s8730_s18 + $0x30] sm:$0xff] }
 0x719   : > { %4690 = vmatpush.msra.mxu1 %v4622_v31 }
 0x71a   : > { %v4078_v33 = vadd.f32 %v4058_v9, %v4000_v32  ;;  %5301 = vmatmul.msk.f32.gmra.mxu2 %vm685_vm2, %v4441_v36 }
 0x71c   : > { %v4174_v18 = vadd.f32 %v4154_v41, %v4078_v33 }
 0x71d   : > { %v3889_v7 = vpop.f32.mrf.mxu2 }
 0x71e   : > { %v3907_v35 = vadd.f32 %v3889_v7, %v8475_v12  ;;  %v4067_v26 = vpop.f32.mrf.mxu0 }
 0x71f   : > { %v4157_v0 = vpop.f32.mrf.mxu3 }
 0x720   : > { %v4001_v29 = vadd.f32 %v3983_v49, %v3907_v35  ;;  %v3986_v27 = vpop.f32.mrf.mxu1  ;;  %v4621_v49 = vld [vmem:[%s8730_s18 + $0x28] sm:$0xff]  ;;  %v4620_v35 = vld [vmem:[%s8730_s18 + $0x20] sm:$0xff] }
 0x721   : > { %4691 = vmatpush.msra.mxu1 %v4621_v49 }
 0x722   : > { %v4079_v25 = vadd.f32 %v4061_v59, %v4001_v29  ;;  %5302 = vmatmul.msk.f32.gmra.mxu2 %vm685_vm2, %v4442_v55 }
 0x723   : > { %4692 = vmatpush.msra.mxu1 %v4620_v35 }
 0x724   : > { %v4175_v10 = vadd.f32 %v4157_v0, %v4079_v25 }
 0x725   : > { %v3892_v14 = vpop.f32.mrf.mxu2 }
 0x726   : > { %v3908_v48 = vadd.f32 %v3892_v14, %v8484_v54  ;;  %v4070_v2 = vpop.f32.mrf.mxu0 }
 0x727   : > { %v4160_v4 = vpop.f32.mrf.mxu3 }
 0x728   : > { %v4002_v53 = vadd.f32 %v3986_v27, %v3908_v48  ;;  %v3989_v45 = vpop.f32.mrf.mxu1 }
 0x72a   : > { %v4080_v51 = vadd.f32 %v4064_v5, %v4002_v53  ;;  %5303 = vmatmul.msk.f32.gmra.mxu2 %vm685_vm2, %v4443_v6  ;;  %v4618_v5 = vld [vmem:[%s8730_s18 + $0x10] sm:$0xff] }
 0x72c   : > { %v4176_v60 = vadd.f32 %v4160_v4, %v4080_v51 }
 0x72d   : > { %v3895_v12 = vpop.f32.mrf.mxu2 }
 0x72e   : > { %v3909_v30 = vadd.f32 %v3895_v12, %v8492_v62 }
 0x72f   : > { %v4163_v8 = vpop.f32.mrf.mxu3 }
 0x730   : > { %v4003_v34 = vadd.f32 %v3989_v45, %v3909_v30  ;;  %v3992_v42 = vpop.f32.mrf.mxu1 }
 0x732   : > { %v4081_v57 = vadd.f32 %v4067_v26, %v4003_v34  ;;  %5304 = vmatmul.msk.f32.gmra.mxu2 %vm685_vm2, %v4444_v56 }
 0x734   : > { %v4177_v54 = vadd.f32 %v4163_v8, %v4081_v57 }
 0x735   : > { %v3898_v16 = vpop.f32.mrf.mxu2 }
 0x736   : > { %v3910_v44 = vadd.f32 %v3898_v16, %v8498_v38  ;;  %v4073_v38 = vpop.f32.mrf.mxu0 }
 0x737   : > { %v4166_v43 = vpop.f32.mrf.mxu3 }
 0x738   : > { %v3995_v15 = vpop.f32.mrf.mxu1  ;;  %v4004_v53 = vadd.f32 %v3992_v42, %v3910_v44 }
 0x73a   : > { %5305 = vmatmul.msk.f32.gmra.mxu2 %vm685_vm2, %v4445_v24  ;;  %v4082_v12 = vadd.f32 %v4070_v2, %v4004_v53  ;;  %vm4626_vm2 = vcmask 523264  }
 0x73c   : > { %v4178_v8 = vadd.f32 %v4166_v43, %v4082_v12 }
 0x73d   : > { %v3901_v13 = vpop.f32.mrf.mxu2 }
 0x73e   : > { %v3911_v37 = vadd.f32 %v3901_v13, %v8502_v40  ;;  %v4398_v58 = vpop.f32.mrf.mxu0 }
 0x73f   : > { %v8519_v23 = vpop.f32.mrf.mxu3 }
 0x740   : > { %v4320_v19 = vpop.f32.mrf.mxu1  ;;  %v4005_v26 = vadd.f32 %v3995_v15, %v3911_v37  ;;  %v8544_v37 = vld [vmem:[%s8727_s15] ss:$0 sm:$0xff] }
 0x742   : > { %v4083_v42 = vadd.f32 %v4073_v38, %v4005_v26 }
 0x745   : > { %v4226_v47 = vpop.f32.mrf.mxu2 }
 0x746   : > { %v4250_v62 = vadd.f32 %v4226_v47, %v4172_v3 }
 0x747   : > { %v4492_v3 = vpop.f32.mrf.mxu3 }
 0x748   : > { %v4323_v9 = vpop.f32.mrf.mxu1  ;;  %v4344_v51 = vadd.f32 %v4320_v19, %v4250_v62  ;;  %v4179_v19 = vadd.f32 %v8519_v23, %v4083_v42 }
 0x74a   : > { %v4422_v56 = vadd.f32 %v4398_v58, %v4344_v51  ;;  %v4616_v58 = vld [vmem:[%s8730_s18] sm:$0xff] }
 0x74d   : > { %v4229_v52 = vpop.f32.mrf.mxu2 }
 0x74e   : > { %v4251_v17 = vadd.f32 %v4229_v52, %v4173_v61  ;;  %v4401_v61 = vpop.f32.mrf.mxu0 }
 0x74f   : > { %v4495_v41 = vpop.f32.mrf.mxu3 }
 0x750   : > { %v4326_v32 = vpop.f32.mrf.mxu1  ;;  %v4345_v6 = vadd.f32 %v4323_v9, %v4251_v17  ;;  %v4516_v17 = vadd.f32 %v4492_v3, %v4422_v56 }
 0x752   : > { %v4423_v45 = vadd.f32 %v4401_v61, %v4345_v6 }
 0x754   : > { %v4517_v24 = vadd.f32 %v4495_v41, %v4423_v45 }
 0x755   : > { %v4232_v28 = vpop.f32.mrf.mxu2 }
 0x756   : > { %v4252_v22 = vadd.f32 %v4232_v28, %v4174_v18  ;;  %v4404_v36 = vpop.f32.mrf.mxu0 }
 0x757   : > { %v4498_v18 = vpop.f32.mrf.mxu3 }
 0x758   : > { %v4329_v59 = vpop.f32.mrf.mxu1  ;;  %v4346_v30 = vadd.f32 %v4326_v32, %v4252_v22 }
 0x75d   : > { %v4235_v21 = vpop.f32.mrf.mxu2 }
 0x75e   : > { %v4253_v11 = vadd.f32 %v4235_v21, %v4175_v10  ;;  %v4407_v0 = vpop.f32.mrf.mxu0  ;;  %v4619_v10 = vld [vmem:[%s8730_s18 + $0x18] sm:$0xff] }
 0x75f   : > { %v4501_v29 = vpop.f32.mrf.mxu3  ;;  %4693 = vmatpush.msra.mxu1 %v4619_v10 }
 0x760   : > { %v4332_v55 = vpop.f32.mrf.mxu1  ;;  %v4347_v34 = vadd.f32 %v4329_v59, %v4253_v11 }
 0x761   : > { %4694 = vmatpush.msra.mxu1 %v4618_v5 }
 0x762   : > { %v4425_v47 = vadd.f32 %v4407_v0, %v4347_v34 }
 0x764   : > { %v4519_v43 = vadd.f32 %v4501_v29, %v4425_v47 }
 0x765   : > { %v4238_v63 = vpop.f32.mrf.mxu2 }
 0x766   : > { %v4254_v50 = vadd.f32 %v4238_v63, %v4176_v60  ;;  %v4410_v27 = vpop.f32.mrf.mxu0 }
 0x767   : > { %v4504_v14 = vpop.f32.mrf.mxu3 }
 0x768   : > { %v4335_v4 = vpop.f32.mrf.mxu1  ;;  %v4348_v16 = vadd.f32 %v4332_v55, %v4254_v50 }
 0x76a   : > { %v4426_v2 = vadd.f32 %v4410_v27, %v4348_v16 }
 0x76c   : > { %v4520_v3 = vadd.f32 %v4504_v14, %v4426_v2 }
 0x76d   : > { %v4241_v46 = vpop.f32.mrf.mxu2 }
 0x76e   : > { %v4255_v40 = vadd.f32 %v4241_v46, %v4177_v54  ;;  %v4413_v60 = vpop.f32.mrf.mxu0  ;;  %v4424_v54 = vadd.f32 %v4404_v36, %v4346_v30 }
 0x76f   : > { %v4507_v13 = vpop.f32.mrf.mxu3 }
 0x770   : > { %v4349_v52 = vadd.f32 %v4335_v4, %v4255_v40  ;;  %v4338_v44 = vpop.f32.mrf.mxu1  ;;  %v4518_v21 = vadd.f32 %v4498_v18, %v4424_v54  ;;  %v4617_v40 = vld [vmem:[%s8730_s18 + $0x8] sm:$0xff] }
 0x771   : > { %4695 = vmatpush.msra.mxu1 %v4617_v40 }
 0x772   : > { %v4427_v15 = vadd.f32 %v4413_v60, %v4349_v52 }
 0x773   : > { %4696 = vmatpush.msra.mxu1 %v4616_v58 }
 0x774   : > { %v4521_v23 = vadd.f32 %v4507_v13, %v4427_v15 }
 0x775   : > { %v4244_v1 = vpop.f32.mrf.mxu2 }
 0x776   : > { %v4256_v28 = vadd.f32 %v4244_v1, %v4178_v8  ;;  %v4416_v11 = vpop.f32.mrf.mxu0 }
 0x777   : > { %v4510_v36 = vpop.f32.mrf.mxu3 }
 0x778   : > { %v4350_v63 = vadd.f32 %v4338_v44, %v4256_v28  ;;  %v4341_v31 = vpop.f32.mrf.mxu1 }
 0x77a   : > { %v4428_v61 = vadd.f32 %v4416_v11, %v4350_v63 }
 0x77d   : > { %v8524_v20 = vpop.f32.mrf.mxu2 }
 0x77e   : > { %v4257_v39 = vadd.f32 %v8524_v20, %v4179_v19  ;;  %v4419_v35 = vpop.f32.mrf.mxu0 }
 0x77f   : > { %v4513_v34 = vpop.f32.mrf.mxu3 }
 0x780   : > { %v4351_v18 = vadd.f32 %v4341_v31, %v4257_v39 }
 0x782   : > { %v4429_v4 = vadd.f32 %v4419_v35, %v4351_v18 }
 0x784   : > { %v4523_v13 = vadd.f32 %v4513_v34, %v4429_v4 }
 0x785   : > { %v4570_v33 = vpop.f32.mrf.mxu2 }
 0x786   : > { %v4594_v22 = vadd.f32 %v4570_v33, %v4516_v17 }
 0x788   : > { %v8558_v9 = vadd.f32 %v8544_v37, %v4594_v22 }
 0x78a   : > { %v4648_v59 = vmul.f32 %v8558_v9, %v8558_v9 }
 0x78c   : > { %v4656_v6 = vsel %vm4626_vm2, %v4648_v59, 0.0 }
 0x78d   : > { %v4573_v7 = vpop.f32.mrf.mxu2 }
 0x78e   : > { %v4595_v62 = vadd.f32 %v4573_v7, %v4517_v24  ;;  %v4522_v7 = vadd.f32 %v4510_v36, %v4428_v61 }
 0x790   : > { %v8548_v46 = vadd.f32 %v8544_v37, %v4595_v62 }
 0x792   : > { %v4649_v33 = vmul.f32 %v8548_v46, %v8548_v46  ;;  %v4628_v0 = vsel %vm4626_vm2, %v8548_v46, 0.0 }
 0x794   : > { %v4657_v10 = vsel %vm4626_vm2, %v4649_v33, 0.0 }
 0x795   : > { %v4576_v25 = vpop.f32.mrf.mxu2  ;;  %v4658_v26 = vadd.f32 %v4657_v10, %v4656_v6 }
 0x796   : > { %v4596_v50 = vadd.f32 %v4576_v25, %v4518_v21  ;;  %v4627_v25 = vsel %vm4626_vm2, %v8558_v9, 0.0 }
 0x797   : > { %v4629_v51 = vadd.f32 %v4628_v0, %v4627_v25  ;;  %v4624_v25 = vld [vmem:[%s8731_s19] sm:$0xff] }
 0x798   : > { %v8561_v41 = vadd.f32 %v8544_v37, %v4596_v50 }
 0x79a   : > { %v4650_v29 = vmul.f32 %v8561_v41, %v8561_v41  ;;  %v4630_v14 = vsel %vm4626_vm2, %v8561_v41, 0.0 }
 0x79b   : > { %v4631_v56 = vadd.f32 %v4630_v14, %v4629_v51 }
 0x79c   : > { %v4659_v60 = vsel %vm4626_vm2, %v4650_v29, 0.0  ;;  %v4625_v29 = vld [vmem:[%s8731_s19 + $0x8] sm:$0xff] }
 0x79d   : > { %v4579_v48 = vpop.f32.mrf.mxu2  ;;  %v4660_v16 = vadd.f32 %v4659_v60, %v4658_v26  ;;  %4727 = vmatpush.msrb.mxu1 %v4625_v29 }
 0x79e   : > { %v4597_v1 = vadd.f32 %v4579_v48, %v4519_v43 }
 0x79f   : > { %4728 = vmatpush.msrb.mxu1 %v4624_v25 }
 0x7a0   : > { %v8566_v49 = vadd.f32 %v8544_v37, %v4597_v1 }
 0x7a2   : > { %v4651_v48 = vmul.f32 %v8566_v49, %v8566_v49  ;;  %v4632_v12 = vsel %vm4626_vm2, %v8566_v49, 0.0 }
 0x7a3   : > { %v4633_v24 = vadd.f32 %v4632_v12, %v4631_v56 }
 0x7a5   : > { %v4582_v57 = vpop.f32.mrf.mxu2 }
 0x7a6   : > { %v4598_v32 = vadd.f32 %v4582_v57, %v4520_v3  ;;  %v4661_v57 = vsel %vm4626_vm2, %v4651_v48, 0.0 }
 0x7a7   : > { %v4662_v28 = vadd.f32 %v4661_v57, %v4660_v16 }
 0x7a8   : > { %v8575_v55 = vadd.f32 %v8544_v37, %v4598_v32 }
 0x7aa   : > { %v4652_v30 = vmul.f32 %v8575_v55, %v8575_v55  ;;  %v4634_v8 = vsel %vm4626_vm2, %v8575_v55, 0.0 }
 0x7ab   : > { %v4635_v42 = vadd.f32 %v4634_v8, %v4633_v24 }
 0x7ac   : > { %v4663_v47 = vsel %vm4626_vm2, %v4652_v30, 0.0 }
 0x7ad   : > { %v4585_v38 = vpop.f32.mrf.mxu2  ;;  %v4664_v22 = vadd.f32 %v4663_v47, %v4662_v28 }
 0x7ae   : > { %v4599_v20 = vadd.f32 %v4585_v38, %v4521_v23 }
 0x7b0   : > { %v8585_v5 = vadd.f32 %v8544_v37, %v4599_v20 }
 0x7b2   : > { %v4653_v54 = vmul.f32 %v8585_v5, %v8585_v5  ;;  %v4636_v52 = vsel %vm4626_vm2, %v8585_v5, 0.0 }
 0x7b3   : > { %v4637_v11 = vadd.f32 %v4636_v52, %v4635_v42  ;;  %v4615_v52 = vld [vmem:[%s8729_s17] sm:$0x1] }
 0x7b4   : > { %v4665_v62 = vsel %vm4626_vm2, %v4653_v54, 0.0  ;;  %v5394_v54 = vld [vmem:[%s8728_s16] ss:$0 sm:$0xff] }
 0x7b5   : > { %v4588_v27 = vpop.f32.mrf.mxu2  ;;  %v4666_v63 = vadd.f32 %v4665_v62, %v4664_v22 }
 0x7b6   : > { %v4600_v53 = vadd.f32 %v4588_v27, %v4522_v7  ;;  %v8827_v27 = vld [vmem:[#allocation19_spill] sm:$0xff] }
 0x7b8   : > { %v8594_v45 = vadd.f32 %v8544_v37, %v4600_v53 }
 0x7ba   : > { %v4654_v44 = vmul.f32 %v8594_v45, %v8594_v45  ;;  %v4638_v21 = vsel %vm4626_vm2, %v8594_v45, 0.0 }
 0x7bb   : > { %v4639_v50 = vadd.f32 %v4638_v21, %v4637_v11 }
 0x7bc   : > { %v4667_v43 = vsel %vm4626_vm2, %v4654_v44, 0.0 }
 0x7bd   : > { %v4591_v17 = vpop.f32.mrf.mxu2  ;;  %v4668_v40 = vadd.f32 %v4667_v43, %v4666_v63 }
 0x7be   : > { %v4601_v2 = vadd.f32 %v4591_v17, %v4523_v13 }
 0x7c0   : > { %v8611_v15 = vadd.f32 %v8544_v37, %v4601_v2 }
 0x7c2   : > { %v4640_v19 = vsel %vm4626_vm2, %v8611_v15, 0.0  ;;  %v4655_v38 = vmul.f32 %v8611_v15, %v8611_v15 }
 0x7c3   : > { %v4641_v58 = vadd.f32 %v4640_v19, %v4639_v50 }
 0x7c4   : > { %v4669_v3 = vsel %vm4626_vm2, %v4655_v38, 0.0 }
 0x7c5   : > { %v4642_v1 = vrot.slane %v4641_v58, 4  ;;  %v4670_v39 = vadd.f32 %v4669_v3, %v4668_v40 }
 0x7c7   : > { %v4643_v23 = vadd.f32 %v4642_v1, %v4641_v58  ;;  %v4671_v61 = vrot.slane %v4670_v39, 4 }
 0x7c9   : > { %v4644_v31 = vrot.slane %v4643_v23, 2  ;;  %v4672_v32 = vadd.f32 %v4671_v61, %v4670_v39 }
 0x7cb   : > { %v4645_v37 = vadd.f32 %v4644_v31, %v4643_v23  ;;  %v4673_v36 = vrot.slane %v4672_v32, 2 }
 0x7cd   : > { %v4646_v33 = vrot.slane %v4645_v37, 1  ;;  %v4674_v20 = vadd.f32 %v4673_v36, %v4672_v32 }
 0x7cf   : > { %v4675_v18 = vrot.slane %v4674_v20, 1  ;;  %v4647_v59 = vadd.f32 %v4646_v33, %v4645_v37 }
 0x7d1   : > { %v4676_v7 = vadd.f32 %v4675_v18, %v4674_v20 }
 0x7d3   : > { %v4677_v0 = vsel %vm1075_vm4, %v4647_v59, %v4676_v7 }
 0x7d4   : > { %5306 = vmatmul.msk.f32.vlgmr.msra.gmra.mxu1 %vm4626_vm2, %v4677_v0 }
 0x851   : > { %v4698_v10 = vpop.f32.mrf.mxu1 }
 0x852   : > { %v4701_v14 = vmul.f32 %v4698_v10, %v8827_v27 }
 0x854   : > { %v4702_v48 = vmul.f32 %v4701_v14, %v4701_v14  ;;  %v4707_v6 = vperm.slane %v4701_v14, 0 }
 0x856   : > { %v4704_v53 = vrot.slane %v4702_v48, 7 }
 0x858   : > { %v4706_v4 = vsub.f32 %v4701_v14, %v4704_v53 }
 0x85a   : > { %v4708_v51 = vperm.slane %v4706_v4, 1 }
 0x85c   : > { %v4709_v60 = vsel %vm1075_vm4, %v4707_v6, %v4708_v51 }
 0x85d   : > { %5307 = vmatmul.msk.f32.vlgmr.msrb.gmra.mxu1 %vm1116_vm0, %v4709_v60 }
 0x8da   : > { %v4730_v12 = vpop.f32.mrf.mxu1 }
 0x8db   : > { %v4733_v30 = vadd.f32 1e-05, %v4730_v12 }
 0x8dd   : > { %5467 = vrsqrt.f32 %v4733_v30  ;;  %vm4740_vm8 = vweird.f32 %v4733_v30 }
 0x8e3   : > { %v5468_v34 = vpop.eup %5467 }
 0x8e4   : > { %v4735_v26 = vmul.f32 %v5468_v34, %v4733_v30  ;;  %vm4741_vm7 = vweird.f32 %v5468_v34 }
 0x8e5   : > { %vm4742_vm9 = vmor %vm4740_vm8, %vm4741_vm7 }
 0x8e6   : > { %v4736_v56 = vmul.f32 %v5468_v34, %v4735_v26 }
 0x8e8   : > { %v4737_v57 = vmul.f32 0.5, %v4736_v56 }
 0x8ea   : > { %v4738_v8 = vsub.f32 1.5, %v4737_v57 }
 0x8ec   : > { %v4739_v16 = vmul.f32 %v5468_v34, %v4738_v8 }
 0x8ee   : > { %v4743_v24 = vsel %vm4742_vm9, %v5468_v34, %v4739_v16 }
 0x8ef   : > { %v4747_v13 = vmul.f32 %v5394_v54, %v4743_v24 }
 0x8f1   : > { %v4749_v47 = vrot.slane %v4747_v13, 1  ;;  %v4753_v44 = vperm.slane %v4747_v13, 1 }
 0x8f3   : > { %v4751_v28 = vmul.f32 %v4749_v47, %v4730_v12  ;;  %v4754_v17 = vmul.f32 %v4753_v44, %v8558_v9  ;;  %v4755_v62 = vmul.f32 %v4753_v44, %v8548_v46  ;;  %v4756_v21 = vmul.f32 %v4753_v44, %v8561_v41 }
 0x8f4   : > { %v4757_v2 = vmul.f32 %v4753_v44, %v8566_v49  ;;  %v4758_v11 = vmul.f32 %v4753_v44, %v8575_v55  ;;  %v4759_v43 = vmul.f32 %v4753_v44, %v8585_v5  ;;  %v4760_v63 = vmul.f32 %v4753_v44, %v8594_v45 }
 0x8f5   : > { %v4752_v42 = vsub.f32 %v4615_v52, %v4751_v28  ;;  %v4761_v58 = vmul.f32 %v4753_v44, %v8611_v15 }
 0x8f7   : > { %v4763_v22 = vperm.slane %v4752_v42, 0 }
 0x8f9   : > { %v4765_v50 = vadd.f32 %v4763_v22, %v4754_v17  ;;  %v4766_v19 = vadd.f32 %v4763_v22, %v4755_v62  ;;  %v4767_v38 = vadd.f32 %v4763_v22, %v4756_v21  ;;  %v4768_v40 = vadd.f32 %v4763_v22, %v4757_v2 }
 0x8fa   : > { %v8645_v9 = vadd.f32 %v4763_v22, %v4758_v11  ;;  %v8647_v46 = vadd.f32 %v4763_v22, %v4759_v43  ;;  %v8649_v41 = vadd.f32 %v4763_v22, %v4760_v63  ;;  %v8651_v49 = vadd.f32 %v4763_v22, %v4761_v58 }
 0x8fb   : > { %v4781_v55 = vmin.f32 %v4765_v50, 0.0  ;;  %v4782_v3 = vmin.f32 %v4766_v19, 0.0  ;;  %v4783_v5 = vmin.f32 %v4767_v38, 0.0  ;;  %v4784_v1 = vmin.f32 %v4768_v40, 0.0 }
 0x8fc   : > { %v4785_v45 = vmin.f32 %v8645_v9, 0.0  ;;  %v4786_v39 = vmin.f32 %v8647_v46, 0.0  ;;  %v4787_v15 = vmin.f32 %v8649_v41, 0.0  ;;  %v4788_v32 = vmin.f32 %v8651_v49, 0.0 }
 0x8fd   : > { %v4789_v23 = vmul.f32 1.442695, %v4781_v55  ;;  %v4791_v61 = vmul.f32 1.442695, %v4782_v3  ;;  %v4793_v31 = vmul.f32 1.442695, %v4783_v5 }
 0x8fe   : > { %v4795_v37 = vmul.f32 1.442695, %v4784_v1  ;;  %v4797_v36 = vmul.f32 1.442695, %v4785_v45  ;;  %v4799_v33 = vmul.f32 1.442695, %v4786_v39 }
 0x8ff   : > { %5469 = vpow2.f32 %v4789_v23  ;;  %v4801_v20 = vmul.f32 1.442695, %v4787_v15  ;;  %v4803_v18 = vmul.f32 1.442695, %v4788_v32  ;;  %vm4773_vm0 = vcmp.gt.f32.partialorder %v4765_v50, 0.0 }
 0x900   : > { %5471 = vpow2.f32 %v4791_v61  ;;  %vm4774_vm4 = vcmp.gt.f32.partialorder %v4766_v19, 0.0  ;;  %vm4775_vm10 = vcmp.gt.f32.partialorder %v4767_v38, 0.0  ;;  %vm4776_vm11 = vcmp.gt.f32.partialorder %v4768_v40, 0.0 }
 0x901   : > { %5473 = vpow2.f32 %v4793_v31  ;;  %vm4777_vm12 = vcmp.gt.f32.partialorder %v8645_v9, 0.0  ;;  %vm4778_vm13 = vcmp.gt.f32.partialorder %v8647_v46, 0.0  ;;  %vm4779_vm14 = vcmp.gt.f32.partialorder %v8649_v41, 0.0 }
 0x902   : > { %5475 = vpow2.f32 %v4795_v37  ;;  %vm4780_vm15 = vcmp.gt.f32.partialorder %v8651_v49, 0.0 }
 0x903   : > { %5477 = vpow2.f32 %v4797_v36 }
 0x904   : > { %5479 = vpow2.f32 %v4799_v33 }
 0x905   : > { %v5470_v59 = vpop.eup %5469  ;;  %5481 = vpow2.f32 %v4801_v20 }
 0x906   : > { %v5472_v7 = vpop.eup %5471  ;;  %5483 = vpow2.f32 %v4803_v18  ;;  %v5308_v35 = vadd.f32 -1.0, %v5470_v59 }
 0x907   : > { %v5474_v0 = vpop.eup %5473  ;;  %v5309_v29 = vadd.f32 -1.0, %v5472_v7 }
 0x908   : > { %v5476_v25 = vpop.eup %5475  ;;  %v5310_v10 = vadd.f32 -1.0, %v5474_v0  ;;  %v4813_v27 = vsel %vm4773_vm0, %v4765_v50, %v5308_v35 }
 0x909   : > { %v5478_v14 = vpop.eup %5477  ;;  %v5311_v48 = vadd.f32 -1.0, %v5476_v25  ;;  %v4814_v53 = vsel %vm4774_vm4, %v4766_v19, %v5309_v29  ;;  %4821 = vst.msk [vmem:[%s639_s2] sm:$0xff] %vm4626_vm2, %v4813_v27 }
 0x90a   : > { %v5480_v4 = vpop.eup %5479  ;;  %v5312_v6 = vadd.f32 -1.0, %v5478_v14  ;;  %v4815_v51 = vsel %vm4775_vm10, %v4767_v38, %v5310_v10  ;;  %4822 = vst.msk [vmem:[%s639_s2 + $0x8] sm:$0xff] %vm4626_vm2, %v4814_v53 }
 0x90b   : > { %v5482_v60 = vpop.eup %5481  ;;  %v5313_v12 = vadd.f32 -1.0, %v5480_v4  ;;  %v4816_v30 = vsel %vm4776_vm11, %v4768_v40, %v5311_v48  ;;  %4823 = vst.msk [vmem:[%s639_s2 + $0x10] sm:$0xff] %vm4626_vm2, %v4815_v51 }
 0x90c   : > { %v5484_v34 = vpop.eup %5483  ;;  %v5314_v26 = vadd.f32 -1.0, %v5482_v60  ;;  %v4817_v56 = vsel %vm4777_vm12, %v8645_v9, %v5312_v6  ;;  %4824 = vst.msk [vmem:[%s639_s2 + $0x18] sm:$0xff] %vm4626_vm2, %v4816_v30 }
 0x90d   : > { %v5315_v57 = vadd.f32 -1.0, %v5484_v34  ;;  %v4818_v8 = vsel %vm4778_vm13, %v8647_v46, %v5313_v12  ;;  %4825 = vst.msk [vmem:[%s639_s2 + $0x20] sm:$0xff] %vm4626_vm2, %v4817_v56 }
 0x90e   : > { %v4819_v54 = vsel %vm4779_vm14, %v8649_v41, %v5314_v26  ;;  %4826 = vst.msk [vmem:[%s639_s2 + $0x28] sm:$0xff] %vm4626_vm2, %v4818_v8 }
 0x90f   : > { %v4820_v16 = vsel %vm4780_vm15, %v8651_v49, %v5315_v57  ;;  %4827 = vst.msk [vmem:[%s639_s2 + $0x30] sm:$0xff] %vm4626_vm2, %v4819_v54 }
 0x910   : > { %4828 = vst.msk [vmem:[%s639_s2 + $0x38] sm:$0xff] %vm4626_vm2, %v4820_v16 }
 0x911   : > { %5542 = shalt.err (!%p5539_p8)
}
 0x912   : > { %s5590_s24 = smov 128   ;;  %s5591_s27 = smov 8  }
 0x913   : > { %5335 = dma.vmem_to_hbm [thread:$0]  (%p5735_p5), %s4843_s30, 1024, %s4845_s11, %s4830_s23, %s5590_s24, %s5590_s24, %s5591_s27  }
 0x914 PF: > { %s8828_s2 = sld [smem:[#allocation14_spill]] }
 0x915   : > { %s8829_s3 = sld [smem:[#allocation12_spill]] }
 0x91a   : > { %p5347_p9 = scmp.ge.s32.totalorder %s8828_s2, 2 }
 0x91b   : > { %s4859_s0 = sand.u32 1, %s8829_s3  }
 0x91c   : > { %p5342_p10 = pnand %p5347_p9, %p5739_p6  ;;  %s4860_s25 = scalar_lea.sflag [#allocation8], %s4859_s0 }
 0x91e   : > { %p5343_p11 = pneg %p5342_p10 }
 0x920   : > { %5564 = dma.done.wait (%p5343_p11), %s4860_s25, 1024  }
 0x921   : > { %5566 = vsyncadd (%p5343_p11), %s4860_s25, 4294966272  ;;  %s8831_s24 = sld [smem:[#allocation15_spill]]  ;;  %s8834_s1 = smov %s5573_s22 }
 0x922   : > { %s8832_s29 = sld [smem:[#allocation13_spill]] }
 0x923   : > { %s8833_s23 = sld [smem:[#allocation16_spill]] }
 0x927   : > { %p31_p12 = scmp.ge.s32.totalorder %s8831_s24, 4  }
 0x928   : > { %s8835_s22 = smov %s8832_s29 }
 0x929   :  { %33 = sbr.rel (!%p31_p12) target bundleno = 12 (0xc), region = 180 }
 0x92e   :  { %4866 = vsyncpa [#allocation7], 1 }
 0x92f   :  { %4868 = vsyncpa [#allocation7 + $0x1], 1 }
 0x930   :  { %4869 = vsyncpa [#allocation8], 1 }
 0x931   :  { %4871 = vsyncpa [#allocation8 + $0x1], 1 }

</bundles_post_ra>
